<compile_context>
chip_gen: v6e
topology: v6e:2x2x1
jax: 0.10.0
libtpu: 0.0.40
codegen_flags: <defaults>
</compile_context>

<pallas_src>
import jax
import jax.numpy as jnp
from jax.experimental import pallas as pl
from jax.experimental.pallas import tpu as pltpu


def _fourier_kernel(x_ref, b2t_ref, bias_ref, o_ref):
    # x_ref:   (tm, in_dim)
    # b2t_ref: (in_dim, map_size)   == concat([B.T, B.T], axis=1), resident
    # bias_ref:(1, map_size)        == [0]*half ++ [pi/2]*half, resident
    # o_ref:   (tm, map_size)
    proj = jnp.dot(x_ref[...], b2t_ref[...], preferred_element_type=jnp.float32)
    # sin(z + pi/2) == cos(z)  => one fused sin over the full 2*half lanes.
    # (f32 rounding of z + pi/2 injects ~ulp(|z|) phase error on the cos half;
    #  fine at map_scale=16 with normalized inputs -> atol ~2e-4 in the test.)
    o_ref[...] = jnp.sin(proj + bias_ref[...]).astype(o_ref.dtype)


def _round_up(v, m):
    return ((v + m - 1) // m) * m


def _chip_config():
    """Trace-time, static per-generation knobs."""
    try:
        kind = jax.devices()[0].device_kind.lower()
    except Exception:
        kind = ""
    if "v7" in kind or "7x" in kind:
        # v7x: 2 TensorCores/chip, 64 MiB VMEM per TC.
        return {"num_tensorcores": 2, "vmem_limit_bytes": 48 * 1024 * 1024}
    # v5e / v6e: 1 TensorCore, 128 MiB VMEM (scoped default 16/32 MiB).
    return {"num_tensorcores": 1, "vmem_limit_bytes": 32 * 1024 * 1024}


def fourier_feat_mapping(x, B, *, tm=None, out_dtype=None):
    """Pallas TPU forward of FourierFeatMapping.

    x: (..., in_dim) float32, B: (map_size // 2, in_dim) float32.
    Returns (..., map_size) == concat([sin(x @ B.T), cos(x @ B.T)], -1).
    """
    *lead, in_dim = x.shape
    half, b_in = B.shape
    assert b_in == in_dim
    map_size = 2 * half
    out_dtype = x.dtype if out_dtype is None else jnp.dtype(out_dtype)
    out_itemsize = jnp.dtype(out_dtype).itemsize

    n = 1
    for d in lead:
        n *= d
    x2 = x.reshape(n, in_dim)

    cfg = _chip_config()
    num_tc = cfg["num_tensorcores"]
    vmem_limit = cfg["vmem_limit_bytes"]

    # ---- tile selection (corrected VMEM accounting) -----------------------
    # Per-row footprint:
    #   x tile    : lanes padded to 128     -> round_up(in_dim,128)*4 B  (x2 bufs)
    #   out tile  : map_size * out_itemsize                              (x2 bufs)
    #   f32 temps : matmul result + sin input ~ 2 * map_size * 4 B       (x1)
    if tm is None:
        x_row = _round_up(in_dim, 128) * 4
        out_row = map_size * out_itemsize
        tmp_row = 2 * map_size * 4
        per_row = 2 * x_row + 2 * out_row + tmp_row
        # Resident constants (duplicated B + bias), worst-case double-buffered.
        resident = 2 * (_round_up(in_dim, 8) + 8) * _round_up(map_size, 128) * 4
        budget = int(vmem_limit * 0.75) - resident
        tm = max(256, min(8192, (budget // per_row) // 128 * 128))

    # Never exceed the problem size; keep the sublane dim a multiple of 8.
    tm = min(tm, _round_up(n, 8))
    tm = max(8, (tm // 8) * 8)
    grid_len = pl.cdiv(n, tm)

    if num_tc > 1 and n > 8:
        # Keep the grid a multiple of the TensorCore count so the "parallel"
        # row axis shards evenly across both v7x cores.
        # TODO(synk): confirm in xprof that dimension_semantics=("parallel",)
        # actually splits this axis across both TCs; otherwise switch to
        # pltpu.CORE_PARALLEL / an explicit core grid axis.
        g = _round_up(max(grid_len, num_tc), num_tc)
        tm = max(8, _round_up(pl.cdiv(n, g), 8))
        grid_len = pl.cdiv(n, tm)

    # ---- constant prep (runs once inside the surrounding jit) -------------
    b2t = jnp.concatenate([B.T, B.T], axis=1).astype(jnp.float32)  # (in_dim, map_size)
    bias = jnp.concatenate(
        [jnp.zeros((1, half), jnp.float32),
         jnp.full((1, half), jnp.pi / 2, jnp.float32)],
        axis=1,
    )                                                              # (1, map_size)

    cost = pl.CostEstimate(
        flops=2 * n * in_dim * map_size,
        transcendentals=n * map_size,
        bytes_accessed=n * (in_dim * x.dtype.itemsize + map_size * out_itemsize),
    )

    out = pl.pallas_call(
        _fourier_kernel,
        out_shape=jax.ShapeDtypeStruct((n, map_size), out_dtype),
        grid_spec=pltpu.PrefetchScalarGridSpec(
            num_scalar_prefetch=0,
            grid=(grid_len,),
            in_specs=[
                pl.BlockSpec((tm, in_dim), lambda i: (i, 0)),
                # Constant index_map keeps these resident (not re-fetched);
                # the redundant second buffer is only ~16 KiB, left as-is.
                pl.BlockSpec((in_dim, map_size), lambda i: (0, 0)),
                pl.BlockSpec((1, map_size), lambda i: (0, 0)),
            ],
            out_specs=pl.BlockSpec((tm, map_size), lambda i: (i, 0)),
        ),
        compiler_params=pltpu.CompilerParams(
            dimension_semantics=("parallel",),
            vmem_limit_bytes=vmem_limit,
        ),
        cost_estimate=cost,
    )(x2, b2t, bias)

    return out.reshape(*lead, map_size)


if __name__ == "__main__":
    # Module config (small): in_dim=8, map_scale=16, map_size=256
    in_dim = 8
    map_scale = 16.0
    map_size = 256  # -> B has shape (128, 8), out_dim = 256

    key = jax.random.PRNGKey(0)
    kx, kb = jax.random.split(key)

    # Deterministic "normal(0, map_scale)" init of the buffer B.
    B = map_scale * jax.random.normal(kb, (map_size // 2, in_dim), dtype=jnp.float32)

    # Example input: (batch=2, points=64, in_dim=8)
    x = jax.random.normal(kx, (2, 64, in_dim), dtype=jnp.float32)

    fwd = jax.jit(fourier_feat_mapping)
    out = jax.block_until_ready(fwd(x, B))

    # Sanity check against a plain-JAX reference of the PyTorch forward.
    x_proj = jnp.matmul(x, B.T)
    ref = jnp.concatenate([jnp.sin(x_proj), jnp.cos(x_proj)], axis=-1)
    assert out.shape == (2, 64, map_size)
    # sin(z + pi/2) vs cos(z) differ only by f32 argument rounding (~ulp(|z|)).
    assert jnp.allclose(out, ref, atol=2e-4, rtol=1e-4)

    print("KERNEL_OK")
</pallas_src>

<mosaic_0001>
module attributes {stable_mosaic.version = 11 : i64} {
  func.func @_fourier_kernel(%arg0: i32, %arg1: memref<128x8xf32, #tpu.memory_space<vmem>>, %arg2: memref<8x256xf32, #tpu.memory_space<vmem>>, %arg3: memref<1x256xf32, #tpu.memory_space<vmem>>, %arg4: memref<128x256xf32, #tpu.memory_space<vmem>>) attributes {dimension_semantics = [#tpu.dimension_semantics<parallel>], iteration_bounds = array<i64: 1>, scalar_prefetch = 0 : i64, scratch_operands = 0 : i64, tpu.core_type = #tpu.core_type<tc>, window_params = [{transform_indices = @transform_0, window_bounds = array<i64: 128, 8>}, {pipeline_mode = #tpu.pipeline_mode<synchronous>, transform_indices = @transform_1, window_bounds = array<i64: 8, 256>}, {pipeline_mode = #tpu.pipeline_mode<synchronous>, transform_indices = @transform_2, window_bounds = array<i64: 1, 256>}, {transform_indices = @transform_3, window_bounds = array<i64: 128, 256>}]} {
    %c0 = arith.constant 0 : index
    %c0_0 = arith.constant 0 : index
    %0 = vector.load %arg1[%c0, %c0_0] : memref<128x8xf32, #tpu.memory_space<vmem>>, vector<128x8xf32>
    %c0_1 = arith.constant 0 : index
    %c0_2 = arith.constant 0 : index
    %1 = vector.load %arg2[%c0_1, %c0_2] : memref<8x256xf32, #tpu.memory_space<vmem>>, vector<8x256xf32>
    %cst = arith.constant dense<0.000000e+00> : vector<128x256xf32>
    %2 = tpu.matmul %0, %1, %cst {dimension_numbers = #tpu.dot_dimension_numbers<[1], [0], [0], [1], [0, 0, 1, 1], [], []>} : vector<128x8xf32>, vector<8x256xf32>, vector<128x256xf32> -> vector<128x256xf32>
    %c0_3 = arith.constant 0 : index
    %c0_4 = arith.constant 0 : index
    %3 = vector.load %arg3[%c0_3, %c0_4] : memref<1x256xf32, #tpu.memory_space<vmem>>, vector<1x256xf32>
    %4 = vector.broadcast %3 : vector<1x256xf32> to vector<128x256xf32>
    %5 = arith.addf %2, %4 : vector<128x256xf32>
    %6 = math.sin %5 : vector<128x256xf32>
    %c0_5 = arith.constant 0 : index
    %c0_6 = arith.constant 0 : index
    %7 = vector.load %arg4[%c0_5, %c0_6] : memref<128x256xf32, #tpu.memory_space<vmem>>, vector<128x256xf32>
    tpu.vector_store %arg4[%c0_5, %c0_6], %6 {strides = array<i32>} : memref<128x256xf32, #tpu.memory_space<vmem>>, vector<128x256xf32>,
    return
  }
  func.func @transform_0(%arg0: i32) -> (i32, i32) {
    %c0_i32 = arith.constant 0 : i32
    %c0_i32_0 = arith.constant 0 : i32
    return %arg0, %c0_i32 : i32, i32
  }
  func.func @transform_1(%arg0: i32) -> (i32, i32) {
    %c0_i32 = arith.constant 0 : i32
    %c0_i32_0 = arith.constant 0 : i32
    %c0_i32_1 = arith.constant 0 : i32
    return %c0_i32, %c0_i32_0 : i32, i32
  }
  func.func @transform_2(%arg0: i32) -> (i32, i32) {
    %c0_i32 = arith.constant 0 : i32
    %c0_i32_0 = arith.constant 0 : i32
    %c0_i32_1 = arith.constant 0 : i32
    return %c0_i32, %c0_i32_0 : i32, i32
  }
  func.func @transform_3(%arg0: i32) -> (i32, i32) {
    %c0_i32 = arith.constant 0 : i32
    %c0_i32_0 = arith.constant 0 : i32
    return %arg0, %c0_i32 : i32, i32
  }
}

</mosaic_0001>

<bundles_post_ra>
// kernel: fourier_feat_mapping.1
= control target key start
LH: loop header
LB: loop body
LE: loop exit
PB: predicated region body
PF: predicated region fallthrough
CT: control target
= control target key end

     0   :  { %vm45_vm0 = vcmask 64512   ;;  %v4065_v4 = vmov 0.0   ;;  %s6485_s0 = inlined_call_operand.vmem [shape: f32[128,8], index: 0, kind: input, shape index: {}]   ;;  %s6486_s1 = inlined_call_operand.vmem [shape: f32[8,256], index: 1, kind: input, shape index: {}]   ;;  %s6487_s2 = inlined_call_operand.vmem [shape: f32[1,256], index: 2, kind: input, shape index: {}]   ;;  %s6488_s3 = inlined_call_operand.hbm [shape: f32[128,256], index: 3, kind: output, shape index: {}]  }
   0x1   :  { %v32_v0 = vld [vmem:[%s6486_s1 + $0x8] sm:$0xff]  ;;  %v31_v1 = vld [vmem:[%s6486_s1] sm:$0xff]  ;;  %158 = vmatprep.mubr.f32.mxu0 %v4065_v4  ;;  %206 = vmatprep.mubr.f32.mxu1 %v4065_v4 }
   0x2   :  { %124 = vmatprep.subr.mxu0 %v32_v0  ;;  %3775 = vmatprep.subr.mxu1 %v32_v0  ;;  %v15_v2 = vld [vmem:[%s6485_s0] sm:$0xff]  ;;  %v16_v5 = vld [vmem:[%s6485_s0 + $0x8] sm:$0xff] }
   0x3   :  { %v23_v3 = vld [vmem:[%s6485_s0 + $0x40] sm:$0xff]  ;;  %125 = vmatpush1.msra.mxu0 %v31_v1  ;;  %3776 = vmatpush1.msra.mxu1 %v31_v1  ;;  %v24_v6 = vld [vmem:[%s6485_s0 + $0x48] sm:$0xff] }
   0x4   :  { %3631 = vmatmul.mubr.msk.f32.vlgmr.msra.gmra.mxu0 %vm45_vm0, %v15_v2  ;;  %3639 = vmatmul.mubr.msk.f32.vlgmr.msra.gmra.mxu1 %vm45_vm0, %v23_v3 }
   0x5   :  { %164 = vmatprep.mubr.f32.mxu0 %v4065_v4  ;;  %212 = vmatprep.mubr.f32.mxu1 %v4065_v4 }
   0x6   :  { %8 = vsyncpa [#allocation3], 0  ;;  %v17_v7 = vld [vmem:[%s6485_s0 + $0x10] sm:$0xff]  ;;  %v18_v9 = vld [vmem:[%s6485_s0 + $0x18] sm:$0xff]  ;;  %v35_v19 = vlaneseq  ;;  %v4066_v61 = vmov 683565275  }
   0x7   :  { %v25_v8 = vld [vmem:[%s6485_s0 + $0x50] sm:$0xff]  ;;  %v26_v10 = vld [vmem:[%s6485_s0 + $0x58] sm:$0xff]  ;;  %v19_v11 = vld [vmem:[%s6485_s0 + $0x20] sm:$0xff]  ;;  %v4067_v1 = vmov 2475754826  }
   0x8   :  { %3632 = vmatmul.mubr.msk.f32.gmra.mxu0 %vm45_vm0, %v16_v5  ;;  %3640 = vmatmul.mubr.msk.f32.gmra.mxu1 %vm45_vm0, %v24_v6  ;;  %v27_v12 = vld [vmem:[%s6485_s0 + $0x60] sm:$0xff]  ;;  %v20_v13 = vld [vmem:[%s6485_s0 + $0x28] sm:$0xff]  ;;  %v21_v15 = vld [vmem:[%s6485_s0 + $0x30] sm:$0xff]  ;;  %v36_v20 = vshrl.u32 %v35_v19, 7  ;;  %v4068_v3 = vmov 2131351028  }
   0x9   :  { %170 = vmatprep.mubr.f32.mxu0 %v4065_v4  ;;  %218 = vmatprep.mubr.f32.mxu1 %v4065_v4  ;;  %v28_v14 = vld [vmem:[%s6485_s0 + $0x68] sm:$0xff]  ;;  %v29_v16 = vld [vmem:[%s6485_s0 + $0x70] sm:$0xff]  ;;  %v22_v17 = vld [vmem:[%s6485_s0 + $0x38] sm:$0xff]  ;;  %v4069_v5 = vmov 2102212464  }
   0xa   :  { %v30_v18 = vld [vmem:[%s6485_s0 + $0x78] sm:$0xff]  ;;  %v37_v21 = vsub.s32 0, %v36_v20  ;;  %v33_v22 = vld [vmem:[%s6487_s2] sm:$0x3]  ;;  %v41_v24 = vsub.s32 1, %v36_v20  ;;  %s4072_s0 = smov [#allocation2]  }
   0xb   :  { %s3620_s2 = sshll.u32 %s4072_s0, 4  ;;  %s3621_s2 = int_to_ptr.vmem [resolvable:$true] %s3620_s2 }
   0xc   :  { %3633 = vmatmul.mubr.msk.f32.gmra.mxu0 %vm45_vm0, %v17_v7  ;;  %3641 = vmatmul.mubr.msk.f32.gmra.mxu1 %vm45_vm0, %v25_v8  ;;  %v4168_v23 = vrot.slane %v33_v22, %v37_v21  ;;  %v4176_v29 = vrot.slane %v33_v22, %v41_v24  ;;  %v4070_v7 = vmov 920167782   ;;  %s4043_s21 = scalar_lea.vmem %s3621_s2, 4096  ;;  %p4048_p1 = scmp.lt.s32.totalorder %s3621_s2, %s3621_s2 }
   0xd   :  { %176 = vmatprep.mubr.f32.mxu0 %v4065_v4  ;;  %224 = vmatprep.mubr.f32.mxu1 %v4065_v4  ;;  %p4044_p0 = scmp.ne.s32.totalorder %s3621_s2, %s4043_s21  ;;  %p4049_p2 = scmp.lt.s32.totalorder %s4043_s21, %s4043_s21 }
   0xf   :  { %p4050_p3 = por %p4049_p2, %p4048_p1 }
  0x10   :  { %3634 = vmatmul.mubr.msk.f32.gmra.mxu0 %vm45_vm0, %v18_v9  ;;  %3642 = vmatmul.mubr.msk.f32.gmra.mxu1 %vm45_vm0, %v26_v10 }
  0x11   :  { %182 = vmatprep.mubr.f32.mxu0 %v4065_v4  ;;  %230 = vmatprep.mubr.f32.mxu1 %v4065_v4  ;;  %p4051_p4 = pnand %p4050_p3, %p4044_p0 }
  0x14   :  { %3635 = vmatmul.mubr.msk.f32.gmra.mxu0 %vm45_vm0, %v19_v11  ;;  %3643 = vmatmul.mubr.msk.f32.gmra.mxu1 %vm45_vm0, %v27_v12 }
  0x15   :  { %188 = vmatprep.mubr.f32.mxu0 %v4065_v4  ;;  %236 = vmatprep.mubr.f32.mxu1 %v4065_v4 }
  0x18   :  { %3636 = vmatmul.mubr.msk.f32.gmra.mxu0 %vm45_vm0, %v20_v13  ;;  %3644 = vmatmul.mubr.msk.f32.gmra.mxu1 %vm45_vm0, %v28_v14  ;;  %v4071_v14 = vmov 1326507024  }
  0x19   :  { %194 = vmatprep.mubr.f32.mxu0 %v4065_v4  ;;  %242 = vmatprep.mubr.f32.mxu1 %v4065_v4 }
  0x1c   :  { %3637 = vmatmul.mubr.msk.f32.gmra.mxu0 %vm45_vm0, %v21_v15  ;;  %3645 = vmatmul.mubr.msk.f32.gmra.mxu1 %vm45_vm0, %v29_v16 }
  0x1d   :  { %200 = vmatprep.mubr.f32.mxu0 %v4065_v4  ;;  %248 = vmatprep.mubr.f32.mxu1 %v4065_v4 }
  0x20   :  { %3638 = vmatmul.mubr.msk.f32.gmra.mxu0 %vm45_vm0, %v22_v17  ;;  %3646 = vmatmul.mubr.msk.f32.gmra.mxu1 %vm45_vm0, %v30_v18 }
  0xc4   :  { %v160_v25 = vpop.f32.mrf.mxu0  ;;  %v208_v26 = vpop.f32.mrf.mxu1 }
  0xc5   :  { %v4171_v27 = vadd.f32 %v160_v25, %v4168_v23  ;;  %v4174_v28 = vadd.f32 %v208_v26, %v4168_v23 }
  0xc6   :  { %v162_v30 = vpop.f32.mrf.mxu0  ;;  %v210_v49 = vpop.f32.mrf.mxu1 }
  0xc7   :  { %v255_v31 = vand.u32 2147483647, %v4171_v27  ;;  %v258_v32 = vand.u32 2139095040, %v4171_v27  ;;  %v1919_v33 = vand.u32 2147483647, %v4174_v28  ;;  %v1922_v34 = vand.u32 2139095040, %v4174_v28 }
  0xc8   :  { %v4185_v37 = vadd.f32 %v162_v30, %v4176_v29  ;;  %v4192_v55 = vadd.f32 %v210_v49, %v4176_v29  ;;  %vm257_vm14 = vcmp.lt.s32.totalorder %v4171_v27, 0 }
  0xc9   :  { %v259_v35 = vshrl.u32 %v258_v32, 23  ;;  %v262_v36 = vand.u32 8388607, %v255_v31  ;;  %v1923_v38 = vshrl.u32 %v1922_v34, 23  ;;  %v1926_v39 = vand.u32 8388607, %v1919_v33 }
  0xca   :  { %v362_v42 = vand.u32 2139095040, %v4185_v37  ;;  %v359_v47 = vand.u32 2147483647, %v4185_v37  ;;  %vm4297_vm15 = vcmp.le.f32.partialorder %v255_v31, 0.7853982 }
  0xcb   :  { %v3647_v40 = vadd.s32 4294967169, %v259_v35  ;;  %v3711_v41 = vadd.s32 4294967169, %v1923_v38  ;;  %v263_v43 = vor.u32 8388608, %v262_v36  ;;  %v1927_v45 = vor.u32 8388608, %v1926_v39 }
  0xcc   :  { %v363_v48 = vshrl.u32 %v362_v42, 23  ;;  %v4202_v59 = vand.u32 8388607, %v359_v47 }
  0xcd   :  { %v265_v44 = vadd.s32 1, %v3647_v40  ;;  %v1929_v46 = vadd.s32 1, %v3711_v41  ;;  %v4194_v56 = vshll.u32 %v263_v43, 8  ;;  %v4198_v58 = vshll.u32 %v1927_v45, 8 }
  0xce   :  { %v3651_v51 = vadd.s32 4294967169, %v363_v48 }
  0xcf   :  { %vm266_vm1 = vcmp.gt.s32.totalorder %v265_v44, 0  ;;  %vm1930_vm2 = vcmp.gt.s32.totalorder %v1929_v46, 0 }
  0xd0   :  { %v267_v50 = vsel %vm266_vm1, %v265_v44, 0  ;;  %v1931_v54 = vsel %vm1930_vm2, %v1929_v46, 0  ;;  %v4205_v0 = vadd.s32 1, %v3651_v51 }
  0xd1   :  { %v268_v52 = vshrl.u32 %v267_v50, 5  ;;  %v269_v53 = vand.u32 31, %v267_v50  ;;  %v4196_v57 = vshrl.u32 %v1931_v54, 5  ;;  %v1933_v63 = vand.u32 31, %v1931_v54 }
  0xd2   :  { %vm370_vm12 = vcmp.gt.s32.totalorder %v4205_v0, 0 }
  0xd3   :  { %v270_v60 = vsub.s32 32, %v269_v53  ;;  %v272_v62 = vshll.u32 %v4066_v61, %v269_v53  ;;  %v275_v2 = vshll.u32 %v4067_v1, %v269_v53  ;;  %v278_v4 = vshll.u32 %v4068_v3, %v269_v53 }
  0xd4   :  { %v281_v6 = vshll.u32 %v4069_v5, %v269_v53  ;;  %v284_v8 = vshll.u32 %v4070_v7, %v269_v53  ;;  %vm287_vm3 = vcmp.lt.s32.totalorder %v268_v52, 1  ;;  %vm288_vm4 = vcmp.lt.s32.totalorder %v268_v52, 2 }
  0xd5   :  { %v273_v9 = vshrl.u32 %v4067_v1, %v270_v60  ;;  %v276_v10 = vshrl.u32 %v4068_v3, %v270_v60  ;;  %v279_v11 = vshrl.u32 %v4069_v5, %v270_v60  ;;  %v271_v12 = vshrl.u32 %v4066_v61, %v270_v60 }
  0xd6   :  { %v282_v13 = vshrl.u32 %v4070_v7, %v270_v60  ;;  %v285_v15 = vshrl.u32 %v4071_v14, %v270_v60  ;;  %v1934_v19 = vsub.s32 32, %v1933_v63  ;;  %vm289_vm5 = vcmp.lt.s32.totalorder %v268_v52, 3 }
  0xd7   :  { %v274_v16 = vor.u32 %v273_v9, %v272_v62  ;;  %v277_v17 = vor.u32 %v276_v10, %v275_v2  ;;  %v280_v18 = vor.u32 %v279_v11, %v278_v4  ;;  %vm290_vm6 = vcmp.lt.s32.totalorder %v268_v52, 4 }
  0xd8   :  { %v283_v20 = vor.u32 %v282_v13, %v281_v6  ;;  %v286_v21 = vor.u32 %v285_v15, %v284_v8  ;;  %v1936_v35 = vshll.u32 %v4066_v61, %v1933_v63  ;;  %v1937_v39 = vshrl.u32 %v4067_v1, %v1934_v19 }
  0xd9   :  { %v291_v22 = vsel %vm287_vm3, %v271_v12, %v274_v16  ;;  %v292_v24 = vsel %vm290_vm6, %v280_v18, 2102212464  ;;  %v295_v25 = vsel %vm287_vm3, %v274_v16, %v277_v17  ;;  %v299_v26 = vsel %vm287_vm3, %v277_v17, %v280_v18 }
  0xda   :  { %v293_v30 = vsel %vm289_vm5, %v277_v17, %v292_v24  ;;  %v296_v32 = vsel %vm290_vm6, %v283_v20, 920167782  ;;  %v300_v34 = vsel %vm290_vm6, %v286_v21, 1326507024  ;;  %v1939_v40 = vshll.u32 %v4067_v1, %v1933_v63 }
  0xdb   :  { %v297_v36 = vsel %vm289_vm5, %v280_v18, %v296_v32  ;;  %v301_v38 = vsel %vm289_vm5, %v283_v20, %v300_v34  ;;  %v294_v41 = vsel %vm288_vm4, %v291_v22, %v293_v30  ;;  %v1940_v44 = vshrl.u32 %v4068_v3, %v1934_v19 }
  0xdc   :  { %v298_v42 = vsel %vm288_vm4, %v295_v25, %v297_v36  ;;  %v302_v43 = vsel %vm288_vm4, %v299_v26, %v301_v38  ;;  %v1938_v50 = vor.u32 %v1937_v39, %v1936_v35  ;;  %v1942_v53 = vshll.u32 %v4068_v3, %v1933_v63 }
  0xdd   :  { %v4228_v45 = vmul.u32.u64.low %v4194_v56, %v302_v43  ;;  %v4229_v46 = vmul.u32.u64.high %v4194_v56, %v302_v43, %v4228_v45  ;;  %v4232_v48 = vmul.u32.u64.low %v4194_v56, %v298_v42  ;;  %v4233_v49 = vmul.u32.u64.high %v4194_v56, %v298_v42, %v4232_v48 }
  0xde   :  { %v1941_v51 = vor.u32 %v1940_v44, %v1939_v40  ;;  %v1943_v54 = vshrl.u32 %v4069_v5, %v1934_v19  ;;  %v1935_v60 = vshrl.u32 %v4066_v61, %v1934_v19  ;;  %v1945_v52 = vshll.u32 %v4069_v5, %v1933_v63 }
  0xdf   :  { %v1946_v62 = vshrl.u32 %v4070_v7, %v1934_v19  ;;  %v1949_v2 = vshrl.u32 %v4071_v14, %v1934_v19  ;;  %v310_v4 = vmul.u32 %v4194_v56, %v294_v41  ;;  %v1948_v8 = vshll.u32 %v4070_v7, %v1933_v63 }
  0xe0   :  { %v1944_v6 = vor.u32 %v1943_v54, %v1942_v53  ;;  %vm1951_vm7 = vcmp.lt.s32.totalorder %v4196_v57, 1  ;;  %vm312_vm8 = vc.u32 %v4229_v46, %v4232_v48  ;;  %v313_v9 = vadd.s32 1, %v4233_v49 }
  0xe1   :  { %v1947_v10 = vor.u32 %v1946_v62, %v1945_v52  ;;  %vm1952_vm9 = vcmp.lt.s32.totalorder %v4196_v57, 2  ;;  %v1950_v11 = vor.u32 %v1949_v2, %v1948_v8  ;;  %vm1953_vm10 = vcmp.lt.s32.totalorder %v4196_v57, 3 }
  0xe2   :  { %vm1954_vm11 = vcmp.lt.s32.totalorder %v4196_v57, 4  ;;  %v1959_v12 = vsel %vm1951_vm7, %v1938_v50, %v1941_v51  ;;  %v314_v56 = vsel %vm312_vm8, %v313_v9, %v4233_v49  ;;  %v1963_v63 = vsel %vm1951_vm7, %v1941_v51, %v1944_v6 }
  0xe3   :  { %v1956_v13 = vsel %vm1954_vm11, %v1944_v6, 2102212464  ;;  %v1960_v15 = vsel %vm1954_vm11, %v1947_v10, 920167782  ;;  %v315_v16 = vadd.s32 %v314_v56, %v310_v4  ;;  %v1955_v17 = vsel %vm1951_vm7, %v1935_v60, %v1938_v50 }
  0xe4   :  { %v1961_v18 = vsel %vm1953_vm10, %v1944_v6, %v1960_v15  ;;  %v1964_v19 = vsel %vm1954_vm11, %v1950_v11, 1326507024  ;;  %v1957_v20 = vsel %vm1953_vm10, %v1941_v51, %v1956_v13  ;;  %v371_v35 = vsel %vm370_vm12, %v4205_v0, 0 }
  0xe5   :  { %v1962_v21 = vsel %vm1952_vm9, %v1959_v12, %v1961_v18  ;;  %v1965_v22 = vsel %vm1953_vm10, %v1947_v10, %v1964_v19  ;;  %v316_v24 = vadd.s32 536870912, %v315_v16  ;;  %v1958_v38 = vsel %vm1952_vm9, %v1955_v17, %v1957_v20 }
  0xe6   :  { %v1966_v25 = vsel %vm1952_vm9, %v1963_v63, %v1965_v22  ;;  %v4256_v26 = vmul.u32.u64.low %v4198_v58, %v1962_v21  ;;  %v4257_v30 = vmul.u32.u64.high %v4198_v58, %v1962_v21, %v4256_v26  ;;  %v373_v39 = vand.u32 31, %v371_v35 }
  0xe7   :  { %v4261_v32 = vmul.u32.u64.low %v4198_v58, %v1966_v25  ;;  %v4262_v34 = vmul.u32.u64.high %v4198_v58, %v1966_v25, %v4261_v32  ;;  %v317_v36 = vshrl.u32 %v316_v24, 30  ;;  %v2026_v40 = vand.u32 2139095040, %v4192_v55 }
  0xe8   :  { %v1977_v42 = vadd.s32 1, %v4257_v30  ;;  %v367_v43 = vor.u32 8388608, %v4202_v59  ;;  %v1974_v44 = vmul.u32 %v4198_v58, %v1958_v38  ;;  %v374_v45 = vsub.s32 32, %v373_v39 }
  0xe9   :  { %v318_v41 = vshll.u32 %v317_v36, 30  ;;  %vm1976_vm13 = vc.u32 %v4262_v34, %v4256_v26  ;;  %v2027_v57 = vshrl.u32 %v2026_v40, 23  ;;  %v311_v51 = vadd.s32 %v4232_v48, %v4229_v46 }
  0xea   :  { %v1978_v0 = vsel %vm1976_vm13, %v1977_v42, %v4257_v30  ;;  %v4279_v54 = vshll.u32 %v367_v43, 8  ;;  %v2023_v58 = vand.u32 2147483647, %v4192_v55  ;;  %v4282_v60 = vshrl.u32 %v371_v35, 5 }
  0xeb   :  { %v4273_v49 = vsub.s32 %v315_v16, %v318_v41  ;;  %v1979_v50 = vadd.s32 %v1978_v0, %v1974_v44  ;;  %v377_v52 = vshrl.u32 %v4067_v1, %v374_v45  ;;  %v380_v62 = vshrl.u32 %v4068_v3, %v374_v45 }
  0xec   :  { %v383_v4 = vshrl.u32 %v4069_v5, %v374_v45  ;;  %v386_v6 = vshrl.u32 %v4070_v7, %v374_v45  ;;  %v4289_v46 = vadd.s32 4294967169, %v2027_v57  ;;  %v341_v48 = vsub.s32 4, %v317_v36 }
  0xed   :  { %v321_v53 = vsub.s32 0, %v4273_v49  ;;  %v1980_v59 = vadd.s32 536870912, %v1979_v50  ;;  %v376_v9 = vshll.u32 %v4066_v61, %v373_v39  ;;  %v379_v10 = vshll.u32 %v4067_v1, %v373_v39 }
  0xee   :  { %v382_v56 = vshll.u32 %v4068_v3, %v373_v39  ;;  %v385_v13 = vshll.u32 %v4069_v5, %v373_v39  ;;  %v389_v15 = vshrl.u32 %v4071_v14, %v374_v45  ;;  %v4307_v18 = vand.u32 8388607, %v2023_v58 }
  0xef   :  { %v3648_v2 = vmin.u32 %v321_v53, %v4273_v49  ;;  %v4291_v8 = vshrl.u32 %v1980_v59, 30  ;;  %v378_v16 = vor.u32 %v377_v52, %v376_v9  ;;  %v381_v17 = vor.u32 %v380_v62, %v379_v10 }
  0xf0   :  { %v384_v31 = vor.u32 %v383_v4, %v382_v56  ;;  %v387_v20 = vor.u32 %v386_v6, %v385_v13  ;;  %v388_v21 = vshll.u32 %v4070_v7, %v373_v39  ;;  %v342_v22 = vsel %vm257_vm14, %v341_v48, %v317_v36 }
  0xf1   :  { %v323_v12 = vclz %v3648_v2  ;;  %v1982_v63 = vshll.u32 %v4291_v8, 30  ;;  %v375_v25 = vshrl.u32 %v4066_v61, %v374_v45  ;;  %vm391_vm0 = vcmp.lt.s32.totalorder %v4282_v60, 1 }
  0xf2   :  { %v390_v30 = vor.u32 %v389_v15, %v388_v21  ;;  %vm392_vm2 = vcmp.lt.s32.totalorder %v4282_v60, 2  ;;  %vm393_vm3 = vcmp.lt.s32.totalorder %v4282_v60, 3  ;;  %vm1921_vm4 = vcmp.lt.s32.totalorder %v4174_v28, 0 }
  0xf3   :  { %v3649_v19 = vadd.s32 4294967294, %v323_v12  ;;  %v4312_v24 = vsub.s32 %v1979_v50, %v1982_v63  ;;  %vm394_vm5 = vcmp.lt.s32.totalorder %v4282_v60, 4  ;;  %v399_v36 = vsel %vm391_vm0, %v378_v16, %v381_v17 }
  0xf4   :  { %v396_v40 = vsel %vm394_vm5, %v384_v31, 2102212464  ;;  %v400_v41 = vsel %vm394_vm5, %v387_v20, 920167782  ;;  %v403_v45 = vsel %vm391_vm0, %v381_v17, %v384_v31  ;;  %v404_v53 = vsel %vm394_vm5, %v390_v30, 1326507024 }
  0xf5   :  { %vm3650_vm1 = vcmp.lt.s32.totalorder %v3649_v19, 0  ;;  %v1985_v35 = vsub.s32 0, %v4312_v24  ;;  %v401_v44 = vsel %vm393_vm3, %v384_v31, %v400_v41  ;;  %v344_v59 = vsel %vm4297_vm15, 0, %v342_v22 }
  0xf6   :  { %v326_v32 = vsel %vm3650_vm1, 0, %v3649_v19  ;;  %v402_v50 = vsel %vm392_vm2, %v399_v36, %v401_v44  ;;  %vm4335_vm6 = vcmp.le.f32.partialorder %v1919_v33, 0.7853982  ;;  %v395_v62 = vsel %vm391_vm0, %v375_v25, %v378_v16 }
  0xf7   :  { %v327_v38 = vsub.s32 32, %v326_v32  ;;  %v331_v39 = vsub.s32 4294967266, %v326_v32  ;;  %v328_v42 = vshll.u32 %v4273_v49, %v326_v32  ;;  %v3712_v43 = vmin.u32 %v1985_v35, %v4312_v24 }
  0xf8   :  { %v2005_v6 = vsub.s32 4, %v4291_v8  ;;  %v405_v48 = vsel %vm393_vm3, %v387_v20, %v404_v53  ;;  %v4349_v10 = vmul.u32.u64.low %v4279_v54, %v402_v50  ;;  %v4350_v12 = vmul.u32.u64.high %v4279_v54, %v402_v50, %v4349_v10 }
  0xf9   :  { %v329_v0 = vshrl.u32 %v311_v51, %v327_v38  ;;  %v332_v57 = vadd.s32 127, %v331_v39  ;;  %v1987_v52 = vclz %v3712_v43  ;;  %v397_v51 = vsel %vm393_vm3, %v381_v17, %v396_v40  ;;  %v166_v39 = vpop.f32.mrf.mxu0 }
  0xfa   :  { %v406_v33 = vsel %vm392_vm2, %v403_v45, %v405_v48  ;;  %v398_v13 = vsel %vm392_vm2, %v395_v62, %v397_v51  ;;  %v348_v16 = vadd.s32 3, %v344_v59  ;;  %v1975_v17 = vadd.s32 %v4256_v26, %v4262_v34 }
  0xfb   :  { %v330_v2 = vor.u32 %v329_v0, %v328_v42  ;;  %v333_v4 = vshll.u32 %v332_v57, 23  ;;  %v3713_v9 = vadd.s32 4294967294, %v1987_v52  ;;  %v2033_v19 = vadd.s32 1, %v4289_v46 }
  0xfc   :  { %v4356_v15 = vmul.u32.u64.low %v4279_v54, %v406_v33  ;;  %v4357_v63 = vmul.u32.u64.high %v4279_v54, %v406_v33, %v4356_v15  ;;  %v2006_v22 = vsel %vm1921_vm4, %v2005_v6, %v4291_v8  ;;  %v414_v30 = vmul.u32 %v4279_v54, %v398_v13 }
  0xfd   :  { %v334_v56 = vor.u32 4788187, %v333_v4  ;;  %vm3714_vm7 = vcmp.lt.s32.totalorder %v3713_v9, 0  ;;  %v337_v20 = vcvt.s32.f32 %v330_v2  ;;  %v417_v32 = vadd.s32 1, %v4350_v12 }
  0xfe   :  { %v1990_v21 = vsel %vm3714_vm7, 0, %v3713_v9  ;;  %vm416_vm8 = vc.u32 %v4357_v63, %v4349_v10  ;;  %vm2034_vm9 = vcmp.gt.s32.totalorder %v2033_v19, 0  ;;  %v2008_v40 = vsel %vm4335_vm6, 0, %v2006_v22 }
  0xff   :  { %v335_v31 = vand.u32 2147483647, %v334_v56  ;;  %v1991_v60 = vsub.s32 32, %v1990_v21  ;;  %v1995_v25 = vsub.s32 4294967266, %v1990_v21  ;;  %v1992_v36 = vshll.u32 %v4312_v24, %v1990_v21 }
 0x100   :  { %v418_v46 = vsel %vm416_vm8, %v417_v32, %v4350_v12  ;;  %v2035_v38 = vsel %vm2034_vm9, %v2033_v19, 0  ;;  %v4376_v0 = vadd.f32 %v166_v39, %v4168_v23  ;;  %v4381_v50 = vand.u32 3, %v348_v16 }
 0x101   :  { %v338_v35 = vmul.f32 %v337_v20, %v335_v31  ;;  %v1993_v26 = vshrl.u32 %v1975_v17, %v1991_v60  ;;  %v1996_v34 = vadd.s32 127, %v1995_v25  ;;  %v419_v54 = vadd.s32 %v418_v46, %v414_v30 }
 0x102   :  { %v2037_v41 = vand.u32 31, %v2035_v38  ;;  %v4383_v59 = vadd.s32 3, %v2008_v40  ;;  %v2031_v62 = vor.u32 8388608, %v4307_v18  ;;  %vm361_vm10 = vcmp.lt.s32.totalorder %v4185_v37, 0 }
 0x103   :  { %v339_v8 = vxor.u32 2147483648, %v338_v35  ;;  %v1994_v42 = vor.u32 %v1993_v26, %v1992_v36  ;;  %v1997_v43 = vshll.u32 %v1996_v34, 23  ;;  %v420_v44 = vadd.s32 536870912, %v419_v54 }
 0x104   :  { %v2038_v45 = vsub.s32 32, %v2037_v41  ;;  %v4389_v48 = vshrl.u32 %v2035_v38, 5  ;;  %v2040_v9 = vshll.u32 %v4066_v61, %v2037_v41  ;;  %v2043_v56 = vshll.u32 %v4067_v1, %v2037_v41 }
 0x105   :  { %v340_v24 = vsel %vm257_vm14, %v339_v8, %v338_v35  ;;  %v1998_v53 = vor.u32 4788187, %v1997_v43  ;;  %v421_v52 = vshrl.u32 %v420_v44, 30  ;;  %v2001_v4 = vcvt.s32.f32 %v1994_v42 }
 0x106   :  { %v343_v57 = vsel %vm4297_vm15, %v4171_v27, %v340_v24  ;;  %v2041_v51 = vshrl.u32 %v4067_v1, %v2038_v45  ;;  %v2044_v6 = vshrl.u32 %v4068_v3, %v2038_v45  ;;  %v2047_v33 = vshrl.u32 %v4069_v5, %v2038_v45 }
 0x107   :  { %3915 = vcosq.f32 %v343_v57  ;;  %v1999_v2 = vand.u32 2147483647, %v1998_v53  ;;  %v422_v11 = vshll.u32 %v421_v52, 30  ;;  %v2049_v18 = vshll.u32 %v4069_v5, %v2037_v41 }
 0x108   :  { %3917 = vsinq.f32 %v343_v57  ;;  %v2050_v13 = vshrl.u32 %v4070_v7, %v2038_v45  ;;  %v2042_v16 = vor.u32 %v2041_v51, %v2040_v9  ;;  %v2046_v17 = vshll.u32 %v4068_v3, %v2037_v41 }
 0x109   :  { %v2002_v12 = vmul.f32 %v2001_v4, %v1999_v2  ;;  %v4396_v15 = vsub.s32 %v419_v54, %v422_v11  ;;  %v466_v19 = vand.u32 2139095040, %v4376_v0  ;;  %v2045_v20 = vor.u32 %v2044_v6, %v2043_v56 }
 0x10a   :  { %v2051_v21 = vor.u32 %v2050_v13, %v2049_v18  ;;  %v2053_v22 = vshrl.u32 %v4071_v14, %v2038_v45  ;;  %v415_v60 = vadd.s32 %v4349_v10, %v4357_v63  ;;  %v2048_v30 = vor.u32 %v2047_v33, %v2046_v17 }
 0x10b   :  { %v2003_v31 = vxor.u32 2147483648, %v2002_v12  ;;  %v425_v25 = vsub.s32 0, %v4396_v15  ;;  %v2052_v32 = vshll.u32 %v4070_v7, %v2037_v41  ;;  %vm354_vm11 = vcmp.eq.s32.totalorder %v4381_v50, 2 }
 0x10c   :  { %v445_v36 = vsub.s32 4, %v421_v52  ;;  %vm2055_vm12 = vcmp.lt.s32.totalorder %v4389_v48, 1  ;;  %v2071_v26 = vshll.u32 %v2031_v62, 8  ;;  %vm351_vm13 = vcmp.eq.s32.totalorder %v4381_v50, 0 }
 0x10d   :  { %v2004_v35 = vsel %vm1921_vm4, %v2003_v31, %v2002_v12  ;;  %v3652_v63 = vmin.u32 %v425_v25, %v4396_v15  ;;  %v2054_v34 = vor.u32 %v2053_v22, %v2052_v32  ;;  %vm2058_vm14 = vcmp.lt.s32.totalorder %v4389_v48, 4 }
 0x10e   :  { %v2007_v10 = vsel %vm4335_vm6, %v4174_v28, %v2004_v35  ;;  %vm350_vm15 = vcmp.lt.s32.totalorder %v4381_v50, 2  ;;  %v2039_v46 = vshrl.u32 %v4066_v61, %v2038_v45  ;;  %v2063_v38 = vsel %vm2055_vm12, %v2042_v16, %v2045_v20 }
 0x10f   :  { %3919 = vcosq.f32 %v2007_v10  ;;  %v2064_v39 = vsel %vm2058_vm14, %v2051_v21, 920167782  ;;  %vm347_vm0 = vweird.f32 %v4171_v27  ;;  %vm4424_vm1 = vcmp.le.f32.partialorder %v359_v47, 0.7853982 }
 0x110   :  { %3921 = vsinq.f32 %v2007_v10  ;;  %v427_v8 = vclz %v3652_v63  ;;  %vm2057_vm2 = vcmp.lt.s32.totalorder %v4389_v48, 3  ;;  %v2060_v40 = vsel %vm2058_vm14, %v2048_v30, 2102212464 }
 0x111   :  { %v446_v54 = vsel %vm361_vm10, %v445_v36, %v421_v52  ;;  %vm2056_vm3 = vcmp.lt.s32.totalorder %v4389_v48, 2  ;;  %v2065_v41 = vsel %vm2057_vm2, %v2048_v30, %v2064_v39  ;;  %v2067_v42 = vsel %vm2055_vm12, %v2045_v20, %v2048_v30 }
 0x112   :  { %v3653_v43 = vadd.s32 4294967294, %v427_v8  ;;  %v2059_v47 = vsel %vm2055_vm12, %v2039_v46, %v2042_v16  ;;  %v2066_v24 = vsel %vm2056_vm3, %v2063_v38, %v2065_v41  ;;  %v2068_v44 = vsel %vm2058_vm14, %v2054_v34, 1326507024 }
 0x113   :  { %v2061_v57 = vsel %vm2057_vm2, %v2045_v20, %v2060_v40  ;;  %v2069_v53 = vsel %vm2057_vm2, %v2051_v21, %v2068_v44  ;;  %v4442_v52 = vmul.u32.u64.low %v2071_v26, %v2066_v24  ;;  %v4443_v62 = vmul.u32.u64.high %v2071_v26, %v2066_v24, %v4442_v52 }
 0x114   :  { %v3916_v45 = vpop.eup %3915  ;;  %vm3654_vm4 = vcmp.lt.s32.totalorder %v3653_v43, 0  ;;  %v2070_v4 = vsel %vm2056_vm3, %v2067_v42, %v2069_v53  ;;  %v467_v6 = vshrl.u32 %v466_v19, 23  ;;  %v2062_v16 = vsel %vm2056_vm3, %v2059_v47, %v2061_v57 }
 0x115   :  { %v3918_v51 = vpop.eup %3917  ;;  %v355_v2 = vxor.u32 2147483648, %v3916_v45  ;;  %v430_v9 = vsel %vm3654_vm4, 0, %v3653_v43  ;;  %v4448_v33 = vmul.u32.u64.low %v2071_v26, %v2070_v4  ;;  %v4449_v12 = vmul.u32.u64.high %v2071_v26, %v2070_v4, %v4448_v33 }
 0x116   :  { %v352_v11 = vxor.u32 2147483648, %v3918_v51  ;;  %v431_v18 = vsub.s32 32, %v430_v9  ;;  %v435_v13 = vsub.s32 4294967266, %v430_v9  ;;  %v2013_v31 = vand.u32 3, %v4383_v59  ;;  %v214_v59 = vpop.f32.mrf.mxu1 }
 0x117   :  { %v356_v56 = vsel %vm354_vm11, %v355_v2, %v3918_v51  ;;  %v2081_v19 = vadd.s32 1, %v4443_v62  ;;  %v3655_v20 = vadd.s32 4294967169, %v467_v6  ;;  %v432_v22 = vshll.u32 %v4396_v15, %v430_v9 }
 0x118   :  { %v353_v17 = vsel %vm351_vm13, %v3916_v45, %v352_v11  ;;  %v433_v25 = vshrl.u32 %v415_v60, %v431_v18  ;;  %v436_v30 = vadd.s32 127, %v435_v13  ;;  %v448_v48 = vsel %vm4424_vm1, 0, %v446_v54 }
 0x119   :  { %v357_v21 = vsel %vm350_vm15, %v353_v17, %v356_v56  ;;  %v2078_v35 = vmul.u32 %v2071_v26, %v2062_v16  ;;  %vm2080_vm5 = vc.u32 %v4449_v12, %v4442_v52  ;;  %v473_v63 = vadd.s32 1, %v3655_v20 }
 0x11a   :  { %v358_v32 = vsel %vm347_vm0, nan, %v357_v21  ;;  %v434_v36 = vor.u32 %v433_v25, %v432_v22  ;;  %v437_v10 = vshll.u32 %v436_v30, 23  ;;  %v2082_v50 = vsel %vm2080_vm5, %v2081_v19, %v4443_v62 }
 0x11b   :  { %3583 = vst [vmem:[#allocation2] sm:$0xff] %v358_v32  ;;  %v2083_v15 = vadd.s32 %v2082_v50, %v2078_v35  ;;  %v463_v60 = vand.u32 2147483647, %v4376_v0  ;;  %vm2018_vm6 = vcmp.eq.s32.totalorder %v2013_v31, 2  ;;  %vm474_vm7 = vcmp.gt.s32.totalorder %v473_v63, 0 }
 0x11c   :  { %v3920_v34 = vpop.eup %3919  ;;  %v438_v27 = vor.u32 4788187, %v437_v10  ;;  %v4471_v46 = vadd.f32 %v214_v59, %v4168_v23  ;;  %v452_v39 = vadd.s32 3, %v448_v48  ;;  %v475_v40 = vsel %vm474_vm7, %v473_v63, 0 }
 0x11d   :  { %v3922_v26 = vpop.eup %3921  ;;  %v2019_v38 = vxor.u32 2147483648, %v3920_v34  ;;  %v2084_v8 = vadd.s32 536870912, %v2083_v15  ;;  %v441_v42 = vcvt.s32.f32 %v434_v36  ;;  %v477_v43 = vand.u32 31, %v475_v40 }
 0x11e   :  { %v2016_v54 = vxor.u32 2147483648, %v3922_v26  ;;  %v439_v41 = vand.u32 2147483647, %v438_v27  ;;  %vm2015_vm8 = vcmp.eq.s32.totalorder %v2013_v31, 0  ;;  %v470_v44 = vand.u32 8388607, %v463_v60 }
 0x11f   :  { %v2020_v47 = vsel %vm2018_vm6, %v2019_v38, %v3922_v26  ;;  %v4473_v24 = vshrl.u32 %v2084_v8, 30  ;;  %vm2014_vm9 = vcmp.lt.s32.totalorder %v2013_v31, 2  ;;  %v478_v53 = vsub.s32 32, %v477_v43 }
 0x120   :  { %v2017_v45 = vsel %vm2015_vm8, %v3920_v34, %v2016_v54  ;;  %v442_v57 = vmul.f32 %v441_v42, %v439_v41  ;;  %vm2011_vm11 = vweird.f32 %v4174_v28  ;;  %v4479_v6 = vand.u32 3, %v452_v39 }
 0x121   :  { %v2021_v62 = vsel %vm2014_vm9, %v2017_v45, %v2020_v47  ;;  %v2086_v51 = vshll.u32 %v4473_v24, 30  ;;  %v481_v11 = vshrl.u32 %v4067_v1, %v478_v53  ;;  %v471_v33 = vor.u32 8388608, %v470_v44 }
 0x122   :  { %v2022_v2 = vsel %vm2011_vm11, nan, %v2021_v62  ;;  %v443_v4 = vxor.u32 2147483648, %v442_v57  ;;  %v484_v56 = vshrl.u32 %v4068_v3, %v478_v53  ;;  %v2130_v18 = vand.u32 2139095040, %v4471_v46 }
 0x123   :  { %3599 = vst [vmem:[#allocation2 + $0x80] sm:$0xff] %v2022_v2  ;;  %v4482_v9 = vsub.s32 %v2083_v15, %v2086_v51  ;;  %v476_v13 = vshrl.u32 %v475_v40, 5  ;;  %v480_v16 = vshll.u32 %v4066_v61, %v477_v43  ;;  %v487_v17 = vshrl.u32 %v4069_v5, %v478_v53 }
 0x124   :  { %v444_v28 = vsel %vm361_vm10, %v443_v4, %v442_v57  ;;  %v483_v20 = vshll.u32 %v4067_v1, %v477_v43  ;;  %v486_v21 = vshll.u32 %v4068_v3, %v477_v43  ;;  %v489_v25 = vshll.u32 %v4069_v5, %v477_v43 }
 0x125   :  { %v447_v31 = vsel %vm4424_vm1, %v4185_v37, %v444_v28  ;;  %v2089_v19 = vsub.s32 0, %v4482_v9  ;;  %v482_v22 = vor.u32 %v481_v11, %v480_v16  ;;  %v490_v30 = vshrl.u32 %v4070_v7, %v478_v53 }
 0x126   :  { %3923 = vcosq.f32 %v447_v31  ;;  %v485_v48 = vor.u32 %v484_v56, %v483_v20  ;;  %v488_v35 = vor.u32 %v487_v17, %v486_v21  ;;  %v492_v49 = vshll.u32 %v4070_v7, %v477_v43 }
 0x127   :  { %3925 = vsinq.f32 %v447_v31  ;;  %v3716_v32 = vmin.u32 %v2089_v19, %v4482_v9  ;;  %v491_v59 = vor.u32 %v490_v30, %v489_v25  ;;  %v493_v36 = vshrl.u32 %v4071_v14, %v478_v53 }
 0x128   :  { %v511_v10 = vshll.u32 %v471_v33, 8  ;;  %v479_v63 = vshrl.u32 %v4066_v61, %v478_v53  ;;  %vm495_vm10 = vcmp.lt.s32.totalorder %v476_v13, 1  ;;  %v2131_v15 = vshrl.u32 %v2130_v18, 23 }
 0x129   :  { %v2091_v50 = vclz %v3716_v32  ;;  %vm2025_vm12 = vcmp.lt.s32.totalorder %v4192_v55, 0  ;;  %v494_v34 = vor.u32 %v493_v36, %v492_v49  ;;  %vm496_vm13 = vcmp.lt.s32.totalorder %v476_v13, 2 }
 0x12a   :  { %vm497_vm14 = vcmp.lt.s32.totalorder %v476_v13, 3  ;;  %vm498_vm15 = vcmp.lt.s32.totalorder %v476_v13, 4  ;;  %v503_v38 = vsel %vm495_vm10, %v482_v22, %v485_v48  ;;  %v499_v8 = vsel %vm495_vm10, %v479_v63, %v482_v22 }
 0x12b   :  { %v3717_v27 = vadd.s32 4294967294, %v2091_v50  ;;  %v500_v26 = vsel %vm498_vm15, %v488_v35, 2102212464  ;;  %v504_v39 = vsel %vm498_vm15, %v491_v59, 920167782  ;;  %v507_v54 = vsel %vm495_vm10, %v485_v48, %v488_v35 }
 0x12c   :  { %v505_v40 = vsel %vm497_vm14, %v488_v35, %v504_v39  ;;  %v508_v41 = vsel %vm498_vm15, %v494_v34, 1326507024  ;;  %vm4505_vm0 = vcmp.le.f32.partialorder %v2023_v58, 0.7853982  ;;  %v501_v43 = vsel %vm497_vm14, %v485_v48, %v500_v26  ;;  %v168_v34 = vpop.f32.mrf.mxu0 }
 0x12d   :  { %vm3718_vm1 = vcmp.lt.s32.totalorder %v3717_v27, 0  ;;  %v506_v47 = vsel %vm496_vm13, %v503_v38, %v505_v40  ;;  %v509_v44 = vsel %vm497_vm14, %v491_v59, %v508_v41  ;;  %v2079_v51 = vadd.s32 %v4442_v52, %v4449_v12 }
 0x12e   :  { %v2094_v45 = vsel %vm3718_vm1, 0, %v3717_v27  ;;  %v510_v57 = vsel %vm496_vm13, %v507_v54, %v509_v44  ;;  %v4511_v53 = vmul.u32.u64.low %v511_v10, %v506_v47  ;;  %v4512_v62 = vmul.u32.u64.high %v511_v10, %v506_v47, %v4511_v53 }
 0x12f   :  { %v2095_v2 = vsub.s32 32, %v2094_v45  ;;  %v2099_v58 = vsub.s32 4294967266, %v2094_v45  ;;  %v2109_v4 = vsub.s32 4, %v4473_v24  ;;  %v2127_v56 = vand.u32 2147483647, %v4471_v46 }
 0x130   :  { %v4518_v11 = vmul.u32.u64.low %v511_v10, %v510_v57  ;;  %v4519_v33 = vmul.u32.u64.high %v511_v10, %v510_v57, %v4518_v11  ;;  %v3719_v18 = vadd.s32 4294967169, %v2131_v15  ;;  %v2096_v28 = vshll.u32 %v4482_v9, %v2094_v45 }
 0x131   :  { %v2097_v16 = vshrl.u32 %v2079_v51, %v2095_v2  ;;  %v2100_v17 = vadd.s32 127, %v2099_v58  ;;  %v502_v31 = vsel %vm496_vm13, %v499_v8, %v501_v43  ;;  %vm454_vm2 = vcmp.lt.s32.totalorder %v4479_v6, 2 }
 0x132   :  { %vm455_vm3 = vcmp.eq.s32.totalorder %v4479_v6, 0  ;;  %v521_v52 = vadd.s32 1, %v4512_v62  ;;  %v2137_v12 = vadd.s32 1, %v3719_v18  ;;  %vm458_vm4 = vcmp.eq.s32.totalorder %v4479_v6, 2 }
 0x133   :  { %v3924_v19 = vpop.eup %3923  ;;  %v2098_v20 = vor.u32 %v2097_v16, %v2096_v28  ;;  %v2101_v21 = vshll.u32 %v2100_v17, 23  ;;  %v2110_v9 = vsel %vm2025_vm12, %v2109_v4, %v4473_v24  ;;  %v518_v13 = vmul.u32 %v511_v10, %v502_v31 }
 0x134   :  { %v3926_v22 = vpop.eup %3925  ;;  %v459_v25 = vxor.u32 2147483648, %v3924_v19  ;;  %vm520_vm5 = vc.u32 %v4519_v33, %v4511_v53  ;;  %vm2138_vm6 = vcmp.gt.s32.totalorder %v2137_v12, 0  ;;  %v2134_v35 = vand.u32 8388607, %v2127_v56 }
 0x135   :  { %v456_v30 = vxor.u32 2147483648, %v3926_v22  ;;  %v2102_v32 = vor.u32 4788187, %v2101_v21  ;;  %v522_v48 = vsel %vm520_vm5, %v521_v52, %v4512_v62  ;;  %v2112_v49 = vsel %vm4505_vm0, 0, %v2110_v9 }
 0x136   :  { %v460_v59 = vsel %vm458_vm4, %v459_v25, %v3926_v22  ;;  %v523_v36 = vadd.s32 %v522_v48, %v518_v13  ;;  %v2139_v24 = vsel %vm2138_vm6, %v2137_v12, 0  ;;  %v2105_v63 = vcvt.s32.f32 %v2098_v20 }
 0x137   :  { %v457_v10 = vsel %vm455_vm3, %v3924_v19, %v456_v30  ;;  %v2103_v50 = vand.u32 2147483647, %v2102_v32  ;;  %v2141_v15 = vand.u32 31, %v2139_v24  ;;  %vm451_vm7 = vweird.f32 %v4185_v37 }
 0x138   :  { %v461_v27 = vsel %vm454_vm2, %v457_v10, %v460_v59  ;;  %v524_v26 = vadd.s32 536870912, %v523_v36  ;;  %v2116_v8 = vadd.s32 3, %v2112_v49  ;;  %v2135_v41 = vor.u32 8388608, %v2134_v35 }
 0x139   :  { %v462_v38 = vsel %vm451_vm7, nan, %v461_v27  ;;  %v2106_v39 = vmul.f32 %v2105_v63, %v2103_v50  ;;  %v2142_v40 = vsub.s32 32, %v2141_v15  ;;  %v2144_v43 = vshll.u32 %v4066_v61, %v2141_v15 }
 0x13a   :  { %3584 = vst [vmem:[#allocation2 + $0x8] sm:$0xff] %v462_v38  ;;  %v4543_v54 = vshrl.u32 %v524_v26, 30  ;;  %v4547_v47 = vadd.f32 %v168_v34, %v4176_v29  ;;  %v2147_v6 = vshll.u32 %v4067_v1, %v2141_v15  ;;  %v2150_v62 = vshll.u32 %v4068_v3, %v2141_v15 }
 0x13b   :  { %v2107_v44 = vxor.u32 2147483648, %v2106_v39  ;;  %v2145_v37 = vshrl.u32 %v4067_v1, %v2142_v40  ;;  %v2148_v45 = vshrl.u32 %v4068_v3, %v2142_v40  ;;  %v2151_v51 = vshrl.u32 %v4069_v5, %v2142_v40 }
 0x13c   :  { %v526_v57 = vshll.u32 %v4543_v54, 30  ;;  %v2154_v2 = vshrl.u32 %v4070_v7, %v2142_v40  ;;  %v2140_v4 = vshrl.u32 %v2139_v24, 5  ;;  %v2153_v18 = vshll.u32 %v4069_v5, %v2141_v15 }
 0x13d   :  { %v2108_v58 = vsel %vm2025_vm12, %v2107_v44, %v2106_v39  ;;  %v2146_v11 = vor.u32 %v2145_v37, %v2144_v43  ;;  %v2149_v17 = vor.u32 %v2148_v45, %v2147_v6  ;;  %v2152_v31 = vor.u32 %v2151_v51, %v2150_v62 }
 0x13e   :  { %v2111_v28 = vsel %vm4505_vm0, %v4192_v55, %v2108_v58  ;;  %v4562_v16 = vsub.s32 %v523_v36, %v526_v57  ;;  %v2155_v52 = vor.u32 %v2154_v2, %v2153_v18  ;;  %v2156_v12 = vshll.u32 %v4070_v7, %v2141_v15 }
 0x13f   :  { %3927 = vcosq.f32 %v2111_v28  ;;  %v2157_v19 = vshrl.u32 %v4071_v14, %v2142_v40  ;;  %v4566_v20 = vand.u32 3, %v2116_v8  ;;  %vm465_vm8 = vcmp.lt.s32.totalorder %v4376_v0, 0 }
 0x140   :  { %3929 = vsinq.f32 %v2111_v28  ;;  %v529_v21 = vsub.s32 0, %v4562_v16  ;;  %vm2162_vm9 = vcmp.lt.s32.totalorder %v2140_v4, 4  ;;  %v2175_v42 = vshll.u32 %v2135_v41, 8 }
 0x141   :  { %v2158_v9 = vor.u32 %v2157_v19, %v2156_v12  ;;  %v570_v22 = vand.u32 2139095040, %v4547_v47  ;;  %v2143_v13 = vshrl.u32 %v4066_v61, %v2142_v40  ;;  %vm2159_vm11 = vcmp.lt.s32.totalorder %v2140_v4, 1 }
 0x142   :  { %v3656_v25 = vmin.u32 %v529_v21, %v4562_v16  ;;  %v2164_v30 = vsel %vm2162_vm9, %v2152_v31, 2102212464  ;;  %vm2160_vm10 = vcmp.lt.s32.totalorder %v2140_v4, 2  ;;  %v2167_v32 = vsel %vm2159_vm11, %v2146_v11, %v2149_v17 }
 0x143   :  { %v2168_v48 = vsel %vm2162_vm9, %v2155_v52, 920167782  ;;  %v567_v35 = vand.u32 2147483647, %v4547_v47  ;;  %vm2161_vm12 = vcmp.lt.s32.totalorder %v2140_v4, 3  ;;  %v2163_v49 = vsel %vm2159_vm11, %v2143_v13, %v2146_v11 }
 0x144   :  { %v531_v59 = vclz %v3656_v25  ;;  %v2171_v36 = vsel %vm2159_vm11, %v2149_v17, %v2152_v31  ;;  %v2165_v24 = vsel %vm2161_vm12, %v2149_v17, %v2164_v30  ;;  %v2169_v10 = vsel %vm2161_vm12, %v2152_v31, %v2168_v48 }
 0x145   :  { %v2172_v50 = vsel %vm2162_vm9, %v2158_v9, 1326507024  ;;  %v571_v63 = vshrl.u32 %v570_v22, 23  ;;  %v549_v34 = vsub.s32 4, %v4543_v54  ;;  %v2170_v27 = vsel %vm2160_vm10, %v2167_v32, %v2169_v10 }
 0x146   :  { %v3657_v15 = vadd.s32 4294967294, %v531_v59  ;;  %v2173_v26 = vsel %vm2161_vm12, %v2155_v52, %v2172_v50  ;;  %v4580_v39 = vmul.u32.u64.low %v2175_v42, %v2170_v27  ;;  %v4581_v8 = vmul.u32.u64.high %v2175_v42, %v2170_v27, %v4580_v39 }
 0x147   :  { %v2174_v38 = vsel %vm2160_vm10, %v2171_v36, %v2173_v26  ;;  %v3659_v40 = vadd.s32 4294967169, %v571_v63  ;;  %v2166_v41 = vsel %vm2160_vm10, %v2163_v49, %v2165_v24  ;;  %vm2115_vm14 = vweird.f32 %v4192_v55 }
 0x148   :  { %vm3658_vm13 = vcmp.lt.s32.totalorder %v3657_v15, 0  ;;  %v4585_v43 = vmul.u32.u64.low %v2175_v42, %v2174_v38  ;;  %v4586_v44 = vmul.u32.u64.high %v2175_v42, %v2174_v38, %v4585_v43  ;;  %vm2122_vm15 = vcmp.eq.s32.totalorder %v4566_v20, 2 }
 0x149   :  { %vm4592_vm0 = vcmp.le.f32.partialorder %v463_v60, 0.7853982  ;;  %v534_v6 = vsel %vm3658_vm13, 0, %v3657_v15  ;;  %v577_v45 = vadd.s32 1, %v3659_v40  ;;  %v519_v57 = vadd.s32 %v4511_v53, %v4519_v33  ;;  %v216_v53 = vpop.f32.mrf.mxu1 }
 0x14a   :  { %v535_v62 = vsub.s32 32, %v534_v6  ;;  %v539_v51 = vsub.s32 4294967266, %v534_v6  ;;  %v550_v2 = vsel %vm465_vm8, %v549_v34, %v4543_v54  ;;  %v2182_v58 = vmul.u32 %v2175_v42, %v2166_v41 }
 0x14b   :  { %v2185_v4 = vadd.s32 1, %v4581_v8  ;;  %v574_v60 = vand.u32 8388607, %v567_v35  ;;  %vm578_vm1 = vcmp.gt.s32.totalorder %v577_v45, 0  ;;  %v536_v18 = vshll.u32 %v4562_v16, %v534_v6 }
 0x14c   :  { %v3928_v11 = vpop.eup %3927  ;;  %v537_v28 = vshrl.u32 %v519_v57, %v535_v62  ;;  %v540_v17 = vadd.s32 127, %v539_v51  ;;  %vm2184_vm2 = vc.u32 %v4586_v44, %v4580_v39  ;;  %v552_v54 = vsel %vm4592_vm0, 0, %v550_v2 }
 0x14d   :  { %v3930_v33 = vpop.eup %3929  ;;  %v2123_v31 = vxor.u32 2147483648, %v3928_v11  ;;  %v2186_v52 = vsel %vm2184_vm2, %v2185_v4, %v4581_v8  ;;  %v579_v12 = vsel %vm578_vm1, %v577_v45, 0  ;;  %vm2119_vm3 = vcmp.eq.s32.totalorder %v4566_v20, 0 }
 0x14e   :  { %v2120_v19 = vxor.u32 2147483648, %v3930_v33  ;;  %v538_v21 = vor.u32 %v537_v28, %v536_v18  ;;  %v541_v9 = vshll.u32 %v540_v17, 23  ;;  %v2187_v42 = vadd.s32 %v2186_v52, %v2182_v58 }
 0x14f   :  { %v2124_v16 = vsel %vm2122_vm15, %v2123_v31, %v3930_v33  ;;  %v581_v22 = vand.u32 31, %v579_v12  ;;  %v4614_v25 = vadd.f32 %v216_v53, %v4176_v29  ;;  %vm2118_vm4 = vcmp.lt.s32.totalorder %v4566_v20, 2 }
 0x150   :  { %v2121_v13 = vsel %vm2119_vm3, %v3928_v11, %v2120_v19  ;;  %v542_v30 = vor.u32 4788187, %v541_v9  ;;  %v2188_v32 = vadd.s32 536870912, %v2187_v42  ;;  %v4617_v59 = vadd.s32 3, %v552_v54 }
 0x151   :  { %v2125_v48 = vsel %vm2118_vm4, %v2121_v13, %v2124_v16  ;;  %v575_v49 = vor.u32 8388608, %v574_v60  ;;  %v582_v36 = vsub.s32 32, %v581_v22  ;;  %v545_v50 = vcvt.s32.f32 %v538_v21 }
 0x152   :  { %v2126_v24 = vsel %vm2115_vm14, nan, %v2125_v48  ;;  %v543_v10 = vand.u32 2147483647, %v542_v30  ;;  %v4621_v63 = vshrl.u32 %v2188_v32, 30  ;;  %v2234_v27 = vand.u32 2139095040, %v4614_v25 }
 0x153   :  { %3600 = vst [vmem:[#allocation2 + $0x88] sm:$0xff] %v2126_v24  ;;  %v585_v15 = vshrl.u32 %v4067_v1, %v582_v36  ;;  %v588_v20 = vshrl.u32 %v4068_v3, %v582_v36  ;;  %v591_v34 = vshrl.u32 %v4069_v5, %v582_v36  ;;  %v584_v8 = vshll.u32 %v4066_v61, %v581_v22 }
 0x154   :  { %v546_v26 = vmul.f32 %v545_v50, %v543_v10  ;;  %v2190_v38 = vshll.u32 %v4621_v63, 30  ;;  %v587_v55 = vshll.u32 %v4067_v1, %v581_v22  ;;  %v580_v40 = vshrl.u32 %v579_v12, 5 }
 0x155   :  { %v590_v41 = vshll.u32 %v4068_v3, %v581_v22  ;;  %v593_v43 = vshll.u32 %v4069_v5, %v581_v22  ;;  %v594_v6 = vshrl.u32 %v4070_v7, %v582_v36  ;;  %v586_v62 = vor.u32 %v585_v15, %v584_v8 }
 0x156   :  { %v547_v45 = vxor.u32 2147483648, %v546_v26  ;;  %v4633_v57 = vsub.s32 %v2187_v42, %v2190_v38  ;;  %v589_v51 = vor.u32 %v588_v20, %v587_v55  ;;  %v596_v4 = vshll.u32 %v4070_v7, %v581_v22 }
 0x157   :  { %v592_v2 = vor.u32 %v591_v34, %v590_v41  ;;  %v595_v58 = vor.u32 %v594_v6, %v593_v43  ;;  %v597_v60 = vshrl.u32 %v4071_v14, %v582_v36  ;;  %v615_v28 = vshll.u32 %v575_v49, 8 }
 0x158   :  { %v548_v11 = vsel %vm465_vm8, %v547_v45, %v546_v26  ;;  %v2193_v18 = vsub.s32 0, %v4633_v57  ;;  %v2231_v17 = vand.u32 2147483647, %v4614_v25  ;;  %v583_v33 = vshrl.u32 %v4066_v61, %v582_v36 }
 0x159   :  { %v551_v53 = vsel %vm4592_vm0, %v4376_v0, %v548_v11  ;;  %v598_v31 = vor.u32 %v597_v60, %v596_v4  ;;  %v2235_v54 = vshrl.u32 %v2234_v27, 23  ;;  %vm599_vm5 = vcmp.lt.s32.totalorder %v580_v40, 1 }
 0x15a   :  { %3931 = vcosq.f32 %v551_v53  ;;  %v3720_v52 = vmin.u32 %v2193_v18, %v4633_v57  ;;  %vm602_vm6 = vcmp.lt.s32.totalorder %v580_v40, 4  ;;  %v607_v19 = vsel %vm599_vm5, %v586_v62, %v589_v51 }
 0x15b   :  { %3933 = vsinq.f32 %v551_v53  ;;  %v604_v12 = vsel %vm602_vm6, %v592_v2, 2102212464  ;;  %v608_v21 = vsel %vm602_vm6, %v595_v58, 920167782  ;;  %vm600_vm7 = vcmp.lt.s32.totalorder %v580_v40, 2 }
 0x15c   :  { %v2195_v9 = vclz %v3720_v52  ;;  %vm601_vm8 = vcmp.lt.s32.totalorder %v580_v40, 3  ;;  %v603_v42 = vsel %vm599_vm5, %v583_v33, %v586_v62  ;;  %v611_v22 = vsel %vm599_vm5, %v589_v51, %v592_v2 }
 0x15d   :  { %v605_v16 = vsel %vm601_vm8, %v589_v51, %v604_v12  ;;  %v609_v37 = vsel %vm601_vm8, %v592_v2, %v608_v21  ;;  %v612_v13 = vsel %vm602_vm6, %v598_v31, 1326507024  ;;  %v2213_v32 = vsub.s32 4, %v4621_v63  ;;  %v172_v31 = vpop.f32.mrf.mxu0 }
 0x15e   :  { %v3721_v30 = vadd.s32 4294967294, %v2195_v9  ;;  %v610_v48 = vsel %vm600_vm7, %v607_v19, %v609_v37  ;;  %v613_v49 = vsel %vm601_vm8, %v595_v58, %v612_v13  ;;  %v606_v36 = vsel %vm600_vm7, %v603_v42, %v605_v16 }
 0x15f   :  { %v614_v24 = vsel %vm600_vm7, %v611_v22, %v613_v49  ;;  %v4647_v10 = vmul.u32.u64.low %v615_v28, %v610_v48  ;;  %v4648_v50 = vmul.u32.u64.high %v615_v28, %v610_v48, %v4647_v10  ;;  %v3723_v34 = vadd.s32 4294967169, %v2235_v54 }
 0x160   :  { %vm3722_vm9 = vcmp.lt.s32.totalorder %v3721_v30, 0  ;;  %v4650_v15 = vmul.u32.u64.low %v615_v28, %v614_v24  ;;  %v4651_v20 = vmul.u32.u64.high %v615_v28, %v614_v24, %v4650_v15  ;;  %vm4655_vm11 = vcmp.le.f32.partialorder %v2127_v56, 0.7853982 }
 0x161   :  { %vm2129_vm10 = vcmp.lt.s32.totalorder %v4471_v46, 0  ;;  %v2183_v26 = vadd.s32 %v4580_v39, %v4586_v44  ;;  %v2198_v38 = vsel %vm3722_vm9, 0, %v3721_v30  ;;  %v2241_v41 = vadd.s32 1, %v3723_v34 }
 0x162   :  { %v2199_v8 = vsub.s32 32, %v2198_v38  ;;  %v2203_v55 = vsub.s32 4294967266, %v2198_v38  ;;  %v2214_v40 = vsel %vm2129_vm10, %v2213_v32, %v4621_v63  ;;  %v557_v43 = vand.u32 3, %v4617_v59 }
 0x163   :  { %v622_v6 = vmul.u32 %v615_v28, %v606_v36  ;;  %v625_v56 = vadd.s32 1, %v4648_v50  ;;  %v2238_v45 = vand.u32 8388607, %v2231_v17  ;;  %v2200_v62 = vshll.u32 %v4633_v57, %v2198_v38 }
 0x164   :  { %v2201_v51 = vshrl.u32 %v2183_v26, %v2199_v8  ;;  %v2204_v39 = vadd.s32 127, %v2203_v55  ;;  %vm624_vm12 = vc.u32 %v4651_v20, %v4647_v10  ;;  %v2216_v44 = vsel %vm4655_vm11, 0, %v2214_v40 }
 0x165   :  { %v626_v63 = vsel %vm624_vm12, %v625_v56, %v4648_v50  ;;  %vm2242_vm13 = vcmp.gt.s32.totalorder %v2241_v41, 0  ;;  %vm555_vm14 = vweird.f32 %v4376_v0  ;;  %vm558_vm15 = vcmp.lt.s32.totalorder %v557_v43, 2 }
 0x166   :  { %v2202_v2 = vor.u32 %v2201_v51, %v2200_v62  ;;  %v2205_v59 = vshll.u32 %v2204_v39, 23  ;;  %v627_v58 = vadd.s32 %v626_v63, %v622_v6  ;;  %v2243_v4 = vsel %vm2242_vm13, %v2241_v41, 0 }
 0x167   :  { %v3932_v60 = vpop.eup %3931  ;;  %vm559_vm0 = vcmp.eq.s32.totalorder %v557_v43, 0  ;;  %v2245_v57 = vand.u32 31, %v2243_v4  ;;  %v2239_v33 = vor.u32 8388608, %v2238_v45  ;;  %vm562_vm1 = vcmp.eq.s32.totalorder %v557_v43, 2 }
 0x168   :  { %v3934_v11 = vpop.eup %3933  ;;  %v563_v18 = vxor.u32 2147483648, %v3932_v60  ;;  %v2206_v28 = vor.u32 4788187, %v2205_v59  ;;  %v628_v53 = vadd.s32 536870912, %v627_v58  ;;  %v4675_v52 = vadd.s32 3, %v2216_v44 }
 0x169   :  { %v560_v54 = vxor.u32 2147483648, %v3934_v11  ;;  %v2246_v12 = vsub.s32 32, %v2245_v57  ;;  %v2209_v9 = vcvt.s32.f32 %v2202_v2  ;;  %v4679_v37 = vadd.s32 %v4647_v10, %v4651_v20 }
 0x16a   :  { %v564_v19 = vsel %vm562_vm1, %v563_v18, %v3934_v11  ;;  %v2207_v21 = vand.u32 2147483647, %v2206_v28  ;;  %v629_v42 = vshrl.u32 %v628_v53, 30  ;;  %v4683_v13 = vadd.f32 %v172_v31, %v4168_v23 }
 0x16b   :  { %v561_v16 = vsel %vm559_vm0, %v3932_v60, %v560_v54  ;;  %v2249_v22 = vshrl.u32 %v4067_v1, %v2246_v12  ;;  %v4686_v49 = vshll.u32 %v2239_v33, 8  ;;  %v2248_v24 = vshll.u32 %v4066_v61, %v2245_v57 }
 0x16c   :  { %v565_v30 = vsel %vm558_vm15, %v561_v16, %v564_v19  ;;  %v2210_v32 = vmul.f32 %v2209_v9, %v2207_v21  ;;  %v630_v48 = vshll.u32 %v629_v42, 30  ;;  %v2252_v50 = vshrl.u32 %v4068_v3, %v2246_v12 }
 0x16d   :  { %v566_v36 = vsel %vm555_vm14, nan, %v565_v30  ;;  %v2255_v10 = vshrl.u32 %v4069_v5, %v2246_v12  ;;  %v2244_v34 = vshrl.u32 %v2243_v4, 5  ;;  %v2251_v26 = vshll.u32 %v4067_v1, %v2245_v57 }
 0x16e   :  { %3585 = vst [vmem:[#allocation2 + $0x10] sm:$0xff] %v566_v36  ;;  %v2211_v15 = vxor.u32 2147483648, %v2210_v32  ;;  %v4693_v20 = vsub.s32 %v627_v58, %v630_v48  ;;  %v2250_v38 = vor.u32 %v2249_v22, %v2248_v24  ;;  %v2254_v8 = vshll.u32 %v4068_v3, %v2245_v57 }
 0x16f   :  { %v2257_v55 = vshll.u32 %v4069_v5, %v2245_v57  ;;  %v2258_v0 = vshrl.u32 %v4070_v7, %v2246_v12  ;;  %vm569_vm2 = vcmp.lt.s32.totalorder %v4547_v47, 0  ;;  %v2260_v43 = vshll.u32 %v4070_v7, %v2245_v57 }
 0x170   :  { %v2212_v40 = vsel %vm2129_vm10, %v2211_v15, %v2210_v32  ;;  %v633_v41 = vsub.s32 0, %v4693_v20  ;;  %v2261_v6 = vshrl.u32 %v4071_v14, %v2246_v12  ;;  %v2253_v45 = vor.u32 %v2252_v50, %v2251_v26 }
 0x171   :  { %v2215_v56 = vsel %vm4655_vm11, %v4471_v46, %v2212_v40  ;;  %v2256_v62 = vor.u32 %v2255_v10, %v2254_v8  ;;  %v2259_v51 = vor.u32 %v2258_v0, %v2257_v55  ;;  %v674_v63 = vand.u32 2139095040, %v4683_v13 }
 0x172   :  { %3935 = vcosq.f32 %v2215_v56  ;;  %v3660_v39 = vmin.u32 %v633_v41, %v4693_v20  ;;  %v2262_v44 = vor.u32 %v2261_v6, %v2260_v43  ;;  %v653_v2 = vsub.s32 4, %v629_v42 }
 0x173   :  { %3937 = vsinq.f32 %v2215_v56  ;;  %v2247_v59 = vshrl.u32 %v4066_v61, %v2246_v12  ;;  %vm2263_vm3 = vcmp.lt.s32.totalorder %v2244_v34, 1  ;;  %vm2264_vm4 = vcmp.lt.s32.totalorder %v2244_v34, 2 }
 0x174   :  { %v635_v58 = vclz %v3660_v39  ;;  %vm2265_vm5 = vcmp.lt.s32.totalorder %v2244_v34, 3  ;;  %vm2266_vm6 = vcmp.lt.s32.totalorder %v2244_v34, 4  ;;  %v2271_v4 = vsel %vm2263_vm3, %v2250_v38, %v2253_v45 }
 0x175   :  { %v2268_v27 = vsel %vm2266_vm6, %v2256_v62, 2102212464  ;;  %v2272_v60 = vsel %vm2266_vm6, %v2259_v51, 920167782  ;;  %v2275_v57 = vsel %vm2263_vm3, %v2253_v45, %v2256_v62  ;;  %v2267_v18 = vsel %vm2263_vm3, %v2247_v59, %v2250_v38 }
 0x176   :  { %v3661_v11 = vadd.s32 4294967294, %v635_v58  ;;  %v2273_v28 = vsel %vm2265_vm5, %v2256_v62, %v2272_v60  ;;  %v2276_v53 = vsel %vm2266_vm6, %v2262_v44, 1326507024  ;;  %v2269_v33 = vsel %vm2265_vm5, %v2253_v45, %v2268_v27  ;;  %v220_v58 = vpop.f32.mrf.mxu1 }
 0x177   :  { %v2274_v31 = vsel %vm2264_vm4, %v2271_v4, %v2273_v28  ;;  %v2277_v54 = vsel %vm2265_vm5, %v2259_v51, %v2276_v53  ;;  %v675_v19 = vshrl.u32 %v674_v63, 23  ;;  %v654_v22 = vsel %vm569_vm2, %v653_v2, %v629_v42 }
 0x178   :  { %vm3662_vm7 = vcmp.lt.s32.totalorder %v3661_v11, 0  ;;  %v2278_v12 = vsel %vm2264_vm4, %v2275_v57, %v2277_v54  ;;  %v4714_v21 = vmul.u32.u64.low %v4686_v49, %v2274_v31  ;;  %v4715_v9 = vmul.u32.u64.high %v4686_v49, %v2274_v31, %v4714_v21 }
 0x179   :  { %v638_v16 = vsel %vm3662_vm7, 0, %v3661_v11  ;;  %v4721_v30 = vmul.u32.u64.low %v4686_v49, %v2278_v12  ;;  %v4722_v32 = vmul.u32.u64.high %v4686_v49, %v2278_v12, %v4721_v30  ;;  %v2270_v24 = vsel %vm2264_vm4, %v2267_v18, %v2269_v33 }
 0x17a   :  { %v639_v48 = vsub.s32 32, %v638_v16  ;;  %v643_v36 = vsub.s32 4294967266, %v638_v16  ;;  %v3663_v50 = vadd.s32 4294967169, %v675_v19  ;;  %vm4727_vm8 = vcmp.le.f32.partialorder %v567_v35, 0.7853982 }
 0x17b   :  { %v640_v15 = vshll.u32 %v4693_v20, %v638_v16  ;;  %v671_v26 = vand.u32 2147483647, %v4683_v13  ;;  %v2289_v8 = vadd.s32 1, %v4715_v9  ;;  %v2221_v34 = vand.u32 3, %v4675_v52 }
 0x17c   :  { %v641_v42 = vshrl.u32 %v4679_v37, %v639_v48  ;;  %v644_v38 = vadd.s32 127, %v643_v36  ;;  %v681_v55 = vadd.s32 1, %v3663_v50  ;;  %v656_v0 = vsel %vm4727_vm8, 0, %v654_v22 }
 0x17d   :  { %v2286_v35 = vmul.u32 %v4686_v49, %v2270_v24  ;;  %vm2288_vm9 = vc.u32 %v4722_v32, %v4714_v21  ;;  %vm2219_vm10 = vweird.f32 %v4471_v46  ;;  %v660_v62 = vadd.s32 3, %v656_v0 }
 0x17e   :  { %v642_v40 = vor.u32 %v641_v42, %v640_v15  ;;  %v645_v20 = vshll.u32 %v644_v38, 23  ;;  %v2290_v41 = vsel %vm2288_vm9, %v2289_v8, %v4715_v9  ;;  %vm682_vm11 = vcmp.gt.s32.totalorder %v681_v55, 0 }
 0x17f   :  { %v3936_v37 = vpop.eup %3935  ;;  %v2291_v43 = vadd.s32 %v2290_v41, %v2286_v35  ;;  %v683_v6 = vsel %vm682_vm11, %v681_v55, 0  ;;  %v678_v49 = vand.u32 8388607, %v671_v26  ;;  %vm2226_vm12 = vcmp.eq.s32.totalorder %v2221_v34, 2 }
 0x180   :  { %v3938_v56 = vpop.eup %3937  ;;  %v2227_v52 = vxor.u32 2147483648, %v3936_v37  ;;  %v646_v45 = vor.u32 4788187, %v645_v20  ;;  %v685_v44 = vand.u32 31, %v683_v6  ;;  %vm2223_vm13 = vcmp.eq.s32.totalorder %v2221_v34, 0 }
 0x181   :  { %v2224_v51 = vxor.u32 2147483648, %v3938_v56  ;;  %v2292_v39 = vadd.s32 536870912, %v2291_v43  ;;  %v649_v59 = vcvt.s32.f32 %v642_v40  ;;  %vm2222_vm14 = vcmp.lt.s32.totalorder %v2221_v34, 2 }
 0x182   :  { %v2228_v63 = vsel %vm2226_vm12, %v2227_v52, %v3938_v56  ;;  %v647_v2 = vand.u32 2147483647, %v646_v45  ;;  %v686_v60 = vsub.s32 32, %v685_v44  ;;  %v4747_v18 = vand.u32 3, %v660_v62 }
 0x183   :  { %v2225_v27 = vsel %vm2223_vm13, %v3936_v37, %v2224_v51  ;;  %v4745_v4 = vshrl.u32 %v2292_v39, 30  ;;  %v679_v28 = vor.u32 8388608, %v678_v49  ;;  %v688_v31 = vshll.u32 %v4066_v61, %v685_v44 }
 0x184   :  { %v2229_v57 = vsel %vm2222_vm14, %v2225_v27, %v2228_v63  ;;  %v650_v11 = vmul.f32 %v649_v59, %v647_v2  ;;  %v4754_v54 = vadd.f32 %v220_v58, %v4168_v23  ;;  %v689_v12 = vshrl.u32 %v4067_v1, %v686_v60 }
 0x185   :  { %v2230_v53 = vsel %vm2219_vm10, nan, %v2229_v57  ;;  %v2294_v33 = vshll.u32 %v4745_v4, 30  ;;  %v692_v9 = vshrl.u32 %v4068_v3, %v686_v60  ;;  %v695_v16 = vshrl.u32 %v4069_v5, %v686_v60 }
 0x186   :  { %3601 = vst [vmem:[#allocation2 + $0x90] sm:$0xff] %v2230_v53  ;;  %v651_v19 = vxor.u32 2147483648, %v650_v11  ;;  %v691_v46 = vshll.u32 %v4067_v1, %v685_v44  ;;  %v694_v30 = vshll.u32 %v4068_v3, %v685_v44  ;;  %v698_v48 = vshrl.u32 %v4070_v7, %v686_v60 }
 0x187   :  { %v4759_v22 = vsub.s32 %v2291_v43, %v2294_v33  ;;  %v684_v24 = vshrl.u32 %v683_v6, 5  ;;  %v690_v50 = vor.u32 %v689_v12, %v688_v31  ;;  %v697_v15 = vshll.u32 %v4069_v5, %v685_v44 }
 0x188   :  { %v652_v36 = vsel %vm569_vm2, %v651_v19, %v650_v11  ;;  %v693_v8 = vor.u32 %v692_v9, %v691_v46  ;;  %v696_v55 = vor.u32 %v695_v16, %v694_v30  ;;  %v700_v0 = vshll.u32 %v4070_v7, %v685_v44 }
 0x189   :  { %v655_v42 = vsel %vm4727_vm8, %v4547_v47, %v652_v36  ;;  %v2297_v38 = vsub.s32 0, %v4759_v22  ;;  %v699_v34 = vor.u32 %v698_v48, %v697_v15  ;;  %v701_v35 = vshrl.u32 %v4071_v14, %v686_v60 }
 0x18a   :  { %3939 = vcosq.f32 %v655_v42  ;;  %v719_v20 = vshll.u32 %v679_v28, 8  ;;  %v2338_v41 = vand.u32 2139095040, %v4754_v54  ;;  %v687_v37 = vshrl.u32 %v4066_v61, %v686_v60 }
 0x18b   :  { %3941 = vsinq.f32 %v655_v42  ;;  %v3724_v40 = vmin.u32 %v2297_v38, %v4759_v22  ;;  %v702_v10 = vor.u32 %v701_v35, %v700_v0  ;;  %vm703_vm15 = vcmp.lt.s32.totalorder %v684_v24, 1 }
 0x18c   :  { %vm704_vm0 = vcmp.lt.s32.totalorder %v684_v24, 2  ;;  %vm705_vm1 = vcmp.lt.s32.totalorder %v684_v24, 3  ;;  %vm706_vm2 = vcmp.lt.s32.totalorder %v684_v24, 4  ;;  %v711_v6 = vsel %vm703_vm15, %v690_v50, %v693_v8 }
 0x18d   :  { %v2299_v43 = vclz %v3724_v40  ;;  %v708_v56 = vsel %vm706_vm2, %v696_v55, 2102212464  ;;  %v712_v52 = vsel %vm706_vm2, %v699_v34, 920167782  ;;  %v715_v45 = vsel %vm703_vm15, %v693_v8, %v696_v55 }
 0x18e   :  { %v716_v62 = vsel %vm706_vm2, %v702_v10, 1326507024  ;;  %v2317_v51 = vsub.s32 4, %v4745_v4  ;;  %v713_v39 = vsel %vm705_vm1, %v696_v55, %v712_v52  ;;  %v707_v63 = vsel %vm703_vm15, %v687_v37, %v690_v50 }
 0x18f   :  { %v3725_v49 = vadd.s32 4294967294, %v2299_v43  ;;  %v717_v44 = vsel %vm705_vm1, %v699_v34, %v716_v62  ;;  %v714_v2 = vsel %vm704_vm0, %v711_v6, %v713_v39  ;;  %v2339_v58 = vshrl.u32 %v2338_v41, 23 }
 0x190   :  { %v718_v59 = vsel %vm704_vm0, %v715_v45, %v717_v44  ;;  %v709_v27 = vsel %vm705_vm1, %v693_v8, %v708_v56  ;;  %v4785_v28 = vmul.u32.u64.low %v719_v20, %v714_v2  ;;  %v4786_v53 = vmul.u32.u64.high %v719_v20, %v714_v2, %v4785_v28 }
 0x191   :  { %vm3726_vm3 = vcmp.lt.s32.totalorder %v3725_v49, 0  ;;  %v4782_v60 = vmul.u32.u64.low %v719_v20, %v718_v59  ;;  %v4783_v57 = vmul.u32.u64.high %v719_v20, %v718_v59, %v4782_v60  ;;  %v3727_v33 = vadd.s32 4294967169, %v2339_v58 }
 0x192   :  { %v2302_v11 = vsel %vm3726_vm3, 0, %v3725_v49  ;;  %vm4791_vm4 = vcmp.le.f32.partialorder %v2231_v17, 0.7853982  ;;  %v2287_v19 = vadd.s32 %v4714_v21, %v4722_v32  ;;  %vm659_vm5 = vweird.f32 %v4547_v47 }
 0x193   :  { %v2303_v12 = vsub.s32 32, %v2302_v11  ;;  %v2307_v9 = vsub.s32 4294967266, %v2302_v11  ;;  %vm662_vm6 = vcmp.lt.s32.totalorder %v4747_v18, 2  ;;  %vm2233_vm7 = vcmp.lt.s32.totalorder %v4614_v25, 0 }
 0x194   :  { %v710_v16 = vsel %vm704_vm0, %v707_v63, %v709_v27  ;;  %v2345_v46 = vadd.s32 1, %v3727_v33  ;;  %v2304_v30 = vshll.u32 %v4759_v22, %v2302_v11  ;;  %vm728_vm8 = vc.u32 %v4783_v57, %v4785_v28  ;;  %v174_v22 = vpop.f32.mrf.mxu0 }
 0x195   :  { %v2305_v17 = vshrl.u32 %v2287_v19, %v2303_v12  ;;  %v2308_v48 = vadd.s32 127, %v2307_v9  ;;  %vm663_vm9 = vcmp.eq.s32.totalorder %v4747_v18, 0  ;;  %v2318_v21 = vsel %vm2233_vm7, %v2317_v51, %v4745_v4 }
 0x196   :  { %v729_v32 = vadd.s32 1, %v4786_v53  ;;  %vm2346_vm11 = vcmp.gt.s32.totalorder %v2345_v46, 0  ;;  %v726_v15 = vmul.u32 %v719_v20, %v710_v16  ;;  %v2335_v34 = vand.u32 2147483647, %v4754_v54 }
 0x197   :  { %v3940_v36 = vpop.eup %3939  ;;  %v2306_v24 = vor.u32 %v2305_v17, %v2304_v30  ;;  %v2309_v50 = vshll.u32 %v2308_v48, 23  ;;  %v2347_v42 = vsel %vm2346_vm11, %v2345_v46, 0  ;;  %vm666_vm10 = vcmp.eq.s32.totalorder %v4747_v18, 2 }
 0x198   :  { %v3942_v38 = vpop.eup %3941  ;;  %v667_v8 = vxor.u32 2147483648, %v3940_v36  ;;  %v730_v55 = vsel %vm728_vm8, %v729_v32, %v4786_v53  ;;  %v2349_v0 = vand.u32 31, %v2347_v42  ;;  %v2320_v37 = vsel %vm4791_vm4, 0, %v2318_v21 }
 0x199   :  { %v664_v35 = vxor.u32 2147483648, %v3942_v38  ;;  %v2310_v4 = vor.u32 4788187, %v2309_v50  ;;  %v731_v40 = vadd.s32 %v730_v55, %v726_v15  ;;  %v4815_v20 = vadd.f32 %v174_v22, %v4176_v29 }
 0x19a   :  { %v668_v41 = vsel %vm666_vm10, %v667_v8, %v3942_v38  ;;  %v2350_v10 = vsub.s32 32, %v2349_v0  ;;  %v2313_v56 = vcvt.s32.f32 %v2306_v24  ;;  %v2342_v62 = vand.u32 8388607, %v2335_v34 }
 0x19b   :  { %v665_v43 = vsel %vm663_vm9, %v3940_v36, %v664_v35  ;;  %v2311_v6 = vand.u32 2147483647, %v2310_v4  ;;  %v732_v52 = vadd.s32 536870912, %v731_v40  ;;  %v2348_v59 = vshrl.u32 %v2347_v42, 5 }
 0x19c   :  { %v669_v45 = vsel %vm662_vm6, %v665_v43, %v668_v41  ;;  %v2353_v49 = vshrl.u32 %v4067_v1, %v2350_v10  ;;  %v2356_v51 = vshrl.u32 %v4068_v3, %v2350_v10  ;;  %v2359_v2 = vshrl.u32 %v4069_v5, %v2350_v10 }
 0x19d   :  { %v670_v39 = vsel %vm659_vm5, nan, %v669_v45  ;;  %v2314_v44 = vmul.f32 %v2313_v56, %v2311_v6  ;;  %v733_v63 = vshrl.u32 %v732_v52, 30  ;;  %v2352_v58 = vshll.u32 %v4066_v61, %v2349_v0 }
 0x19e   :  { %3586 = vst [vmem:[#allocation2 + $0x18] sm:$0xff] %v670_v39  ;;  %v2358_v18 = vshll.u32 %v4068_v3, %v2349_v0  ;;  %v2362_v27 = vshrl.u32 %v4070_v7, %v2350_v10  ;;  %v2355_v53 = vshll.u32 %v4067_v1, %v2349_v0  ;;  %v2361_v33 = vshll.u32 %v4069_v5, %v2349_v0 }
 0x19f   :  { %v2315_v60 = vxor.u32 2147483648, %v2314_v44  ;;  %v734_v11 = vshll.u32 %v733_v63, 30  ;;  %v2354_v47 = vor.u32 %v2353_v49, %v2352_v58  ;;  %v2364_v12 = vshll.u32 %v4070_v7, %v2349_v0 }
 0x1a0   :  { %v2360_v19 = vor.u32 %v2359_v2, %v2358_v18  ;;  %v2365_v9 = vshrl.u32 %v4071_v14, %v2350_v10  ;;  %v2357_v30 = vor.u32 %v2356_v51, %v2355_v53  ;;  %v2363_v17 = vor.u32 %v2362_v27, %v2361_v33 }
 0x1a1   :  { %v2316_v16 = vsel %vm2233_vm7, %v2315_v60, %v2314_v44  ;;  %v4837_v46 = vsub.s32 %v731_v40, %v734_v11  ;;  %v2324_v21 = vadd.s32 3, %v2320_v37  ;;  %v2343_v32 = vor.u32 8388608, %v2342_v62 }
 0x1a2   :  { %v2319_v48 = vsel %vm4791_vm4, %v4614_v25, %v2316_v16  ;;  %v2366_v36 = vor.u32 %v2365_v9, %v2364_v12  ;;  %vm2370_vm12 = vcmp.lt.s32.totalorder %v2348_v59, 4  ;;  %v778_v50 = vand.u32 2139095040, %v4815_v20 }
 0x1a3   :  { %3943 = vcosq.f32 %v2319_v48  ;;  %v737_v24 = vsub.s32 0, %v4837_v46  ;;  %v2351_v15 = vshrl.u32 %v4066_v61, %v2350_v10  ;;  %vm2367_vm13 = vcmp.lt.s32.totalorder %v2348_v59, 1 }
 0x1a4   :  { %3945 = vsinq.f32 %v2319_v48  ;;  %v2372_v42 = vsel %vm2370_vm12, %v2360_v19, 2102212464  ;;  %vm2369_vm14 = vcmp.lt.s32.totalorder %v2348_v59, 3  ;;  %v2375_v38 = vsel %vm2367_vm13, %v2354_v47, %v2357_v30 }
 0x1a5   :  { %v3664_v22 = vmin.u32 %v737_v24, %v4837_v46  ;;  %v2376_v31 = vsel %vm2370_vm12, %v2363_v17, 920167782  ;;  %v757_v8 = vsub.s32 4, %v733_v63  ;;  %v2379_v0 = vsel %vm2367_vm13, %v2357_v30, %v2360_v19 }
 0x1a6   :  { %v2377_v55 = vsel %vm2369_vm14, %v2360_v19, %v2376_v31  ;;  %v2380_v35 = vsel %vm2370_vm12, %v2366_v36, 1326507024  ;;  %vm2368_vm15 = vcmp.lt.s32.totalorder %v2348_v59, 2  ;;  %v2371_v40 = vsel %vm2367_vm13, %v2351_v15, %v2354_v47 }
 0x1a7   :  { %v739_v4 = vclz %v3664_v22  ;;  %v2373_v41 = vsel %vm2369_vm14, %v2357_v30, %v2372_v42  ;;  %v2378_v37 = vsel %vm2368_vm15, %v2375_v38, %v2377_v55  ;;  %v2381_v43 = vsel %vm2369_vm14, %v2363_v17, %v2380_v35 }
 0x1a8   :  { %v2383_v6 = vshll.u32 %v2343_v32, 8  ;;  %v779_v56 = vshrl.u32 %v778_v50, 23  ;;  %vm673_vm0 = vcmp.lt.s32.totalorder %v4683_v13, 0  ;;  %v2382_v52 = vsel %vm2368_vm15, %v2379_v0, %v2381_v43 }
 0x1a9   :  { %v3665_v10 = vadd.s32 4294967294, %v739_v4  ;;  %v758_v39 = vsel %vm673_vm0, %v757_v8, %v733_v63  ;;  %v2374_v44 = vsel %vm2368_vm15, %v2371_v40, %v2373_v41  ;;  %v2325_v59 = vand.u32 3, %v2324_v21  ;;  %v222_v4 = vpop.f32.mrf.mxu1 }
 0x1aa   :  { %v4847_v45 = vmul.u32.u64.low %v2383_v6, %v2382_v52  ;;  %v4848_v62 = vmul.u32.u64.high %v2383_v6, %v2382_v52, %v4847_v45  ;;  %v4850_v49 = vmul.u32.u64.low %v2383_v6, %v2378_v37  ;;  %v4851_v51 = vmul.u32.u64.high %v2383_v6, %v2378_v37, %v4850_v49 }
 0x1ab   :  { %vm3666_vm1 = vcmp.lt.s32.totalorder %v3665_v10, 0  ;;  %v3667_v2 = vadd.s32 4294967169, %v779_v56  ;;  %vm4858_vm2 = vcmp.le.f32.partialorder %v671_v26, 0.7853982  ;;  %v775_v27 = vand.u32 2147483647, %v4815_v20 }
 0x1ac   :  { %v742_v18 = vsel %vm3666_vm1, 0, %v3665_v10  ;;  %v727_v60 = vadd.s32 %v4785_v28, %v4783_v57  ;;  %v760_v63 = vsel %vm4858_vm2, 0, %v758_v39  ;;  %v2390_v47 = vmul.u32 %v2383_v6, %v2374_v44 }
 0x1ad   :  { %v743_v11 = vsub.s32 32, %v742_v18  ;;  %v747_v53 = vsub.s32 4294967266, %v742_v18  ;;  %v785_v33 = vadd.s32 1, %v3667_v2  ;;  %vm2392_vm3 = vc.u32 %v4848_v62, %v4850_v49 }
 0x1ae   :  { %v2393_v26 = vadd.s32 1, %v4851_v51  ;;  %v744_v19 = vshll.u32 %v4837_v46, %v742_v18  ;;  %vm2330_vm5 = vcmp.eq.s32.totalorder %v2325_v59, 2  ;;  %v764_v24 = vadd.s32 3, %v760_v63 }
 0x1af   :  { %v745_v12 = vshrl.u32 %v727_v60, %v743_v11  ;;  %v748_v9 = vadd.s32 127, %v747_v53  ;;  %vm786_vm4 = vcmp.gt.s32.totalorder %v785_v33, 0  ;;  %v782_v50 = vand.u32 8388607, %v775_v27 }
 0x1b0   :  { %v3944_v16 = vpop.eup %3943  ;;  %v2394_v57 = vsel %vm2392_vm3, %v2393_v26, %v4851_v51  ;;  %v787_v28 = vsel %vm786_vm4, %v785_v33, 0  ;;  %vm2327_vm6 = vcmp.eq.s32.totalorder %v2325_v59, 0  ;;  %vm2323_vm7 = vweird.f32 %v4614_v25 }
 0x1b1   :  { %v3946_v30 = vpop.eup %3945  ;;  %v2331_v17 = vxor.u32 2147483648, %v3944_v16  ;;  %v746_v48 = vor.u32 %v745_v12, %v744_v19  ;;  %v749_v21 = vshll.u32 %v748_v9, 23  ;;  %v2395_v32 = vadd.s32 %v2394_v57, %v2390_v47 }
 0x1b2   :  { %v2328_v36 = vxor.u32 2147483648, %v3946_v30  ;;  %v789_v15 = vand.u32 31, %v787_v28  ;;  %vm2326_vm8 = vcmp.lt.s32.totalorder %v2325_v59, 2  ;;  %v4877_v41 = vand.u32 3, %v764_v24 }
 0x1b3   :  { %v2332_v46 = vsel %vm2330_vm5, %v2331_v17, %v3946_v30  ;;  %v750_v42 = vor.u32 4788187, %v749_v21  ;;  %v2396_v22 = vadd.s32 536870912, %v2395_v32  ;;  %v753_v0 = vcvt.s32.f32 %v746_v48 }
 0x1b4   :  { %v2329_v38 = vsel %vm2327_vm6, %v3944_v16, %v2328_v36  ;;  %v790_v31 = vsub.s32 32, %v789_v15  ;;  %v783_v37 = vor.u32 8388608, %v782_v50  ;;  %v788_v10 = vshrl.u32 %v787_v28, 5 }
 0x1b5   :  { %v2333_v8 = vsel %vm2326_vm8, %v2329_v38, %v2332_v46  ;;  %v751_v55 = vand.u32 2147483647, %v750_v42  ;;  %v4875_v35 = vshrl.u32 %v2396_v22, 30  ;;  %v4885_v51 = vadd.f32 %v222_v4, %v4176_v29 }
 0x1b6   :  { %v2334_v40 = vsel %vm2323_vm7, nan, %v2333_v8  ;;  %v793_v56 = vshrl.u32 %v4067_v1, %v790_v31  ;;  %v796_v25 = vshrl.u32 %v4068_v3, %v790_v31  ;;  %v799_v52 = vshrl.u32 %v4069_v5, %v790_v31 }
 0x1b7   :  { %3602 = vst [vmem:[#allocation2 + $0x98] sm:$0xff] %v2334_v40  ;;  %v754_v43 = vmul.f32 %v753_v0, %v751_v55  ;;  %v2398_v6 = vshll.u32 %v4875_v35, 30  ;;  %v802_v45 = vshrl.u32 %v4070_v7, %v790_v31  ;;  %v792_v2 = vshll.u32 %v4066_v61, %v789_v15 }
 0x1b8   :  { %v795_v59 = vshll.u32 %v4067_v1, %v789_v15  ;;  %v798_v18 = vshll.u32 %v4068_v3, %v789_v15  ;;  %v801_v60 = vshll.u32 %v4069_v5, %v789_v15  ;;  %v804_v11 = vshll.u32 %v4070_v7, %v789_v15 }
 0x1b9   :  { %v755_v39 = vxor.u32 2147483648, %v754_v43  ;;  %v4887_v44 = vsub.s32 %v2395_v32, %v2398_v6  ;;  %v805_v53 = vshrl.u32 %v4071_v14, %v790_v31  ;;  %v794_v47 = vor.u32 %v793_v56, %v792_v2 }
 0x1ba   :  { %v797_v26 = vor.u32 %v796_v25, %v795_v59  ;;  %vm2337_vm9 = vcmp.lt.s32.totalorder %v4754_v54, 0  ;;  %v800_v12 = vor.u32 %v799_v52, %v798_v18  ;;  %v803_v9 = vor.u32 %v802_v45, %v801_v60 }
 0x1bb   :  { %v756_v33 = vsel %vm673_vm0, %v755_v39, %v754_v43  ;;  %v2401_v63 = vsub.s32 0, %v4887_v44  ;;  %v806_v16 = vor.u32 %v805_v53, %v804_v11  ;;  %v823_v28 = vshll.u32 %v783_v37, 8 }
 0x1bc   :  { %v759_v19 = vsel %vm4858_vm2, %v4683_v13, %v756_v33  ;;  %v2442_v30 = vand.u32 2139095040, %v4885_v51  ;;  %v2421_v17 = vsub.s32 4, %v4875_v35  ;;  %v791_v48 = vshrl.u32 %v4066_v61, %v790_v31 }
 0x1bd   :  { %3947 = vcosq.f32 %v759_v19  ;;  %v3728_v57 = vmin.u32 %v2401_v63, %v4887_v44  ;;  %vm807_vm11 = vcmp.lt.s32.totalorder %v788_v10, 1  ;;  %vm809_vm10 = vcmp.lt.s32.totalorder %v788_v10, 3 }
 0x1be   :  { %3949 = vsinq.f32 %v759_v19  ;;  %vm810_vm12 = vcmp.lt.s32.totalorder %v788_v10, 4  ;;  %v815_v58 = vsel %vm807_vm11, %v794_v47, %v797_v26  ;;  %v819_v24 = vsel %vm807_vm11, %v797_v26, %v800_v12 }
 0x1bf   :  { %v2403_v21 = vclz %v3728_v57  ;;  %v812_v32 = vsel %vm810_vm12, %v800_v12, 2102212464  ;;  %v816_v36 = vsel %vm810_vm12, %v803_v9, 920167782  ;;  %v820_v50 = vsel %vm810_vm12, %v806_v16, 1326507024 }
 0x1c0   :  { %vm808_vm13 = vcmp.lt.s32.totalorder %v788_v10, 2  ;;  %v817_v46 = vsel %vm809_vm10, %v800_v12, %v816_v36  ;;  %v821_v42 = vsel %vm809_vm10, %v803_v9, %v820_v50  ;;  %v811_v22 = vsel %vm807_vm11, %v791_v48, %v794_v47  ;;  %v178_v10 = vpop.f32.mrf.mxu0 }
 0x1c1   :  { %v3729_v15 = vadd.s32 4294967294, %v2403_v21  ;;  %v818_v38 = vsel %vm808_vm13, %v815_v58, %v817_v46  ;;  %v822_v31 = vsel %vm808_vm13, %v819_v24, %v821_v42  ;;  %v2443_v8 = vshrl.u32 %v2442_v30, 23 }
 0x1c2   :  { %v813_v55 = vsel %vm809_vm10, %v797_v26, %v812_v32  ;;  %v4911_v0 = vmul.u32.u64.low %v823_v28, %v822_v31  ;;  %v4912_v4 = vmul.u32.u64.high %v823_v28, %v822_v31, %v4911_v0  ;;  %v2391_v56 = vadd.s32 %v4850_v49, %v4848_v62 }
 0x1c3   :  { %vm3730_vm14 = vcmp.lt.s32.totalorder %v3729_v15, 0  ;;  %v4914_v37 = vmul.u32.u64.low %v823_v28, %v818_v38  ;;  %v4915_v43 = vmul.u32.u64.high %v823_v28, %v818_v38, %v4914_v37  ;;  %v3731_v6 = vadd.s32 4294967169, %v2443_v8 }
 0x1c4   :  { %v2406_v40 = vsel %vm3730_vm14, 0, %v3729_v15  ;;  %v2422_v45 = vsel %vm2337_vm9, %v2421_v17, %v4875_v35  ;;  %vm766_vm15 = vcmp.lt.s32.totalorder %v4877_v41, 2  ;;  %vm4926_vm0 = vcmp.le.f32.partialorder %v2335_v34, 0.7853982 }
 0x1c5   :  { %v2407_v25 = vsub.s32 32, %v2406_v40  ;;  %v2411_v52 = vsub.s32 4294967266, %v2406_v40  ;;  %v814_v2 = vsel %vm808_vm13, %v811_v22, %v813_v55  ;;  %v2449_v59 = vadd.s32 1, %v3731_v6 }
 0x1c6   :  { %vm763_vm1 = vweird.f32 %v4683_v13  ;;  %v2408_v62 = vshll.u32 %v4887_v44, %v2406_v40  ;;  %vm832_vm2 = vc.u32 %v4912_v4, %v4914_v37  ;;  %v2424_v35 = vsel %vm4926_vm0, 0, %v2422_v45 }
 0x1c7   :  { %v2409_v49 = vshrl.u32 %v2391_v56, %v2407_v25  ;;  %v2412_v18 = vadd.s32 127, %v2411_v52  ;;  %v833_v34 = vadd.s32 1, %v4915_v43  ;;  %v2439_v60 = vand.u32 2147483647, %v4885_v51 }
 0x1c8   :  { %vm2450_vm3 = vcmp.gt.s32.totalorder %v2449_v59, 0  ;;  %v830_v33 = vmul.u32 %v823_v28, %v814_v2  ;;  %vm767_vm4 = vcmp.eq.s32.totalorder %v4877_v41, 0  ;;  %vm770_vm5 = vcmp.eq.s32.totalorder %v4877_v41, 2 }
 0x1c9   :  { %v2410_v11 = vor.u32 %v2409_v49, %v2408_v62  ;;  %v2413_v53 = vshll.u32 %v2412_v18, 23  ;;  %v2451_v63 = vsel %vm2450_vm3, %v2449_v59, 0  ;;  %v834_v44 = vsel %vm832_vm2, %v833_v34, %v4915_v43 }
 0x1ca   :  { %v3948_v47 = vpop.eup %3947  ;;  %v2453_v26 = vand.u32 31, %v2451_v63  ;;  %v835_v16 = vadd.s32 %v834_v44, %v830_v33  ;;  %v4943_v57 = vadd.f32 %v178_v10, %v4168_v23  ;;  %v4945_v17 = vadd.s32 3, %v2424_v35 }
 0x1cb   :  { %v3950_v19 = vpop.eup %3949  ;;  %v771_v12 = vxor.u32 2147483648, %v3948_v47  ;;  %v2414_v9 = vor.u32 4788187, %v2413_v53  ;;  %v2446_v28 = vand.u32 8388607, %v2439_v60  ;;  %v2417_v32 = vcvt.s32.f32 %v2410_v11 }
 0x1cc   :  { %v768_v30 = vxor.u32 2147483648, %v3950_v19  ;;  %v2454_v48 = vsub.s32 32, %v2453_v26  ;;  %v836_v36 = vadd.s32 536870912, %v835_v16  ;;  %v2456_v50 = vshll.u32 %v4066_v61, %v2453_v26 }
 0x1cd   :  { %v772_v21 = vsel %vm770_vm5, %v771_v12, %v3950_v19  ;;  %v2415_v58 = vand.u32 2147483647, %v2414_v9  ;;  %v2447_v55 = vor.u32 8388608, %v2446_v28  ;;  %v2452_v0 = vshrl.u32 %v2451_v63, 5 }
 0x1ce   :  { %v769_v24 = vsel %vm767_vm4, %v3948_v47, %v768_v30  ;;  %v2457_v15 = vshrl.u32 %v4067_v1, %v2454_v48  ;;  %v2460_v46 = vshrl.u32 %v4068_v3, %v2454_v48  ;;  %v4956_v38 = vshrl.u32 %v836_v36, 30  ;;  %v226_v36 = vpop.f32.mrf.mxu1 }
 0x1cf   :  { %v773_v42 = vsel %vm766_vm15, %v769_v24, %v772_v21  ;;  %v2418_v22 = vmul.f32 %v2417_v32, %v2415_v58  ;;  %v2463_v31 = vshrl.u32 %v4069_v5, %v2454_v48  ;;  %v2459_v40 = vshll.u32 %v4067_v1, %v2453_v26 }
 0x1d0   :  { %v774_v8 = vsel %vm763_vm1, nan, %v773_v42  ;;  %v838_v6 = vshll.u32 %v4956_v38, 30  ;;  %v2458_v56 = vor.u32 %v2457_v15, %v2456_v50  ;;  %v2462_v41 = vshll.u32 %v4068_v3, %v2453_v26 }
 0x1d1   :  { %3587 = vst [vmem:[#allocation2 + $0x20] sm:$0xff] %v774_v8  ;;  %v2419_v43 = vxor.u32 2147483648, %v2418_v22  ;;  %v2465_v25 = vshll.u32 %v4069_v5, %v2453_v26  ;;  %v2466_v52 = vshrl.u32 %v4070_v7, %v2454_v48  ;;  %v2468_v45 = vshll.u32 %v4070_v7, %v2453_v26 }
 0x1d2   :  { %v2469_v13 = vshrl.u32 %v4071_v14, %v2454_v48  ;;  %v4970_v59 = vsub.s32 %v835_v16, %v838_v6  ;;  %v2461_v62 = vor.u32 %v2460_v46, %v2459_v40  ;;  %v2464_v49 = vor.u32 %v2463_v31, %v2462_v41 }
 0x1d3   :  { %v2420_v2 = vsel %vm2337_vm9, %v2419_v43, %v2418_v22  ;;  %v2467_v35 = vor.u32 %v2466_v52, %v2465_v25  ;;  %v879_v10 = vand.u32 2147483647, %v4943_v57  ;;  %v2455_v53 = vshrl.u32 %v4066_v61, %v2454_v48 }
 0x1d4   :  { %v2423_v18 = vsel %vm4926_vm0, %v4754_v54, %v2420_v2  ;;  %v2470_v34 = vor.u32 %v2469_v13, %v2468_v45  ;;  %v841_v11 = vsub.s32 0, %v4970_v59  ;;  %v882_v33 = vand.u32 2139095040, %v4943_v57 }
 0x1d5   :  { %3951 = vcosq.f32 %v2423_v18  ;;  %vm777_vm6 = vcmp.lt.s32.totalorder %v4815_v20, 0  ;;  %vm2471_vm7 = vcmp.lt.s32.totalorder %v2452_v0, 1  ;;  %vm2473_vm8 = vcmp.lt.s32.totalorder %v2452_v0, 3 }
 0x1d6   :  { %3953 = vsinq.f32 %v2423_v18  ;;  %vm2474_vm9 = vcmp.lt.s32.totalorder %v2452_v0, 4  ;;  %v3668_v39 = vmin.u32 %v841_v11, %v4970_v59  ;;  %v2479_v47 = vsel %vm2471_vm7, %v2458_v56, %v2461_v62 }
 0x1d7   :  { %v2476_v63 = vsel %vm2474_vm9, %v2464_v49, 2102212464  ;;  %v2480_v44 = vsel %vm2474_vm9, %v2467_v35, 920167782  ;;  %v2483_v19 = vsel %vm2471_vm7, %v2461_v62, %v2464_v49  ;;  %v2484_v12 = vsel %vm2474_vm9, %v2470_v34, 1326507024 }
 0x1d8   :  { %v2481_v26 = vsel %vm2473_vm8, %v2464_v49, %v2480_v44  ;;  %v2487_v9 = vshll.u32 %v2447_v55, 8  ;;  %v843_v16 = vclz %v3668_v39  ;;  %v861_v30 = vsub.s32 4, %v4956_v38 }
 0x1d9   :  { %vm2472_vm11 = vcmp.lt.s32.totalorder %v2452_v0, 2  ;;  %v2475_v28 = vsel %vm2471_vm7, %v2455_v53, %v2458_v56  ;;  %v2477_v48 = vsel %vm2473_vm8, %v2461_v62, %v2476_v63  ;;  %v2485_v58 = vsel %vm2473_vm8, %v2467_v35, %v2484_v12 }
 0x1da   :  { %v2482_v21 = vsel %vm2472_vm11, %v2479_v47, %v2481_v26  ;;  %v883_v32 = vshrl.u32 %v882_v33, 23  ;;  %v3669_v24 = vadd.s32 4294967294, %v843_v16  ;;  %v2486_v50 = vsel %vm2472_vm11, %v2483_v19, %v2485_v58 }
 0x1db   :  { %v4985_v15 = vmul.u32.u64.low %v2487_v9, %v2482_v21  ;;  %v4986_v46 = vmul.u32.u64.high %v2487_v9, %v2482_v21, %v4985_v15  ;;  %vm4990_vm10 = vcmp.le.f32.partialorder %v775_v27, 0.7853982  ;;  %v2429_v55 = vand.u32 3, %v4945_v17 }
 0x1dc   :  { %v4994_v22 = vmul.u32.u64.low %v2487_v9, %v2486_v50  ;;  %v4995_v31 = vmul.u32.u64.high %v2487_v9, %v2486_v50, %v4994_v22  ;;  %v3671_v8 = vadd.s32 4294967169, %v883_v32  ;;  %vm3670_vm12 = vcmp.lt.s32.totalorder %v3669_v24, 0 }
 0x1dd   :  { %v2478_v0 = vsel %vm2472_vm11, %v2475_v28, %v2477_v48  ;;  %v4999_v40 = vadd.f32 %v226_v36, %v4168_v23  ;;  %v831_v43 = vadd.s32 %v4914_v37, %v4912_v4  ;;  %v846_v6 = vsel %vm3670_vm12, 0, %v3669_v24 }
 0x1de   :  { %v5005_v27 = vand.u32 8388607, %v879_v10  ;;  %v889_v56 = vadd.s32 1, %v3671_v8  ;;  %vm2427_vm13 = vweird.f32 %v4754_v54  ;;  %v847_v41 = vsub.s32 32, %v846_v6 }
 0x1df   :  { %v851_v25 = vsub.s32 4294967266, %v846_v6  ;;  %v862_v17 = vsel %vm777_vm6, %v861_v30, %v4956_v38  ;;  %v2497_v52 = vadd.s32 1, %v4986_v46  ;;  %v848_v45 = vshll.u32 %v4970_v59, %v846_v6 }
 0x1e0   :  { %v2494_v13 = vmul.u32 %v2487_v9, %v2478_v0  ;;  %vm2496_vm14 = vc.u32 %v4995_v31, %v4985_v15  ;;  %vm890_vm15 = vcmp.gt.s32.totalorder %v889_v56, 0  ;;  %v849_v4 = vshrl.u32 %v831_v43, %v847_v41 }
 0x1e1   :  { %v852_v37 = vadd.s32 127, %v851_v25  ;;  %v2498_v2 = vsel %vm2496_vm14, %v2497_v52, %v4986_v46  ;;  %v891_v62 = vsel %vm890_vm15, %v889_v56, 0  ;;  %vm2430_vm0 = vcmp.lt.s32.totalorder %v2429_v55, 2 }
 0x1e2   :  { %v3952_v49 = vpop.eup %3951  ;;  %v864_v18 = vsel %vm4990_vm10, 0, %v862_v17  ;;  %v2499_v35 = vadd.s32 %v2498_v2, %v2494_v13  ;;  %v893_v38 = vand.u32 31, %v891_v62  ;;  %vm2431_vm1 = vcmp.eq.s32.totalorder %v2429_v55, 0 }
 0x1e3   :  { %v3954_v34 = vpop.eup %3953  ;;  %v2435_v11 = vxor.u32 2147483648, %v3952_v49  ;;  %v850_v59 = vor.u32 %v849_v4, %v848_v45  ;;  %v853_v53 = vshll.u32 %v852_v37, 23  ;;  %vm2434_vm2 = vcmp.eq.s32.totalorder %v2429_v55, 2 }
 0x1e4   :  { %v2432_v33 = vxor.u32 2147483648, %v3954_v34  ;;  %v2500_v39 = vadd.s32 536870912, %v2499_v35  ;;  %v894_v63 = vsub.s32 32, %v893_v38  ;;  %v5017_v26 = vadd.s32 3, %v864_v18 }
 0x1e5   :  { %v2436_v47 = vsel %vm2434_vm2, %v2435_v11, %v3954_v34  ;;  %v854_v44 = vor.u32 4788187, %v853_v53  ;;  %v887_v19 = vor.u32 8388608, %v5005_v27  ;;  %v2543_v16 = vand.u32 2147483647, %v4999_v40 }
 0x1e6   :  { %v2433_v12 = vsel %vm2431_vm1, %v3952_v49, %v2432_v33  ;;  %v2501_v9 = vshrl.u32 %v2500_v39, 30  ;;  %v2546_v30 = vand.u32 2139095040, %v4999_v40  ;;  %v857_v21 = vcvt.s32.f32 %v850_v59 }
 0x1e7   :  { %v2437_v28 = vsel %vm2430_vm0, %v2433_v12, %v2436_v47  ;;  %v855_v48 = vand.u32 2147483647, %v854_v44  ;;  %v897_v58 = vshrl.u32 %v4067_v1, %v894_v63  ;;  %v5027_v36 = vadd.s32 %v4985_v15, %v4995_v31 }
 0x1e8   :  { %v2438_v32 = vsel %vm2427_vm13, nan, %v2437_v28  ;;  %v2502_v24 = vshll.u32 %v2501_v9, 30  ;;  %v900_v50 = vshrl.u32 %v4068_v3, %v894_v63  ;;  %v892_v22 = vshrl.u32 %v891_v62, 5 }
 0x1e9   :  { %3603 = vst [vmem:[#allocation2 + $0xa0] sm:$0xff] %v2438_v32  ;;  %v858_v46 = vmul.f32 %v857_v21, %v855_v48  ;;  %v896_v8 = vshll.u32 %v4066_v61, %v893_v38  ;;  %v903_v55 = vshrl.u32 %v4069_v5, %v894_v63  ;;  %v899_v43 = vshll.u32 %v4067_v1, %v893_v38 }
 0x1ea   :  { %v5032_v0 = vsub.s32 %v2499_v35, %v2502_v24  ;;  %v902_v54 = vshll.u32 %v4068_v3, %v893_v38  ;;  %v906_v6 = vshrl.u32 %v4070_v7, %v894_v63  ;;  %v905_v27 = vshll.u32 %v4069_v5, %v893_v38 }
 0x1eb   :  { %v859_v15 = vxor.u32 2147483648, %v858_v46  ;;  %v898_v31 = vor.u32 %v897_v58, %v896_v8  ;;  %v909_v56 = vshrl.u32 %v4071_v14, %v894_v63  ;;  %vm2441_vm3 = vcmp.lt.s32.totalorder %v4885_v51, 0 }
 0x1ec   :  { %v2505_v41 = vsub.s32 0, %v5032_v0  ;;  %v901_v25 = vor.u32 %v900_v50, %v899_v43  ;;  %v904_v17 = vor.u32 %v903_v55, %v902_v54  ;;  %v908_v52 = vshll.u32 %v4070_v7, %v893_v38 }
 0x1ed   :  { %v860_v45 = vsel %vm777_vm6, %v859_v15, %v858_v46  ;;  %v907_v13 = vor.u32 %v906_v6, %v905_v27  ;;  %v927_v4 = vshll.u32 %v887_v19, 8  ;;  %v2547_v37 = vshrl.u32 %v2546_v30, 23 }
 0x1ee   :  { %v863_v2 = vsel %vm4990_vm10, %v4815_v20, %v860_v45  ;;  %v3732_v62 = vmin.u32 %v2505_v41, %v5032_v0  ;;  %v895_v49 = vshrl.u32 %v4066_v61, %v894_v63  ;;  %v910_v18 = vor.u32 %v909_v56, %v908_v52 }
 0x1ef   :  { %3955 = vcosq.f32 %v863_v2  ;;  %v2525_v35 = vsub.s32 4, %v2501_v9  ;;  %vm911_vm4 = vcmp.lt.s32.totalorder %v892_v22, 1  ;;  %vm914_vm5 = vcmp.lt.s32.totalorder %v892_v22, 4 }
 0x1f0   :  { %3957 = vsinq.f32 %v863_v2  ;;  %v2507_v38 = vclz %v3732_v62  ;;  %v916_v34 = vsel %vm914_vm5, %v904_v17, 2102212464  ;;  %v919_v11 = vsel %vm911_vm4, %v898_v31, %v901_v25 }
 0x1f1   :  { %vm912_vm6 = vcmp.lt.s32.totalorder %v892_v22, 2  ;;  %vm913_vm7 = vcmp.lt.s32.totalorder %v892_v22, 3  ;;  %v920_v59 = vsel %vm914_vm5, %v907_v13, 920167782  ;;  %v923_v53 = vsel %vm911_vm4, %v901_v25, %v904_v17 }
 0x1f2   :  { %v3733_v33 = vadd.s32 4294967294, %v2507_v38  ;;  %v915_v42 = vsel %vm911_vm4, %v895_v49, %v898_v31  ;;  %v921_v39 = vsel %vm913_vm7, %v904_v17, %v920_v59  ;;  %v924_v47 = vsel %vm914_vm5, %v910_v18, 1326507024 }
 0x1f3   :  { %v917_v44 = vsel %vm913_vm7, %v901_v25, %v916_v34  ;;  %v922_v63 = vsel %vm912_vm6, %v919_v11, %v921_v39  ;;  %v925_v19 = vsel %vm913_vm7, %v907_v13, %v924_v47  ;;  %v3735_v12 = vadd.s32 4294967169, %v2547_v37 }
 0x1f4   :  { %vm3734_vm8 = vcmp.lt.s32.totalorder %v3733_v33, 0  ;;  %v926_v30 = vsel %vm912_vm6, %v923_v53, %v925_v19  ;;  %v5051_v28 = vmul.u32.u64.low %v927_v4, %v922_v63  ;;  %v5052_v48 = vmul.u32.u64.high %v927_v4, %v922_v63, %v5051_v28 }
 0x1f5   :  { %v2510_v21 = vsel %vm3734_vm8, 0, %v3733_v33  ;;  %v2526_v58 = vsel %vm2441_vm3, %v2525_v35, %v2501_v9  ;;  %v5057_v32 = vmul.u32.u64.low %v927_v4, %v926_v30  ;;  %v5058_v24 = vmul.u32.u64.high %v927_v4, %v926_v30, %v5057_v32 }
 0x1f6   :  { %v2511_v50 = vsub.s32 32, %v2510_v21  ;;  %v2515_v46 = vsub.s32 4294967266, %v2510_v21  ;;  %v918_v8 = vsel %vm912_vm6, %v915_v42, %v917_v44  ;;  %v2553_v55 = vadd.s32 1, %v3735_v12 }
 0x1f7   :  { %v869_v43 = vand.u32 3, %v5017_v26  ;;  %vm5064_vm9 = vcmp.le.f32.partialorder %v2439_v60, 0.7853982  ;;  %v2512_v6 = vshll.u32 %v5032_v0, %v2510_v21  ;;  %v937_v31 = vadd.s32 1, %v5052_v48 }
 0x1f8   :  { %v2513_v9 = vshrl.u32 %v5027_v36, %v2511_v50  ;;  %v2516_v15 = vadd.s32 127, %v2515_v46  ;;  %vm2554_vm11 = vcmp.gt.s32.totalorder %v2553_v55, 0  ;;  %v2528_v22 = vsel %vm5064_vm9, 0, %v2526_v58  ;;  %v180_v58 = vpop.f32.mrf.mxu0 }
 0x1f9   :  { %v934_v27 = vmul.u32 %v927_v4, %v918_v8  ;;  %vm936_vm10 = vc.u32 %v5058_v24, %v5051_v28  ;;  %v2555_v26 = vsel %vm2554_vm11, %v2553_v55, 0  ;;  %v2550_v0 = vand.u32 8388607, %v2543_v16 }
 0x1fa   :  { %v2514_v60 = vor.u32 %v2513_v9, %v2512_v6  ;;  %v2517_v56 = vshll.u32 %v2516_v15, 23  ;;  %v938_v41 = vsel %vm936_vm10, %v937_v31, %v5052_v48  ;;  %vm867_vm12 = vweird.f32 %v4815_v20 }
 0x1fb   :  { %v939_v36 = vadd.s32 %v938_v41, %v934_v27  ;;  %v2557_v25 = vand.u32 31, %v2555_v26  ;;  %vm870_vm13 = vcmp.lt.s32.totalorder %v869_v43, 2  ;;  %vm871_vm14 = vcmp.eq.s32.totalorder %v869_v43, 0 }
 0x1fc   :  { %v3956_v17 = vpop.eup %3955  ;;  %vm874_vm15 = vcmp.eq.s32.totalorder %v869_v43, 2  ;;  %v2518_v52 = vor.u32 4788187, %v2517_v56  ;;  %v5079_v4 = vadd.s32 3, %v2528_v22  ;;  %v2521_v18 = vcvt.s32.f32 %v2514_v60 }
 0x1fd   :  { %v3958_v45 = vpop.eup %3957  ;;  %v875_v13 = vxor.u32 2147483648, %v3956_v17  ;;  %v940_v37 = vadd.s32 536870912, %v939_v36  ;;  %v2558_v2 = vsub.s32 32, %v2557_v25  ;;  %v2551_v35 = vor.u32 8388608, %v2550_v0 }
 0x1fe   :  { %v872_v62 = vxor.u32 2147483648, %v3958_v45  ;;  %v2519_v49 = vand.u32 2147483647, %v2518_v52  ;;  %v2560_v11 = vshll.u32 %v4066_v61, %v2557_v25  ;;  %v2556_v63 = vshrl.u32 %v2555_v26, 5 }
 0x1ff   :  { %v876_v38 = vsel %vm874_vm15, %v875_v13, %v3958_v45  ;;  %v941_v34 = vshrl.u32 %v940_v37, 30  ;;  %v2561_v59 = vshrl.u32 %v4067_v1, %v2558_v2  ;;  %v2564_v42 = vshrl.u32 %v4068_v3, %v2558_v2 }
 0x200   :  { %v873_v53 = vsel %vm871_vm14, %v3956_v17, %v872_v62  ;;  %v2522_v33 = vmul.f32 %v2521_v18, %v2519_v49  ;;  %v2567_v39 = vshrl.u32 %v4069_v5, %v2558_v2  ;;  %v2563_v19 = vshll.u32 %v4067_v1, %v2557_v25 }
 0x201   :  { %v877_v47 = vsel %vm870_vm13, %v873_v53, %v876_v38  ;;  %v942_v44 = vshll.u32 %v941_v34, 30  ;;  %vm881_vm0 = vcmp.lt.s32.totalorder %v4943_v57, 0  ;;  %v2562_v48 = vor.u32 %v2561_v59, %v2560_v11  ;;  %v228_v38 = vpop.f32.mrf.mxu1 }
 0x202   :  { %v878_v12 = vsel %vm867_vm12, nan, %v877_v47  ;;  %v2523_v30 = vxor.u32 2147483648, %v2522_v33  ;;  %v2566_v21 = vshll.u32 %v4068_v3, %v2557_v25  ;;  %v2565_v50 = vor.u32 %v2564_v42, %v2563_v19 }
 0x203   :  { %3588 = vst [vmem:[#allocation2 + $0x28] sm:$0xff] %v878_v12  ;;  %v5092_v32 = vsub.s32 %v939_v36, %v942_v44  ;;  %v2569_v46 = vshll.u32 %v4069_v5, %v2557_v25  ;;  %v2570_v8 = vshrl.u32 %v4070_v7, %v2558_v2  ;;  %v2572_v43 = vshll.u32 %v4070_v7, %v2557_v25 }
 0x204   :  { %v2524_v55 = vsel %vm2441_vm3, %v2523_v30, %v2522_v33  ;;  %v2568_v20 = vor.u32 %v2567_v39, %v2566_v21  ;;  %v2573_v6 = vshrl.u32 %v4071_v14, %v2558_v2  ;;  %v5105_v22 = vadd.f32 %v180_v58, %v4176_v29 }
 0x205   :  { %v2527_v9 = vsel %vm5064_vm9, %v4885_v51, %v2524_v55  ;;  %v945_v15 = vsub.s32 0, %v5092_v32  ;;  %v2571_v31 = vor.u32 %v2570_v8, %v2569_v46  ;;  %v2559_v27 = vshrl.u32 %v4066_v61, %v2558_v2 }
 0x206   :  { %3959 = vcosq.f32 %v2527_v9  ;;  %v2574_v26 = vor.u32 %v2573_v6, %v2572_v43  ;;  %vm2575_vm1 = vcmp.lt.s32.totalorder %v2556_v63, 1  ;;  %v965_v56 = vsub.s32 4, %v941_v34 }
 0x207   :  { %3961 = vsinq.f32 %v2527_v9  ;;  %v3672_v60 = vmin.u32 %v945_v15, %v5092_v32  ;;  %vm2578_vm2 = vcmp.lt.s32.totalorder %v2556_v63, 4  ;;  %v2583_v0 = vsel %vm2575_vm1, %v2562_v48, %v2565_v50 }
 0x208   :  { %v2580_v41 = vsel %vm2578_vm2, %v2568_v20, 2102212464  ;;  %v2584_v54 = vsel %vm2578_vm2, %v2571_v31, 920167782  ;;  %v2591_v36 = vshll.u32 %v2551_v35, 8  ;;  %vm2577_vm3 = vcmp.lt.s32.totalorder %v2556_v63, 3 }
 0x209   :  { %v947_v25 = vclz %v3672_v60  ;;  %v2579_v17 = vsel %vm2575_vm1, %v2559_v27, %v2562_v48  ;;  %v2587_v52 = vsel %vm2575_vm1, %v2565_v50, %v2568_v20  ;;  %vm2576_vm4 = vcmp.lt.s32.totalorder %v2556_v63, 2 }
 0x20a   :  { %v2581_v45 = vsel %vm2577_vm3, %v2565_v50, %v2580_v41  ;;  %v2585_v13 = vsel %vm2577_vm3, %v2568_v20, %v2584_v54  ;;  %v2588_v37 = vsel %vm2578_vm2, %v2574_v26, 1326507024  ;;  %v966_v62 = vsel %vm881_vm0, %v965_v56, %v941_v34 }
 0x20b   :  { %v3673_v2 = vadd.s32 4294967294, %v947_v25  ;;  %v2586_v49 = vsel %vm2576_vm4, %v2583_v0, %v2585_v13  ;;  %v2589_v18 = vsel %vm2577_vm3, %v2571_v31, %v2588_v37  ;;  %v2582_v11 = vsel %vm2576_vm4, %v2579_v17, %v2581_v45 }
 0x20c   :  { %v2590_v59 = vsel %vm2576_vm4, %v2587_v52, %v2589_v18  ;;  %v5111_v53 = vmul.u32.u64.low %v2591_v36, %v2586_v49  ;;  %v5112_v33 = vmul.u32.u64.high %v2591_v36, %v2586_v49, %v5111_v53  ;;  %v986_v39 = vand.u32 2139095040, %v5105_v22 }
 0x20d   :  { %vm3674_vm5 = vcmp.lt.s32.totalorder %v3673_v2, 0  ;;  %v5115_v35 = vmul.u32.u64.low %v2591_v36, %v2590_v59  ;;  %v5116_v42 = vmul.u32.u64.high %v2591_v36, %v2590_v59, %v5115_v35  ;;  %v2533_v47 = vand.u32 3, %v5079_v4 }
 0x20e   :  { %vm5122_vm6 = vcmp.le.f32.partialorder %v879_v10, 0.7853982  ;;  %v950_v44 = vsel %vm3674_vm5, 0, %v3673_v2  ;;  %v5127_v63 = vadd.f32 %v228_v38, %v4176_v29  ;;  %v935_v19 = vadd.s32 %v5051_v28, %v5058_v24 }
 0x20f   :  { %v951_v12 = vsub.s32 32, %v950_v44  ;;  %v955_v30 = vsub.s32 4294967266, %v950_v44  ;;  %v987_v48 = vshrl.u32 %v986_v39, 23  ;;  %v968_v21 = vsel %vm5122_vm6, 0, %v966_v62 }
 0x210   :  { %v2598_v4 = vmul.u32 %v2591_v36, %v2582_v11  ;;  %v2601_v58 = vadd.s32 1, %v5112_v33  ;;  %v983_v10 = vand.u32 2147483647, %v5105_v22  ;;  %v952_v50 = vshll.u32 %v5092_v32, %v950_v44 }
 0x211   :  { %v953_v46 = vshrl.u32 %v935_v19, %v951_v12  ;;  %v956_v8 = vadd.s32 127, %v955_v30  ;;  %vm2600_vm7 = vc.u32 %v5116_v42, %v5111_v53  ;;  %vm2534_vm8 = vcmp.lt.s32.totalorder %v2533_v47, 2 }
 0x212   :  { %v2602_v28 = vsel %vm2600_vm7, %v2601_v58, %v5112_v33  ;;  %v3675_v24 = vadd.s32 4294967169, %v987_v48  ;;  %v2650_v55 = vand.u32 2139095040, %v5127_v63  ;;  %vm2535_vm9 = vcmp.eq.s32.totalorder %v2533_v47, 0 }
 0x213   :  { %v3960_v20 = vpop.eup %3959  ;;  %v954_v43 = vor.u32 %v953_v46, %v952_v50  ;;  %v957_v6 = vshll.u32 %v956_v8, 23  ;;  %v2603_v9 = vadd.s32 %v2602_v28, %v2598_v4  ;;  %vm2538_vm11 = vcmp.eq.s32.totalorder %v2533_v47, 2 }
 0x214   :  { %v3962_v15 = vpop.eup %3961  ;;  %v2539_v31 = vxor.u32 2147483648, %v3960_v20  ;;  %v972_v32 = vadd.s32 3, %v968_v21  ;;  %v993_v27 = vadd.s32 1, %v3675_v24  ;;  %v990_v41 = vand.u32 8388607, %v983_v10 }
 0x215   :  { %v2536_v26 = vxor.u32 2147483648, %v3962_v15  ;;  %v958_v60 = vor.u32 4788187, %v957_v6  ;;  %v2604_v56 = vadd.s32 536870912, %v2603_v9  ;;  %v961_v54 = vcvt.s32.f32 %v954_v43 }
 0x216   :  { %v2540_v0 = vsel %vm2538_vm11, %v2539_v31, %v3962_v15  ;;  %vm994_vm10 = vcmp.gt.s32.totalorder %v993_v27, 0  ;;  %v2651_v36 = vshrl.u32 %v2650_v55, 23  ;;  %vm2531_vm12 = vweird.f32 %v4885_v51 }
 0x217   :  { %v2537_v25 = vsel %vm2535_vm9, %v3960_v20, %v2536_v26  ;;  %v959_v17 = vand.u32 2147483647, %v958_v60  ;;  %v2605_v52 = vshrl.u32 %v2604_v56, 30  ;;  %v995_v45 = vsel %vm994_vm10, %v993_v27, 0 }
 0x218   :  { %v2541_v13 = vsel %vm2534_vm8, %v2537_v25, %v2540_v0  ;;  %v997_v37 = vand.u32 31, %v995_v45  ;;  %v5145_v49 = vand.u32 3, %v972_v32  ;;  %vm2545_vm13 = vcmp.lt.s32.totalorder %v4999_v40, 0 }
 0x219   :  { %v2542_v2 = vsel %vm2531_vm12, nan, %v2541_v13  ;;  %v962_v62 = vmul.f32 %v961_v54, %v959_v17  ;;  %v2606_v18 = vshll.u32 %v2605_v52, 30  ;;  %v991_v38 = vor.u32 8388608, %v990_v41 }
 0x21a   :  { %3604 = vst [vmem:[#allocation2 + $0xa8] sm:$0xff] %v2542_v2  ;;  %v998_v11 = vsub.s32 32, %v997_v37  ;;  %v2647_v59 = vand.u32 2147483647, %v5127_v63  ;;  %v3739_v33 = vadd.s32 4294967169, %v2651_v36  ;;  %v2629_v51 = vsub.s32 4, %v2605_v52 }
 0x21b   :  { %v963_v35 = vxor.u32 2147483648, %v962_v62  ;;  %v5149_v39 = vsub.s32 %v2603_v9, %v2606_v18  ;;  %v996_v47 = vshrl.u32 %v995_v45, 5  ;;  %v1000_v44 = vshll.u32 %v4066_v61, %v997_v37 }
 0x21c   :  { %v1001_v19 = vshrl.u32 %v4067_v1, %v998_v11  ;;  %v1003_v12 = vshll.u32 %v4067_v1, %v997_v37  ;;  %v1004_v30 = vshrl.u32 %v4068_v3, %v998_v11  ;;  %vm5159_vm14 = vcmp.le.f32.partialorder %v2543_v16, 0.7853982 }
 0x21d   :  { %v964_v48 = vsel %vm881_vm0, %v963_v35, %v962_v62  ;;  %v2609_v4 = vsub.s32 0, %v5149_v39  ;;  %v1006_v58 = vshll.u32 %v4068_v3, %v997_v37  ;;  %v1007_v50 = vshrl.u32 %v4069_v5, %v998_v11 }
 0x21e   :  { %v967_v46 = vsel %vm5122_vm6, %v4943_v57, %v964_v48  ;;  %v1002_v8 = vor.u32 %v1001_v19, %v1000_v44  ;;  %v1009_v28 = vshll.u32 %v4069_v5, %v997_v37  ;;  %v1010_v24 = vshrl.u32 %v4070_v7, %v998_v11 }
 0x21f   :  { %3963 = vcosq.f32 %v967_v46  ;;  %v3736_v16 = vmin.u32 %v2609_v4, %v5149_v39  ;;  %v1005_v55 = vor.u32 %v1004_v30, %v1003_v12  ;;  %v1008_v20 = vor.u32 %v1007_v50, %v1006_v58 }
 0x220   :  { %3965 = vsinq.f32 %v967_v46  ;;  %v1011_v43 = vor.u32 %v1010_v24, %v1009_v28  ;;  %v1012_v6 = vshll.u32 %v4070_v7, %v997_v37  ;;  %v1013_v9 = vshrl.u32 %v4071_v14, %v998_v11 }
 0x221   :  { %v2599_v34 = vadd.s32 %v5111_v53, %v5116_v42  ;;  %v2611_v15 = vclz %v3736_v16  ;;  %v1031_v31 = vshll.u32 %v991_v38, 8  ;;  %v2657_v32 = vadd.s32 1, %v3739_v33 }
 0x222   :  { %v2630_v27 = vsel %vm2545_vm13, %v2629_v51, %v2605_v52  ;;  %v999_v26 = vshrl.u32 %v4066_v61, %v998_v11  ;;  %v1014_v60 = vor.u32 %v1013_v9, %v1012_v6  ;;  %vm1015_vm15 = vcmp.lt.s32.totalorder %v996_v47, 1 }
 0x223   :  { %v3737_v56 = vadd.s32 4294967294, %v2611_v15  ;;  %vm1017_vm0 = vcmp.lt.s32.totalorder %v996_v47, 3  ;;  %vm1018_vm1 = vcmp.lt.s32.totalorder %v996_v47, 4  ;;  %v1023_v41 = vsel %vm1015_vm15, %v1002_v8, %v1005_v55 }
 0x224   :  { %v1020_v0 = vsel %vm1018_vm1, %v1008_v20, 2102212464  ;;  %v1024_v54 = vsel %vm1018_vm1, %v1011_v43, 920167782  ;;  %v1027_v36 = vsel %vm1015_vm15, %v1005_v55, %v1008_v20  ;;  %v1028_v53 = vsel %vm1018_vm1, %v1014_v60, 1326507024 }
 0x225   :  { %vm3738_vm2 = vcmp.lt.s32.totalorder %v3737_v56, 0  ;;  %vm1016_vm3 = vcmp.lt.s32.totalorder %v996_v47, 2  ;;  %v1025_v42 = vsel %vm1017_vm0, %v1008_v20, %v1024_v54  ;;  %v1029_v25 = vsel %vm1017_vm0, %v1011_v43, %v1028_v53 }
 0x226   :  { %v2614_v17 = vsel %vm3738_vm2, 0, %v3737_v56  ;;  %v2632_v52 = vsel %vm5159_vm14, 0, %v2630_v27  ;;  %v1026_v45 = vsel %vm1016_vm3, %v1023_v41, %v1025_v42  ;;  %v1030_v13 = vsel %vm1016_vm3, %v1027_v36, %v1029_v25 }
 0x227   :  { %v2615_v37 = vsub.s32 32, %v2614_v17  ;;  %v2619_v2 = vsub.s32 4294967266, %v2614_v17  ;;  %v1019_v62 = vsel %vm1015_vm15, %v999_v26, %v1002_v8  ;;  %v1021_v18 = vsel %vm1017_vm0, %v1005_v55, %v1020_v0 }
 0x228   :  { %v5189_v38 = vmul.u32.u64.low %v1031_v31, %v1030_v13  ;;  %v5190_v11 = vmul.u32.u64.high %v1031_v31, %v1030_v13, %v5189_v38  ;;  %v5192_v33 = vmul.u32.u64.low %v1031_v31, %v1026_v45  ;;  %v5193_v35 = vmul.u32.u64.high %v1031_v31, %v1026_v45, %v5192_v33 }
 0x229   :  { %vm971_vm4 = vweird.f32 %v4943_v57  ;;  %v2616_v51 = vshll.u32 %v5149_v39, %v2614_v17  ;;  %v2617_v44 = vshrl.u32 %v2599_v34, %v2615_v37  ;;  %v2620_v19 = vadd.s32 127, %v2619_v2  ;;  %v184_v37 = vpop.f32.mrf.mxu0 }
 0x22a   :  { %vm2658_vm5 = vcmp.gt.s32.totalorder %v2657_v32, 0  ;;  %v2636_v12 = vadd.s32 3, %v2632_v52  ;;  %v1022_v30 = vsel %vm1016_vm3, %v1019_v62, %v1021_v18  ;;  %v2654_v48 = vand.u32 8388607, %v2647_v59 }
 0x22b   :  { %v2659_v4 = vsel %vm2658_vm5, %v2657_v32, 0  ;;  %vm974_vm6 = vcmp.lt.s32.totalorder %v5145_v49, 2  ;;  %v2618_v58 = vor.u32 %v2617_v44, %v2616_v51  ;;  %v2621_v50 = vshll.u32 %v2620_v19, 23 }
 0x22c   :  { %v2661_v46 = vand.u32 31, %v2659_v4  ;;  %v3964_v8 = vpop.eup %3963  ;;  %vm975_vm7 = vcmp.eq.s32.totalorder %v5145_v49, 0  ;;  %vm978_vm8 = vcmp.eq.s32.totalorder %v5145_v49, 2  ;;  %vm1040_vm9 = vc.u32 %v5190_v11, %v5192_v33 }
 0x22d   :  { %v1041_v39 = vadd.s32 1, %v5193_v35  ;;  %v3966_v47 = vpop.eup %3965  ;;  %v979_v28 = vxor.u32 2147483648, %v3964_v8  ;;  %v2622_v24 = vor.u32 4788187, %v2621_v50  ;;  %v1038_v16 = vmul.u32 %v1031_v31, %v1022_v30 }
 0x22e   :  { %v2662_v55 = vsub.s32 32, %v2661_v46  ;;  %v976_v20 = vxor.u32 2147483648, %v3966_v47  ;;  %v5207_v43 = vand.u32 3, %v2636_v12  ;;  %v2655_v9 = vor.u32 8388608, %v2654_v48 }
 0x22f   :  { %v1042_v6 = vsel %vm1040_vm9, %v1041_v39, %v5193_v35  ;;  %v980_v34 = vsel %vm978_vm8, %v979_v28, %v3966_v47  ;;  %v2623_v15 = vand.u32 2147483647, %v2622_v24  ;;  %v2625_v32 = vcvt.s32.f32 %v2618_v58 }
 0x230   :  { %v1043_v27 = vadd.s32 %v1042_v6, %v1038_v16  ;;  %v977_v26 = vsel %vm975_vm7, %v3964_v8, %v976_v20  ;;  %v2660_v60 = vshrl.u32 %v2659_v4, 5  ;;  %v2665_v56 = vshrl.u32 %v4067_v1, %v2662_v55 }
 0x231   :  { %v2668_v41 = vshrl.u32 %v4068_v3, %v2662_v55  ;;  %v981_v31 = vsel %vm974_vm6, %v977_v26, %v980_v34  ;;  %v2626_v0 = vmul.f32 %v2625_v32, %v2623_v15  ;;  %v2671_v36 = vshrl.u32 %v4069_v5, %v2662_v55 }
 0x232   :  { %v1044_v54 = vadd.s32 536870912, %v1043_v27  ;;  %v982_v53 = vsel %vm971_vm4, nan, %v981_v31  ;;  %v2664_v42 = vshll.u32 %v4066_v61, %v2661_v46  ;;  %v2667_v25 = vshll.u32 %v4067_v1, %v2661_v46 }
 0x233   :  { %v2670_v17 = vshll.u32 %v4068_v3, %v2661_v46  ;;  %3589 = vst [vmem:[#allocation2 + $0x30] sm:$0xff] %v982_v53  ;;  %v2627_v52 = vxor.u32 2147483648, %v2626_v0  ;;  %v2673_v13 = vshll.u32 %v4069_v5, %v2661_v46  ;;  %v2674_v49 = vshrl.u32 %v4070_v7, %v2662_v55 }
 0x234   :  { %v1045_v45 = vshrl.u32 %v1044_v54, 30  ;;  %v2666_v2 = vor.u32 %v2665_v56, %v2664_v42  ;;  %v2669_v62 = vor.u32 %v2668_v41, %v2667_v25  ;;  %v2676_v18 = vshll.u32 %v4070_v7, %v2661_v46 }
 0x235   :  { %v2677_v57 = vshrl.u32 %v4071_v14, %v2662_v55  ;;  %v2628_v38 = vsel %vm2545_vm13, %v2627_v52, %v2626_v0  ;;  %v2672_v51 = vor.u32 %v2671_v36, %v2670_v17  ;;  %v2675_v44 = vor.u32 %v2674_v49, %v2673_v13 }
 0x236   :  { %v1046_v35 = vshll.u32 %v1045_v45, 30  ;;  %v2631_v19 = vsel %vm5159_vm14, %v4999_v40, %v2628_v38  ;;  %v2695_v30 = vshll.u32 %v2655_v9, 8  ;;  %v5232_v48 = vadd.f32 %v184_v37, %v4168_v23  ;;  %v232_v9 = vpop.f32.mrf.mxu1 }
 0x237   :  { %v2678_v12 = vor.u32 %v2677_v57, %v2676_v18  ;;  %3967 = vcosq.f32 %v2631_v19  ;;  %v2663_v58 = vshrl.u32 %v4066_v61, %v2662_v55  ;;  %vm2679_vm11 = vcmp.lt.s32.totalorder %v2660_v60, 1 }
 0x238   :  { %v5234_v4 = vsub.s32 %v1043_v27, %v1046_v35  ;;  %3969 = vsinq.f32 %v2631_v19  ;;  %vm2680_vm10 = vcmp.lt.s32.totalorder %v2660_v60, 2  ;;  %vm2682_vm12 = vcmp.lt.s32.totalorder %v2660_v60, 4 }
 0x239   :  { %v2687_v50 = vsel %vm2679_vm11, %v2666_v2, %v2669_v62  ;;  %vm2681_vm13 = vcmp.lt.s32.totalorder %v2660_v60, 3  ;;  %v2684_v21 = vsel %vm2682_vm12, %v2672_v51, 2102212464  ;;  %v2688_v8 = vsel %vm2682_vm12, %v2675_v44, 920167782 }
 0x23a   :  { %v1049_v46 = vsub.s32 0, %v5234_v4  ;;  %v1069_v39 = vsub.s32 4, %v1045_v45  ;;  %v2689_v47 = vsel %vm2681_vm13, %v2672_v51, %v2688_v8  ;;  %v2691_v28 = vsel %vm2679_vm11, %v2669_v62, %v2672_v51 }
 0x23b   :  { %v2692_v24 = vsel %vm2682_vm12, %v2678_v12, 1326507024  ;;  %v2683_v20 = vsel %vm2679_vm11, %v2663_v58, %v2666_v2  ;;  %v2690_v6 = vsel %vm2680_vm10, %v2687_v50, %v2689_v47  ;;  %v2685_v34 = vsel %vm2681_vm13, %v2669_v62, %v2684_v21 }
 0x23c   :  { %v3676_v16 = vmin.u32 %v1049_v46, %v5234_v4  ;;  %v2693_v55 = vsel %vm2681_vm13, %v2675_v44, %v2692_v24  ;;  %v5241_v32 = vmul.u32.u64.low %v2695_v30, %v2690_v6  ;;  %v5242_v27 = vmul.u32.u64.high %v2695_v30, %v2690_v6, %v5241_v32 }
 0x23d   :  { %v2694_v15 = vsel %vm2680_vm10, %v2691_v28, %v2693_v55  ;;  %vm985_vm14 = vcmp.lt.s32.totalorder %v5105_v22, 0  ;;  %v5250_v31 = vadd.f32 %v232_v9, %v4168_v23  ;;  %vm5254_vm15 = vcmp.le.f32.partialorder %v983_v10, 0.7853982  ;;  %v186_v9 = vpop.f32.mrf.mxu0 }
 0x23e   :  { %v1051_v26 = vclz %v3676_v16  ;;  %v5246_v56 = vmul.u32.u64.low %v2695_v30, %v2694_v15  ;;  %v5247_v41 = vmul.u32.u64.high %v2695_v30, %v2694_v15, %v5246_v56  ;;  %v2686_v36 = vsel %vm2680_vm10, %v2683_v20, %v2685_v34 }
 0x23f   :  { %v1090_v53 = vand.u32 2139095040, %v5232_v48  ;;  %vm2638_vm0 = vcmp.lt.s32.totalorder %v5207_v43, 2  ;;  %vm2639_vm1 = vcmp.eq.s32.totalorder %v5207_v43, 0  ;;  %v1070_v42 = vsel %vm985_vm14, %v1069_v39, %v1045_v45 }
 0x240   :  { %v3677_v54 = vadd.s32 4294967294, %v1051_v26  ;;  %v2705_v25 = vadd.s32 1, %v5242_v27  ;;  %v1087_v17 = vand.u32 2147483647, %v5232_v48  ;;  %vm2635_vm2 = vweird.f32 %v4999_v40 }
 0x241   :  { %vm2642_vm3 = vcmp.eq.s32.totalorder %v5207_v43, 2  ;;  %v1039_v10 = vadd.s32 %v5192_v33, %v5190_v11  ;;  %v1091_v60 = vshrl.u32 %v1090_v53, 23  ;;  %v2702_v13 = vmul.u32 %v2695_v30, %v2686_v36 }
 0x242   :  { %vm3678_vm4 = vcmp.lt.s32.totalorder %v3677_v54, 0  ;;  %vm2704_vm5 = vc.u32 %v5247_v41, %v5241_v32  ;;  %v2754_v45 = vand.u32 2139095040, %v5250_v31  ;;  %v1072_v2 = vsel %vm5254_vm15, 0, %v1070_v42 }
 0x243   :  { %v1054_v52 = vsel %vm3678_vm4, 0, %v3677_v54  ;;  %v2706_v62 = vsel %vm2704_vm5, %v2705_v25, %v5242_v27  ;;  %v3679_v38 = vadd.s32 4294967169, %v1091_v60  ;;  %v1094_v11 = vand.u32 8388607, %v1087_v17 }
 0x244   :  { %v1055_v49 = vsub.s32 32, %v1054_v52  ;;  %v1059_v37 = vsub.s32 4294967266, %v1054_v52  ;;  %v3968_v18 = vpop.eup %3967  ;;  %v2707_v57 = vadd.s32 %v2706_v62, %v2702_v13  ;;  %v2751_v33 = vand.u32 2147483647, %v5250_v31 }
 0x245   :  { %v3970_v35 = vpop.eup %3969  ;;  %v2643_v51 = vxor.u32 2147483648, %v3968_v18  ;;  %v1056_v44 = vshll.u32 %v5234_v4, %v1054_v52  ;;  %v1097_v50 = vadd.s32 1, %v3679_v38  ;;  %v2755_v46 = vshrl.u32 %v2754_v45, 23 }
 0x246   :  { %v1057_v19 = vshrl.u32 %v1039_v10, %v1055_v49  ;;  %v1060_v12 = vadd.s32 127, %v1059_v37  ;;  %v2640_v30 = vxor.u32 2147483648, %v3970_v35  ;;  %v2708_v58 = vadd.s32 536870912, %v2707_v57 }
 0x247   :  { %v2644_v21 = vsel %vm2642_vm3, %v2643_v51, %v3970_v35  ;;  %v1076_v47 = vadd.s32 3, %v1072_v2  ;;  %v1095_v16 = vor.u32 8388608, %v1094_v11  ;;  %vm1098_vm6 = vcmp.gt.s32.totalorder %v1097_v50, 0 }
 0x248   :  { %v1058_v8 = vor.u32 %v1057_v19, %v1056_v44  ;;  %v1061_v39 = vshll.u32 %v1060_v12, 23  ;;  %v2641_v28 = vsel %vm2639_vm1, %v3968_v18, %v2640_v30  ;;  %v5284_v24 = vshrl.u32 %v2708_v58, 30 }
 0x249   :  { %v2645_v4 = vsel %vm2638_vm0, %v2641_v28, %v2644_v21  ;;  %v1099_v6 = vsel %vm1098_vm6, %v1097_v50, 0  ;;  %v5290_v55 = vand.u32 8388607, %v2751_v33  ;;  %v3743_v27 = vadd.s32 4294967169, %v2755_v46 }
 0x24a   :  { %v1062_v20 = vor.u32 4788187, %v1061_v39  ;;  %v2646_v34 = vsel %vm2635_vm2, nan, %v2645_v4  ;;  %v2710_v15 = vshll.u32 %v5284_v24, 30  ;;  %v1065_v56 = vcvt.s32.f32 %v1058_v8 }
 0x24b   :  { %3605 = vst [vmem:[#allocation2 + $0xb0] sm:$0xff] %v2646_v34  ;;  %v1101_v54 = vand.u32 31, %v1099_v6  ;;  %v5295_v36 = vand.u32 3, %v1076_v47  ;;  %v2703_v43 = vadd.s32 %v5241_v32, %v5247_v41  ;;  %v5302_v42 = vadd.f32 %v186_v9, %v4176_v29 }
 0x24c   :  { %v1063_v26 = vand.u32 2147483647, %v1062_v20  ;;  %v5299_v53 = vsub.s32 %v2707_v57, %v2710_v15  ;;  %v5304_v10 = vshll.u32 %v1095_v16, 8  ;;  %v2759_v60 = vor.u32 8388608, %v5290_v55 }
 0x24d   :  { %v1102_v40 = vsub.s32 32, %v1101_v54  ;;  %v1100_v13 = vshrl.u32 %v1099_v6, 5  ;;  %v1104_v45 = vshll.u32 %v4066_v61, %v1101_v54  ;;  %v2761_v49 = vadd.s32 1, %v3743_v27 }
 0x24e   :  { %v1066_v25 = vmul.f32 %v1065_v56, %v1063_v26  ;;  %v2713_v52 = vsub.s32 0, %v5299_v53  ;;  %v1107_v41 = vshll.u32 %v4067_v1, %v1101_v54  ;;  %v1110_v18 = vshll.u32 %v4068_v3, %v1101_v54 }
 0x24f   :  { %v1105_v32 = vshrl.u32 %v4067_v1, %v1102_v40  ;;  %v1108_v2 = vshrl.u32 %v4068_v3, %v1102_v40  ;;  %v1111_v57 = vshrl.u32 %v4069_v5, %v1102_v40  ;;  %v1113_v38 = vshll.u32 %v4069_v5, %v1101_v54 }
 0x250   :  { %v1067_v37 = vxor.u32 2147483648, %v1066_v25  ;;  %v3740_v62 = vmin.u32 %v2713_v52, %v5299_v53  ;;  %v1114_v44 = vshrl.u32 %v4070_v7, %v1102_v40  ;;  %v2733_v30 = vsub.s32 4, %v5284_v24 }
 0x251   :  { %v1106_v35 = vor.u32 %v1105_v32, %v1104_v45  ;;  %v1109_v51 = vor.u32 %v1108_v2, %v1107_v41  ;;  %vm2762_vm7 = vcmp.gt.s32.totalorder %v2761_v49, 0  ;;  %v1112_v58 = vor.u32 %v1111_v57, %v1110_v18 }
 0x252   :  { %v1068_v11 = vsel %vm985_vm14, %v1067_v37, %v1066_v25  ;;  %v2715_v12 = vclz %v3740_v62  ;;  %v1115_v50 = vor.u32 %v1114_v44, %v1113_v38  ;;  %vm1119_vm8 = vcmp.lt.s32.totalorder %v1100_v13, 1 }
 0x253   :  { %v1071_v19 = vsel %vm5254_vm15, %v5105_v22, %v1068_v11  ;;  %vm2649_vm9 = vcmp.lt.s32.totalorder %v5127_v63, 0  ;;  %v1116_v21 = vshll.u32 %v4070_v7, %v1101_v54  ;;  %v1117_v8 = vshrl.u32 %v4071_v14, %v1102_v40 }
 0x254   :  { %3971 = vcosq.f32 %v1071_v19  ;;  %v3741_v46 = vadd.s32 4294967294, %v2715_v12  ;;  %v1103_v39 = vshrl.u32 %v4066_v61, %v1102_v40  ;;  %vm1121_vm11 = vcmp.lt.s32.totalorder %v1100_v13, 3 }
 0x255   :  { %3973 = vsinq.f32 %v1071_v19  ;;  %vm1122_vm10 = vcmp.lt.s32.totalorder %v1100_v13, 4  ;;  %v1127_v0 = vsel %vm1119_vm8, %v1106_v35, %v1109_v51  ;;  %v1118_v47 = vor.u32 %v1117_v8, %v1116_v21 }
 0x256   :  { %vm3742_vm12 = vcmp.lt.s32.totalorder %v3741_v46, 0  ;;  %v1124_v28 = vsel %vm1122_vm10, %v1112_v58, 2102212464  ;;  %v1128_v16 = vsel %vm1122_vm10, %v1115_v50, 920167782  ;;  %v1123_v20 = vsel %vm1119_vm8, %v1103_v39, %v1106_v35 }
 0x257   :  { %v2718_v4 = vsel %vm3742_vm12, 0, %v3741_v46  ;;  %v1125_v6 = vsel %vm1121_vm11, %v1109_v51, %v1124_v28  ;;  %v1129_v9 = vsel %vm1121_vm11, %v1112_v58, %v1128_v16  ;;  %vm1120_vm13 = vcmp.lt.s32.totalorder %v1100_v13, 2 }
 0x258   :  { %v2719_v34 = vsub.s32 32, %v2718_v4  ;;  %v2723_v15 = vsub.s32 4294967266, %v2718_v4  ;;  %v1131_v27 = vsel %vm1119_vm8, %v1109_v51, %v1112_v58  ;;  %v2720_v26 = vshll.u32 %v5299_v53, %v2718_v4 }
 0x259   :  { %v1130_v56 = vsel %vm1120_vm13, %v1127_v0, %v1129_v9  ;;  %v1132_v54 = vsel %vm1122_vm10, %v1118_v47, 1326507024  ;;  %v2763_v25 = vsel %vm2762_vm7, %v2761_v49, 0  ;;  %v1126_v45 = vsel %vm1120_vm13, %v1123_v20, %v1125_v6 }
 0x25a   :  { %v2721_v40 = vshrl.u32 %v2703_v43, %v2719_v34  ;;  %v2724_v52 = vadd.s32 127, %v2723_v15  ;;  %v1133_v37 = vsel %vm1121_vm11, %v1115_v50, %v1132_v54  ;;  %vm1079_vm14 = vcmp.eq.s32.totalorder %v5295_v36, 0 }
 0x25b   :  { %v1134_v32 = vsel %vm1120_vm13, %v1131_v27, %v1133_v37  ;;  %v5340_v41 = vmul.u32.u64.low %v5304_v10, %v1130_v56  ;;  %v5341_v2 = vmul.u32.u64.high %v5304_v10, %v1130_v56, %v5340_v41  ;;  %v2765_v62 = vand.u32 31, %v2763_v25 }
 0x25c   :  { %vm1078_vm15 = vcmp.lt.s32.totalorder %v5295_v36, 2  ;;  %vm5347_vm0 = vcmp.le.f32.partialorder %v2647_v59, 0.7853982  ;;  %v2722_v43 = vor.u32 %v2721_v40, %v2720_v26  ;;  %v2725_v13 = vshll.u32 %v2724_v52, 23 }
 0x25d   :  { %v5352_v49 = vmul.u32.u64.low %v5304_v10, %v1134_v32  ;;  %v5353_v18 = vmul.u32.u64.high %v5304_v10, %v1134_v32, %v5352_v49  ;;  %vm1075_vm1 = vweird.f32 %v5105_v22  ;;  %vm1082_vm2 = vcmp.eq.s32.totalorder %v5295_v36, 2 }
 0x25e   :  { %v2734_v57 = vsel %vm2649_vm9, %v2733_v30, %v5284_v24  ;;  %v2766_v38 = vsub.s32 32, %v2765_v62  ;;  %v5362_v59 = vshll.u32 %v2759_v60, 8  ;;  %v2726_v11 = vor.u32 4788187, %v2725_v13 }
 0x25f   :  { %v1142_v35 = vmul.u32 %v5304_v10, %v1126_v45  ;;  %v5365_v51 = vshrl.u32 %v2763_v25, 5  ;;  %v2768_v44 = vshll.u32 %v4066_v61, %v2765_v62  ;;  %v1145_v19 = vadd.s32 1, %v5341_v2 }
 0x260   :  { %v2769_v12 = vshrl.u32 %v4067_v1, %v2766_v38  ;;  %v2771_v58 = vshll.u32 %v4067_v1, %v2765_v62  ;;  %v2774_v24 = vshll.u32 %v4068_v3, %v2765_v62  ;;  %v2727_v50 = vand.u32 2147483647, %v2726_v11 }
 0x261   :  { %v3972_v30 = vpop.eup %3971  ;;  %v2729_v55 = vcvt.s32.f32 %v2722_v43  ;;  %vm1144_vm3 = vc.u32 %v5353_v18, %v5340_v41  ;;  %v2772_v10 = vshrl.u32 %v4068_v3, %v2766_v38  ;;  %v2775_v8 = vshrl.u32 %v4069_v5, %v2766_v38 }
 0x262   :  { %v3974_v60 = vpop.eup %3973  ;;  %v1083_v46 = vxor.u32 2147483648, %v3972_v30  ;;  %v1146_v21 = vsel %vm1144_vm3, %v1145_v19, %v5341_v2  ;;  %v2777_v39 = vshll.u32 %v4069_v5, %v2765_v62  ;;  %v2780_v16 = vshll.u32 %v4070_v7, %v2765_v62 }
 0x263   :  { %v1080_v0 = vxor.u32 2147483648, %v3974_v60  ;;  %v2730_v47 = vmul.f32 %v2729_v55, %v2727_v50  ;;  %v1147_v28 = vadd.s32 %v1146_v21, %v1142_v35  ;;  %v2770_v20 = vor.u32 %v2769_v12, %v2768_v44 }
 0x264   :  { %v1084_v4 = vsel %vm1082_vm2, %v1083_v46, %v3974_v60  ;;  %v2778_v6 = vshrl.u32 %v4070_v7, %v2766_v38  ;;  %v2781_v9 = vshrl.u32 %v4071_v14, %v2766_v38  ;;  %v2773_v26 = vor.u32 %v2772_v10, %v2771_v58 }
 0x265   :  { %v1081_v34 = vsel %vm1079_vm14, %v3972_v30, %v1080_v0  ;;  %v2731_v15 = vxor.u32 2147483648, %v2730_v47  ;;  %v1148_v27 = vadd.s32 536870912, %v1147_v28  ;;  %v2736_v54 = vsel %vm5347_vm0, 0, %v2734_v57 }
 0x266   :  { %v1085_v56 = vsel %vm1078_vm15, %v1081_v34, %v1084_v4  ;;  %v2776_v25 = vor.u32 %v2775_v8, %v2774_v24  ;;  %v2779_v40 = vor.u32 %v2778_v6, %v2777_v39  ;;  %v2782_v32 = vor.u32 %v2781_v9, %v2780_v16  ;;  %v234_v34 = vpop.f32.mrf.mxu1 }
 0x267   :  { %v1086_v52 = vsel %vm1075_vm1, nan, %v1085_v56  ;;  %v2732_v45 = vsel %vm2649_vm9, %v2731_v15, %v2730_v47  ;;  %v1149_v37 = vshrl.u32 %v1148_v27, 30  ;;  %v2767_v36 = vshrl.u32 %v4066_v61, %v2766_v38 }
 0x268   :  { %3590 = vst [vmem:[#allocation2 + $0x38] sm:$0xff] %v1086_v52  ;;  %v2735_v2 = vsel %vm5347_vm0, %v5127_v63, %v2732_v45  ;;  %vm2783_vm4 = vcmp.lt.s32.totalorder %v5365_v51, 1  ;;  %vm2785_vm5 = vcmp.lt.s32.totalorder %v5365_v51, 3  ;;  %vm2786_vm6 = vcmp.lt.s32.totalorder %v5365_v51, 4 }
 0x269   :  { %3975 = vcosq.f32 %v2735_v2  ;;  %v1150_v62 = vshll.u32 %v1149_v37, 30  ;;  %v2791_v22 = vsel %vm2783_vm4, %v2770_v20, %v2773_v26  ;;  %v2788_v43 = vsel %vm2786_vm6, %v2776_v25, 2102212464 }
 0x26a   :  { %3977 = vsinq.f32 %v2735_v2  ;;  %v2792_v13 = vsel %vm2786_vm6, %v2779_v40, 920167782  ;;  %v2795_v53 = vsel %vm2783_vm4, %v2773_v26, %v2776_v25  ;;  %vm2784_vm7 = vcmp.lt.s32.totalorder %v5365_v51, 2 }
 0x26b   :  { %v5404_v49 = vsub.s32 %v1147_v28, %v1150_v62  ;;  %v2793_v57 = vsel %vm2785_vm5, %v2776_v25, %v2792_v13  ;;  %v2796_v38 = vsel %vm2786_vm6, %v2782_v32, 1326507024  ;;  %v2740_v11 = vadd.s32 3, %v2736_v54 }
 0x26c   :  { %v1173_v35 = vsub.s32 4, %v1149_v37  ;;  %v2794_v44 = vsel %vm2784_vm7, %v2791_v22, %v2793_v57  ;;  %v2797_v19 = vsel %vm2785_vm5, %v2779_v40, %v2796_v38  ;;  %v2787_v58 = vsel %vm2783_vm4, %v2767_v36, %v2770_v20 }
 0x26d   :  { %v1153_v12 = vsub.s32 0, %v5404_v49  ;;  %v2789_v24 = vsel %vm2785_vm5, %v2773_v26, %v2788_v43  ;;  %v2798_v30 = vsel %vm2784_vm7, %v2795_v53, %v2797_v19  ;;  %vm1089_vm8 = vcmp.lt.s32.totalorder %v5232_v48, 0 }
 0x26e   :  { %v5421_v50 = vmul.u32.u64.low %v5362_v59, %v2798_v30  ;;  %v5422_v55 = vmul.u32.u64.high %v5362_v59, %v2798_v30, %v5421_v50  ;;  %v5425_v10 = vmul.u32.u64.low %v5362_v59, %v2794_v44  ;;  %v5426_v60 = vmul.u32.u64.high %v5362_v59, %v2794_v44, %v5425_v10 }
 0x26f   :  { %v3680_v46 = vmin.u32 %v1153_v12, %v5404_v49  ;;  %v2741_v21 = vand.u32 3, %v2740_v11  ;;  %v1174_v8 = vsel %vm1089_vm8, %v1173_v35, %v1149_v37  ;;  %v2790_v39 = vsel %vm2784_vm7, %v2787_v58, %v2789_v24 }
 0x270   :  { %v1194_v0 = vand.u32 2139095040, %v5302_v42  ;;  %vm5437_vm9 = vcmp.le.f32.partialorder %v1087_v17, 0.7853982  ;;  %vm2808_vm11 = vc.u32 %v5422_v55, %v5425_v10  ;;  %v2809_v16 = vadd.s32 1, %v5426_v60 }
 0x271   :  { %v1155_v47 = vclz %v3680_v46  ;;  %v1176_v6 = vsel %vm5437_vm9, 0, %v1174_v8  ;;  %v2806_v51 = vmul.u32 %v5362_v59, %v2790_v39  ;;  %v1191_v9 = vand.u32 2147483647, %v5302_v42 }
 0x272   :  { %v1195_v4 = vshrl.u32 %v1194_v0, 23  ;;  %vm2742_vm10 = vcmp.lt.s32.totalorder %v2741_v21, 2  ;;  %vm2743_vm12 = vcmp.eq.s32.totalorder %v2741_v21, 0  ;;  %v2810_v17 = vsel %vm2808_vm11, %v2809_v16, %v5426_v60 }
 0x273   :  { %v3681_v20 = vadd.s32 4294967294, %v1155_v47  ;;  %vm2746_vm13 = vcmp.eq.s32.totalorder %v2741_v21, 2  ;;  %v1143_v27 = vadd.s32 %v5340_v41, %v5353_v18  ;;  %v2811_v26 = vadd.s32 %v2810_v17, %v2806_v51 }
 0x274   :  { %v3683_v15 = vadd.s32 4294967169, %v1195_v4  ;;  %v1180_v25 = vadd.s32 3, %v1176_v6  ;;  %v5451_v59 = vadd.f32 %v234_v34, %v4176_v29  ;;  %v1198_v2 = vand.u32 8388607, %v1191_v9 }
 0x275   :  { %vm3682_vm14 = vcmp.lt.s32.totalorder %v3681_v20, 0  ;;  %v2812_v41 = vadd.s32 536870912, %v2811_v26  ;;  %vm2739_vm0 = vweird.f32 %v5127_v63  ;;  %vm2753_vm1 = vcmp.lt.s32.totalorder %v5250_v31, 0 }
 0x276   :  { %v3976_v56 = vpop.eup %3975  ;;  %v1158_v54 = vsel %vm3682_vm14, 0, %v3681_v20  ;;  %v1201_v40 = vadd.s32 1, %v3683_v15  ;;  %v2858_v11 = vand.u32 2139095040, %v5451_v59  ;;  %v5462_v30 = vand.u32 3, %v1180_v25 }
 0x277   :  { %v3978_v52 = vpop.eup %3977  ;;  %v2747_v45 = vxor.u32 2147483648, %v3976_v56  ;;  %v1159_v37 = vsub.s32 32, %v1158_v54  ;;  %v1163_v32 = vsub.s32 4294967266, %v1158_v54  ;;  %v1160_v62 = vshll.u32 %v5404_v49, %v1158_v54 }
 0x278   :  { %v2744_v36 = vxor.u32 2147483648, %v3978_v52  ;;  %vm1202_vm15 = vcmp.gt.s32.totalorder %v1201_v40, 0  ;;  %v2813_v57 = vshrl.u32 %v2812_v41, 30  ;;  %v2807_v50 = vadd.s32 %v5425_v10, %v5422_v55 }
 0x279   :  { %v2748_v18 = vsel %vm2746_vm13, %v2747_v45, %v3978_v52  ;;  %v1161_v22 = vshrl.u32 %v1143_v27, %v1159_v37  ;;  %v1164_v43 = vadd.s32 127, %v1163_v32  ;;  %v1203_v13 = vsel %vm1202_vm15, %v1201_v40, 0 }
 0x27a   :  { %v2745_v53 = vsel %vm2743_vm12, %v3976_v56, %v2744_v36  ;;  %v1205_v38 = vand.u32 31, %v1203_v13  ;;  %v2814_v12 = vshll.u32 %v2813_v57, 30  ;;  %v1199_v60 = vor.u32 8388608, %v1198_v2 }
 0x27b   :  { %v2749_v35 = vsel %vm2742_vm10, %v2745_v53, %v2748_v18  ;;  %v1162_v44 = vor.u32 %v1161_v22, %v1160_v62  ;;  %v1165_v19 = vshll.u32 %v1164_v43, 23  ;;  %v2837_v8 = vsub.s32 4, %v2813_v57 }
 0x27c   :  { %v2750_v49 = vsel %vm2739_vm0, nan, %v2749_v35  ;;  %v1206_v58 = vsub.s32 32, %v1205_v38  ;;  %v5465_v46 = vsub.s32 %v2811_v26, %v2814_v12  ;;  %v2859_v21 = vshrl.u32 %v2858_v11, 23 }
 0x27d   :  { %3606 = vst [vmem:[#allocation2 + $0xb8] sm:$0xff] %v2750_v49  ;;  %v1166_v24 = vor.u32 4788187, %v1165_v19  ;;  %v1169_v0 = vcvt.s32.f32 %v1162_v44  ;;  %v1208_v47 = vshll.u32 %v4066_v61, %v1205_v38  ;;  %v1211_v20 = vshll.u32 %v4067_v1, %v1205_v38 }
 0x27e   :  { %v1209_v63 = vshrl.u32 %v4067_v1, %v1206_v58  ;;  %v1212_v16 = vshrl.u32 %v4068_v3, %v1206_v58  ;;  %v2817_v4 = vsub.s32 0, %v5465_v46  ;;  %v1214_v6 = vshll.u32 %v4068_v3, %v1205_v38 }
 0x27f   :  { %v1167_v39 = vand.u32 2147483647, %v1166_v24  ;;  %v1215_v55 = vshrl.u32 %v4069_v5, %v1206_v58  ;;  %v1204_v51 = vshrl.u32 %v1203_v13, 5  ;;  %v1217_v34 = vshll.u32 %v4069_v5, %v1205_v38 }
 0x280   :  { %v1218_v17 = vshrl.u32 %v4070_v7, %v1206_v58  ;;  %v3744_v15 = vmin.u32 %v2817_v4, %v5465_v46  ;;  %v1210_v27 = vor.u32 %v1209_v63, %v1208_v47  ;;  %v1213_v26 = vor.u32 %v1212_v16, %v1211_v20 }
 0x281   :  { %v1170_v10 = vmul.f32 %v1169_v0, %v1167_v39  ;;  %v1216_v56 = vor.u32 %v1215_v55, %v1214_v6  ;;  %v1220_v40 = vshll.u32 %v4070_v7, %v1205_v38  ;;  %v1221_v52 = vshrl.u32 %v4071_v14, %v1206_v58 }
 0x282   :  { %v1219_v25 = vor.u32 %v1218_v17, %v1217_v34  ;;  %vm5481_vm2 = vcmp.le.f32.partialorder %v2751_v33, 0.7853982  ;;  %v2819_v37 = vclz %v3744_v15  ;;  %v2838_v32 = vsel %vm2753_vm1, %v2837_v8, %v2813_v57  ;;  %v190_v15 = vpop.f32.mrf.mxu0 }
 0x283   :  { %v1171_v54 = vxor.u32 2147483648, %v1170_v10  ;;  %v1239_v2 = vshll.u32 %v1199_v60, 8  ;;  %v3747_v36 = vadd.s32 4294967169, %v2859_v21  ;;  %v1207_v41 = vshrl.u32 %v4066_v61, %v1206_v58 }
 0x284   :  { %v1222_v18 = vor.u32 %v1221_v52, %v1220_v40  ;;  %vm1223_vm3 = vcmp.lt.s32.totalorder %v1204_v51, 1  ;;  %v3745_v22 = vadd.s32 4294967294, %v2819_v37  ;;  %vm1225_vm4 = vcmp.lt.s32.totalorder %v1204_v51, 3 }
 0x285   :  { %v1172_v62 = vsel %vm1089_vm8, %v1171_v54, %v1170_v10  ;;  %vm1226_vm5 = vcmp.lt.s32.totalorder %v1204_v51, 4  ;;  %v1231_v13 = vsel %vm1223_vm3, %v1210_v27, %v1213_v26  ;;  %vm1224_vm7 = vcmp.lt.s32.totalorder %v1204_v51, 2 }
 0x286   :  { %v1175_v33 = vsel %vm5437_vm9, %v5232_v48, %v1172_v62  ;;  %v1228_v43 = vsel %vm1226_vm5, %v1216_v56, 2102212464  ;;  %v1232_v53 = vsel %vm1226_vm5, %v1219_v25, 920167782  ;;  %vm3746_vm6 = vcmp.lt.s32.totalorder %v3745_v22, 0 }
 0x287   :  { %3979 = vcosq.f32 %v1175_v33  ;;  %v1233_v57 = vsel %vm1225_vm4, %v1216_v56, %v1232_v53  ;;  %v2822_v38 = vsel %vm3746_vm6, 0, %v3745_v22  ;;  %v1227_v11 = vsel %vm1223_vm3, %v1207_v41, %v1210_v27 }
 0x288   :  { %3981 = vsinq.f32 %v1175_v33  ;;  %v1234_v28 = vsel %vm1224_vm7, %v1231_v13, %v1233_v57  ;;  %v1235_v35 = vsel %vm1223_vm3, %v1213_v26, %v1216_v56  ;;  %v2823_v44 = vsub.s32 32, %v2822_v38 }
 0x289   :  { %v2827_v19 = vsub.s32 4294967266, %v2822_v38  ;;  %v1229_v49 = vsel %vm1225_vm4, %v1213_v26, %v1228_v43  ;;  %v1236_v12 = vsel %vm1226_vm5, %v1222_v18, 1326507024  ;;  %v2824_v58 = vshll.u32 %v5465_v46, %v2822_v38 }
 0x28a   :  { %v1237_v24 = vsel %vm1225_vm4, %v1219_v25, %v1236_v12  ;;  %v5504_v60 = vmul.u32.u64.low %v1239_v2, %v1234_v28  ;;  %v5505_v8 = vmul.u32.u64.high %v1239_v2, %v1234_v28, %v5504_v60  ;;  %v2825_v63 = vshrl.u32 %v2807_v50, %v2823_v44 }
 0x28b   :  { %v2828_v21 = vadd.s32 127, %v2827_v19  ;;  %v1238_v39 = vsel %vm1224_vm7, %v1235_v35, %v1237_v24  ;;  %v2865_v0 = vadd.s32 1, %v3747_v36  ;;  %v2840_v47 = vsel %vm5481_vm2, 0, %v2838_v32 }
 0x28c   :  { %v5511_v16 = vmul.u32.u64.low %v1239_v2, %v1238_v39  ;;  %v5512_v4 = vmul.u32.u64.high %v1239_v2, %v1238_v39, %v5511_v16  ;;  %v2855_v20 = vand.u32 2147483647, %v5451_v59  ;;  %v2826_v46 = vor.u32 %v2825_v63, %v2824_v58 }
 0x28d   :  { %v2829_v6 = vshll.u32 %v2828_v21, 23  ;;  %v1230_v55 = vsel %vm1224_vm7, %v1227_v11, %v1229_v49  ;;  %vm2866_vm8 = vcmp.gt.s32.totalorder %v2865_v0, 0  ;;  %v1249_v10 = vadd.s32 1, %v5505_v8 }
 0x28e   :  { %v2867_v50 = vsel %vm2866_vm8, %v2865_v0, 0  ;;  %vm1182_vm9 = vcmp.lt.s32.totalorder %v5462_v30, 2  ;;  %vm1183_vm11 = vcmp.eq.s32.totalorder %v5462_v30, 0  ;;  %vm1186_vm10 = vcmp.eq.s32.totalorder %v5462_v30, 2 }
 0x28f   :  { %v2830_v34 = vor.u32 4788187, %v2829_v6  ;;  %v2869_v17 = vand.u32 31, %v2867_v50  ;;  %vm1179_vm12 = vweird.f32 %v5232_v48  ;;  %v2844_v27 = vadd.s32 3, %v2840_v47 }
 0x290   :  { %v1246_v26 = vmul.u32 %v1239_v2, %v1230_v55  ;;  %vm1248_vm13 = vc.u32 %v5512_v4, %v5504_v60  ;;  %v2862_v51 = vand.u32 8388607, %v2855_v20  ;;  %v2833_v54 = vcvt.s32.f32 %v2826_v46 }
 0x291   :  { %v2831_v56 = vand.u32 2147483647, %v2830_v34  ;;  %v1250_v25 = vsel %vm1248_vm13, %v1249_v10, %v5505_v8  ;;  %v2870_v40 = vsub.s32 32, %v2869_v17  ;;  %v5526_v37 = vshrl.u32 %v2867_v50, 5 }
 0x292   :  { %v1251_v52 = vadd.s32 %v1250_v25, %v1246_v26  ;;  %v2872_v32 = vshll.u32 %v4066_v61, %v2869_v17  ;;  %v5530_v36 = vadd.f32 %v190_v15, %v4168_v23  ;;  %v2875_v18 = vshll.u32 %v4067_v1, %v2869_v17 }
 0x293   :  { %v2834_v62 = vmul.f32 %v2833_v54, %v2831_v56  ;;  %v2873_v41 = vshrl.u32 %v4067_v1, %v2870_v40  ;;  %v2876_v33 = vshrl.u32 %v4068_v3, %v2870_v40  ;;  %v2878_v53 = vshll.u32 %v4068_v3, %v2869_v17 }
 0x294   :  { %v3980_v2 = vpop.eup %3979  ;;  %v1252_v13 = vadd.s32 536870912, %v1251_v52  ;;  %v2879_v57 = vshrl.u32 %v4069_v5, %v2870_v40  ;;  %v2881_v28 = vshll.u32 %v4069_v5, %v2869_v17  ;;  %v2882_v35 = vshrl.u32 %v4070_v7, %v2870_v40 }
 0x295   :  { %v3982_v22 = vpop.eup %3981  ;;  %v1187_v43 = vxor.u32 2147483648, %v3980_v2  ;;  %v2835_v11 = vxor.u32 2147483648, %v2834_v62  ;;  %v2874_v49 = vor.u32 %v2873_v41, %v2872_v32  ;;  %v2877_v12 = vor.u32 %v2876_v33, %v2875_v18 }
 0x296   :  { %v1184_v38 = vxor.u32 2147483648, %v3982_v22  ;;  %v5541_v19 = vshrl.u32 %v1252_v13, 30  ;;  %v2884_v8 = vshll.u32 %v4070_v7, %v2869_v17  ;;  %v2885_v63 = vshrl.u32 %v4071_v14, %v2870_v40 }
 0x297   :  { %v1188_v44 = vsel %vm1186_vm10, %v1187_v43, %v3982_v22  ;;  %v2836_v24 = vsel %vm2753_vm1, %v2835_v11, %v2834_v62  ;;  %v2880_v47 = vor.u32 %v2879_v57, %v2878_v53  ;;  %v2883_v46 = vor.u32 %v2882_v35, %v2881_v28  ;;  %v238_v43 = vpop.f32.mrf.mxu1 }
 0x298   :  { %v1185_v58 = vsel %vm1183_vm11, %v3980_v2, %v1184_v38  ;;  %v2839_v39 = vsel %vm5481_vm2, %v5250_v31, %v2836_v24  ;;  %v1254_v0 = vshll.u32 %v5541_v19, 30  ;;  %v2886_v6 = vor.u32 %v2885_v63, %v2884_v8 }
 0x299   :  { %v1189_v21 = vsel %vm1182_vm9, %v1185_v58, %v1188_v44  ;;  %3983 = vcosq.f32 %v2839_v39  ;;  %v5559_v10 = vand.u32 3, %v2844_v27  ;;  %v2863_v30 = vor.u32 8388608, %v2862_v51 }
 0x29a   :  { %v1190_v16 = vsel %vm1179_vm12, nan, %v1189_v21  ;;  %3985 = vsinq.f32 %v2839_v39  ;;  %v5557_v55 = vsub.s32 %v1251_v52, %v1254_v0  ;;  %vm2887_vm14 = vcmp.lt.s32.totalorder %v5526_v37, 1 }
 0x29b   :  { %3591 = vst [vmem:[#allocation2 + $0x40] sm:$0xff] %v1190_v16  ;;  %v1298_v45 = vand.u32 2139095040, %v5530_v36  ;;  %vm2889_vm15 = vcmp.lt.s32.totalorder %v5526_v37, 3  ;;  %vm2890_vm0 = vcmp.lt.s32.totalorder %v5526_v37, 4  ;;  %v2895_v48 = vsel %vm2887_vm14, %v2874_v49, %v2877_v12 }
 0x29c   :  { %v1257_v50 = vsub.s32 0, %v5557_v55  ;;  %v2871_v34 = vshrl.u32 %v4066_v61, %v2870_v40  ;;  %v2892_v17 = vsel %vm2890_vm0, %v2880_v47, 2102212464  ;;  %v2896_v15 = vsel %vm2890_vm0, %v2883_v46, 920167782 }
 0x29d   :  { %v2900_v27 = vsel %vm2890_vm0, %v2886_v6, 1326507024  ;;  %vm2888_vm1 = vcmp.lt.s32.totalorder %v5526_v37, 2  ;;  %v2897_v51 = vsel %vm2889_vm15, %v2880_v47, %v2896_v15  ;;  %v2899_v56 = vsel %vm2887_vm14, %v2877_v12, %v2880_v47 }
 0x29e   :  { %v3684_v26 = vmin.u32 %v1257_v50, %v5557_v55  ;;  %v2898_v54 = vsel %vm2888_vm1, %v2895_v48, %v2897_v51  ;;  %v2901_v25 = vsel %vm2889_vm15, %v2883_v46, %v2900_v27  ;;  %v2903_v40 = vshll.u32 %v2863_v30, 8 }
 0x29f   :  { %v1299_v52 = vshrl.u32 %v1298_v45, 23  ;;  %v2891_v2 = vsel %vm2887_vm14, %v2871_v34, %v2874_v49  ;;  %v2893_v62 = vsel %vm2889_vm15, %v2877_v12, %v2892_v17  ;;  %v2902_v41 = vsel %vm2888_vm1, %v2899_v56, %v2901_v25 }
 0x2a0   :  { %v1259_v32 = vclz %v3684_v26  ;;  %v5585_v18 = vmul.u32.u64.low %v2903_v40, %v2898_v54  ;;  %v5586_v33 = vmul.u32.u64.high %v2903_v40, %v2898_v54, %v5585_v18  ;;  %v1277_v53 = vsub.s32 4, %v5541_v19 }
 0x2a1   :  { %v3687_v22 = vadd.s32 4294967169, %v1299_v52  ;;  %v5590_v57 = vmul.u32.u64.low %v2903_v40, %v2902_v41  ;;  %v5591_v38 = vmul.u32.u64.high %v2903_v40, %v2902_v41, %v5590_v57  ;;  %vm2843_vm2 = vweird.f32 %v5250_v31 }
 0x2a2   :  { %v3685_v13 = vadd.s32 4294967294, %v1259_v32  ;;  %vm2847_vm3 = vcmp.eq.s32.totalorder %v5559_v10, 0  ;;  %vm1193_vm4 = vcmp.lt.s32.totalorder %v5302_v42, 0  ;;  %v2894_v11 = vsel %vm2888_vm1, %v2891_v2, %v2893_v62 }
 0x2a3   :  { %v1305_v28 = vadd.s32 1, %v3687_v22  ;;  %vm2850_vm5 = vcmp.eq.s32.totalorder %v5559_v10, 2  ;;  %v1295_v35 = vand.u32 2147483647, %v5530_v36  ;;  %v5601_v44 = vadd.f32 %v238_v43, %v4168_v23 }
 0x2a4   :  { %vm3686_vm6 = vcmp.lt.s32.totalorder %v3685_v13, 0  ;;  %v1247_v49 = vadd.s32 %v5504_v60, %v5512_v4  ;;  %v2913_v58 = vadd.s32 1, %v5586_v33  ;;  %v1278_v63 = vsel %vm1193_vm4, %v1277_v53, %v5541_v19 }
 0x2a5   :  { %v1262_v12 = vsel %vm3686_vm6, 0, %v3685_v13  ;;  %vm1306_vm7 = vcmp.gt.s32.totalorder %v1305_v28, 0  ;;  %v2910_v21 = vmul.u32 %v2903_v40, %v2894_v11  ;;  %vm2912_vm8 = vc.u32 %v5591_v38, %v5585_v18 }
 0x2a6   :  { %v3984_v24 = vpop.eup %3983  ;;  %v1263_v8 = vsub.s32 32, %v1262_v12  ;;  %v1267_v37 = vsub.s32 4294967266, %v1262_v12  ;;  %v1264_v47 = vshll.u32 %v5557_v55, %v1262_v12  ;;  %v1307_v60 = vsel %vm1306_vm7, %v1305_v28, 0 }
 0x2a7   :  { %v3986_v39 = vpop.eup %3985  ;;  %v2851_v0 = vxor.u32 2147483648, %v3984_v24  ;;  %v2914_v6 = vsel %vm2912_vm8, %v2913_v58, %v5586_v33  ;;  %v1302_v19 = vand.u32 8388607, %v1295_v35  ;;  %v1309_v50 = vand.u32 31, %v1307_v60 }
 0x2a8   :  { %v2848_v4 = vxor.u32 2147483648, %v3986_v39  ;;  %v1265_v16 = vshrl.u32 %v1247_v49, %v1263_v8  ;;  %v1268_v46 = vadd.s32 127, %v1267_v37  ;;  %v2915_v45 = vadd.s32 %v2914_v6, %v2910_v21 }
 0x2a9   :  { %v2852_v30 = vsel %vm2850_vm5, %v2851_v0, %v3986_v39  ;;  %vm2846_vm9 = vcmp.lt.s32.totalorder %v5559_v10, 2  ;;  %vm5622_vm11 = vcmp.le.f32.partialorder %v1191_v9, 0.7853982  ;;  %v1310_v26 = vsub.s32 32, %v1309_v50 }
 0x2aa   :  { %v2849_v55 = vsel %vm2847_vm3, %v3984_v24, %v2848_v4  ;;  %v1266_v48 = vor.u32 %v1265_v16, %v1264_v47  ;;  %v1269_v34 = vshll.u32 %v1268_v46, 23  ;;  %v2916_v27 = vadd.s32 536870912, %v2915_v45 }
 0x2ab   :  { %v2853_v17 = vsel %vm2846_vm9, %v2849_v55, %v2852_v30  ;;  %v1280_v54 = vsel %vm5622_vm11, 0, %v1278_v63  ;;  %v1303_v25 = vor.u32 8388608, %v1302_v19  ;;  %v1313_v40 = vshrl.u32 %v4067_v1, %v1310_v26 }
 0x2ac   :  { %v2854_v51 = vsel %vm2843_vm2, nan, %v2853_v17  ;;  %v1270_v56 = vor.u32 4788187, %v1269_v34  ;;  %v5630_v10 = vshrl.u32 %v2916_v27, 30  ;;  %v2962_v9 = vand.u32 2139095040, %v5601_v44 }
 0x2ad   :  { %3607 = vst [vmem:[#allocation2 + $0xc0] sm:$0xff] %v2854_v51  ;;  %v1273_v32 = vcvt.s32.f32 %v1266_v48  ;;  %v1316_v2 = vshrl.u32 %v4068_v3, %v1310_v26  ;;  %v1319_v62 = vshrl.u32 %v4069_v5, %v1310_v26  ;;  %v1308_v41 = vshrl.u32 %v1307_v60, 5 }
 0x2ae   :  { %v1271_v52 = vand.u32 2147483647, %v1270_v56  ;;  %v2918_v31 = vshll.u32 %v5630_v10, 30  ;;  %v1312_v33 = vshll.u32 %v4066_v61, %v1309_v50  ;;  %v1318_v22 = vshll.u32 %v4068_v3, %v1309_v50 }
 0x2af   :  { %v1315_v13 = vshll.u32 %v4067_v1, %v1309_v50  ;;  %v1321_v53 = vshll.u32 %v4069_v5, %v1309_v50  ;;  %v1322_v57 = vshrl.u32 %v4070_v7, %v1310_v26  ;;  %v1325_v12 = vshrl.u32 %v4071_v14, %v1310_v26 }
 0x2b0   :  { %v1274_v43 = vmul.f32 %v1273_v32, %v1271_v52  ;;  %v5642_v11 = vsub.s32 %v2915_v45, %v2918_v31  ;;  %v1314_v28 = vor.u32 %v1313_v40, %v1312_v33  ;;  %v1320_v49 = vor.u32 %v1319_v62, %v1318_v22 }
 0x2b1   :  { %v1317_v24 = vor.u32 %v1316_v2, %v1315_v13  ;;  %v1323_v8 = vor.u32 %v1322_v57, %v1321_v53  ;;  %v1324_v37 = vshll.u32 %v4070_v7, %v1309_v50  ;;  %v1284_v63 = vadd.s32 3, %v1280_v54 }
 0x2b2   :  { %v1275_v58 = vxor.u32 2147483648, %v1274_v43  ;;  %v2921_v21 = vsub.s32 0, %v5642_v11  ;;  %v1343_v39 = vshll.u32 %v1303_v25, 8  ;;  %v2963_v0 = vshrl.u32 %v2962_v9, 23 }
 0x2b3   :  { %v1311_v60 = vshrl.u32 %v4066_v61, %v1310_v26  ;;  %v1326_v4 = vor.u32 %v1325_v12, %v1324_v37  ;;  %vm1330_vm10 = vcmp.lt.s32.totalorder %v1308_v41, 4  ;;  %vm1327_vm12 = vcmp.lt.s32.totalorder %v1308_v41, 1 }
 0x2b4   :  { %v1276_v47 = vsel %vm1193_vm4, %v1275_v58, %v1274_v43  ;;  %v3748_v46 = vmin.u32 %v2921_v21, %v5642_v11  ;;  %v1332_v6 = vsel %vm1330_vm10, %v1320_v49, 2102212464  ;;  %vm1328_vm13 = vcmp.lt.s32.totalorder %v1308_v41, 2 }
 0x2b5   :  { %v1279_v16 = vsel %vm5622_vm11, %v5302_v42, %v1276_v47  ;;  %v1335_v30 = vsel %vm1327_vm12, %v1314_v28, %v1317_v24  ;;  %v1336_v45 = vsel %vm1330_vm10, %v1323_v8, 920167782  ;;  %vm1329_vm14 = vcmp.lt.s32.totalorder %v1308_v41, 3 }
 0x2b6   :  { %3987 = vcosq.f32 %v1279_v16  ;;  %v2923_v19 = vclz %v3748_v46  ;;  %v1339_v50 = vsel %vm1327_vm12, %v1317_v24, %v1320_v49  ;;  %v1331_v55 = vsel %vm1327_vm12, %v1311_v60, %v1314_v28 }
 0x2b7   :  { %3989 = vsinq.f32 %v1279_v16  ;;  %v1333_v48 = vsel %vm1329_vm14, %v1317_v24, %v1332_v6  ;;  %v1337_v34 = vsel %vm1329_vm14, %v1320_v49, %v1336_v45  ;;  %v1340_v17 = vsel %vm1330_vm10, %v1326_v4, 1326507024 }
 0x2b8   :  { %v3749_v15 = vadd.s32 4294967294, %v2923_v19  ;;  %v2941_v27 = vsub.s32 4, %v5630_v10  ;;  %v1338_v26 = vsel %vm1328_vm13, %v1335_v30, %v1337_v34  ;;  %v1341_v51 = vsel %vm1329_vm14, %v1323_v8, %v1340_v17 }
 0x2b9   :  { %v1342_v56 = vsel %vm1328_vm13, %v1339_v50, %v1341_v51  ;;  %v5660_v54 = vmul.u32.u64.low %v1343_v39, %v1338_v26  ;;  %v5661_v25 = vmul.u32.u64.high %v1343_v39, %v1338_v26, %v5660_v54  ;;  %v3751_v40 = vadd.s32 4294967169, %v2963_v0  ;;  %v192_v0 = vpop.f32.mrf.mxu0 }
 0x2ba   :  { %vm3750_vm15 = vcmp.lt.s32.totalorder %v3749_v15, 0  ;;  %v1334_v9 = vsel %vm1328_vm13, %v1331_v55, %v1333_v48  ;;  %v5665_v52 = vmul.u32.u64.low %v1343_v39, %v1342_v56  ;;  %v5666_v32 = vmul.u32.u64.high %v1343_v39, %v1342_v56, %v5665_v52 }
 0x2bb   :  { %v1285_v2 = vand.u32 3, %v1284_v63  ;;  %vm2857_vm0 = vcmp.lt.s32.totalorder %v5451_v59, 0  ;;  %v2926_v62 = vsel %vm3750_vm15, 0, %v3749_v15  ;;  %v2969_v31 = vadd.s32 1, %v3751_v40 }
 0x2bc   :  { %v2911_v33 = vadd.s32 %v5585_v18, %v5591_v38  ;;  %v2927_v22 = vsub.s32 32, %v2926_v62  ;;  %v2931_v43 = vsub.s32 4294967266, %v2926_v62  ;;  %v2959_v13 = vand.u32 2147483647, %v5601_v44 }
 0x2bd   :  { %v2942_v41 = vsel %vm2857_vm0, %v2941_v27, %v5630_v10  ;;  %v1350_v53 = vmul.u32 %v1343_v39, %v1334_v9  ;;  %v1353_v57 = vadd.s32 1, %v5661_v25  ;;  %vm2970_vm1 = vcmp.gt.s32.totalorder %v2969_v31, 0 }
 0x2be   :  { %v2928_v28 = vshll.u32 %v5642_v11, %v2926_v62  ;;  %v2929_v49 = vshrl.u32 %v2911_v33, %v2927_v22  ;;  %v2932_v12 = vadd.s32 127, %v2931_v43  ;;  %vm1352_vm2 = vc.u32 %v5666_v32, %v5660_v54 }
 0x2bf   :  { %vm5681_vm3 = vcmp.le.f32.partialorder %v2855_v20, 0.7853982  ;;  %v1354_v38 = vsel %vm1352_vm2, %v1353_v57, %v5661_v25  ;;  %v2971_v10 = vsel %vm2970_vm1, %v2969_v31, 0  ;;  %vm1283_vm4 = vweird.f32 %v5302_v42 }
 0x2c0   :  { %v2930_v58 = vor.u32 %v2929_v49, %v2928_v28  ;;  %v2933_v24 = vshll.u32 %v2932_v12, 23  ;;  %v2944_v8 = vsel %vm5681_vm3, 0, %v2942_v41  ;;  %v1355_v11 = vadd.s32 %v1354_v38, %v1350_v53 }
 0x2c1   :  { %v2966_v37 = vand.u32 8388607, %v2959_v13  ;;  %v2973_v63 = vand.u32 31, %v2971_v10  ;;  %vm1286_vm5 = vcmp.lt.s32.totalorder %v1285_v2, 2  ;;  %vm1287_vm6 = vcmp.eq.s32.totalorder %v1285_v2, 0 }
 0x2c2   :  { %v2934_v20 = vor.u32 4788187, %v2933_v24  ;;  %v1356_v39 = vadd.s32 536870912, %v1355_v11  ;;  %vm1290_vm7 = vcmp.eq.s32.totalorder %v1285_v2, 2  ;;  %v5691_v4 = vadd.s32 3, %v2944_v8 }
 0x2c3   :  { %v3988_v21 = vpop.eup %3987  ;;  %v2974_v16 = vsub.s32 32, %v2973_v63  ;;  %v2937_v30 = vcvt.s32.f32 %v2930_v58  ;;  %v2967_v50 = vor.u32 8388608, %v2966_v37  ;;  %v5697_v48 = vadd.f32 %v192_v0, %v4176_v29 }
 0x2c4   :  { %v3990_v47 = vpop.eup %3989  ;;  %v1291_v60 = vxor.u32 2147483648, %v3988_v21  ;;  %v2935_v6 = vand.u32 2147483647, %v2934_v20  ;;  %v5693_v45 = vshrl.u32 %v1356_v39, 30  ;;  %v2976_v51 = vshll.u32 %v4066_v61, %v2973_v63 }
 0x2c5   :  { %v1288_v46 = vxor.u32 2147483648, %v3990_v47  ;;  %v2977_v55 = vshrl.u32 %v4067_v1, %v2974_v16  ;;  %v2980_v27 = vshrl.u32 %v4068_v3, %v2974_v16  ;;  %v2979_v56 = vshll.u32 %v4067_v1, %v2973_v63 }
 0x2c6   :  { %v1292_v19 = vsel %vm1290_vm7, %v1291_v60, %v3990_v47  ;;  %v2938_v17 = vmul.f32 %v2937_v30, %v2935_v6  ;;  %v1358_v15 = vshll.u32 %v5693_v45, 30  ;;  %v2983_v25 = vshrl.u32 %v4069_v5, %v2974_v16 }
 0x2c7   :  { %v1289_v34 = vsel %vm1287_vm6, %v3988_v21, %v1288_v46  ;;  %v2982_v62 = vshll.u32 %v4068_v3, %v2973_v63  ;;  %v2972_v31 = vshrl.u32 %v2971_v10, 5  ;;  %v2978_v33 = vor.u32 %v2977_v55, %v2976_v51 }
 0x2c8   :  { %v1293_v26 = vsel %vm1286_vm5, %v1289_v34, %v1292_v19  ;;  %v2939_v9 = vxor.u32 2147483648, %v2938_v17  ;;  %v5708_v52 = vsub.s32 %v1355_v11, %v1358_v15  ;;  %v2985_v2 = vshll.u32 %v4069_v5, %v2973_v63 }
 0x2c9   :  { %v1294_v40 = vsel %vm1283_vm4, nan, %v1293_v26  ;;  %v2986_v22 = vshrl.u32 %v4070_v7, %v2974_v16  ;;  %v2981_v53 = vor.u32 %v2980_v27, %v2979_v56  ;;  %v2984_v42 = vor.u32 %v2983_v25, %v2982_v62  ;;  %v240_v25 = vpop.f32.mrf.mxu1 }
 0x2ca   :  { %3592 = vst [vmem:[#allocation2 + $0x48] sm:$0xff] %v1294_v40  ;;  %v2940_v43 = vsel %vm2857_vm0, %v2939_v9, %v2938_v17  ;;  %v1361_v41 = vsub.s32 0, %v5708_v52  ;;  %v2988_v49 = vshll.u32 %v4070_v7, %v2973_v63  ;;  %v2989_v12 = vshrl.u32 %v4071_v14, %v2974_v16 }
 0x2cb   :  { %v2943_v57 = vsel %vm5681_vm3, %v5451_v59, %v2940_v43  ;;  %v2987_v28 = vor.u32 %v2986_v22, %v2985_v2  ;;  %v3007_v10 = vshll.u32 %v2967_v50, 8  ;;  %v1402_v58 = vand.u32 2139095040, %v5697_v48 }
 0x2cc   :  { %3991 = vcosq.f32 %v2943_v57  ;;  %v3688_v38 = vmin.u32 %v1361_v41, %v5708_v52  ;;  %v2975_v24 = vshrl.u32 %v4066_v61, %v2974_v16  ;;  %v2990_v8 = vor.u32 %v2989_v12, %v2988_v49 }
 0x2cd   :  { %3993 = vsinq.f32 %v2943_v57  ;;  %vm2991_vm8 = vcmp.lt.s32.totalorder %v2972_v31, 1  ;;  %vm2992_vm9 = vcmp.lt.s32.totalorder %v2972_v31, 2  ;;  %vm2993_vm11 = vcmp.lt.s32.totalorder %v2972_v31, 3 }
 0x2ce   :  { %v1363_v11 = vclz %v3688_v38  ;;  %vm2994_vm10 = vcmp.lt.s32.totalorder %v2972_v31, 4  ;;  %v2999_v37 = vsel %vm2991_vm8, %v2978_v33, %v2981_v53  ;;  %v3003_v21 = vsel %vm2991_vm8, %v2981_v53, %v2984_v42 }
 0x2cf   :  { %v2996_v18 = vsel %vm2994_vm10, %v2984_v42, 2102212464  ;;  %v3000_v63 = vsel %vm2994_vm10, %v2987_v28, 920167782  ;;  %v2995_v39 = vsel %vm2991_vm8, %v2975_v24, %v2978_v33  ;;  %v3004_v47 = vsel %vm2994_vm10, %v2990_v8, 1326507024 }
 0x2d0   :  { %v3689_v20 = vadd.s32 4294967294, %v1363_v11  ;;  %v3001_v0 = vsel %vm2993_vm11, %v2984_v42, %v3000_v63  ;;  %v2997_v60 = vsel %vm2993_vm11, %v2981_v53, %v2996_v18  ;;  %v3005_v6 = vsel %vm2993_vm11, %v2987_v28, %v3004_v47 }
 0x2d1   :  { %v3002_v46 = vsel %vm2992_vm9, %v2999_v37, %v3001_v0  ;;  %v1403_v30 = vshrl.u32 %v1402_v58, 23  ;;  %v3006_v16 = vsel %vm2992_vm9, %v3003_v21, %v3005_v6  ;;  %v1351_v55 = vadd.s32 %v5660_v54, %v5666_v32 }
 0x2d2   :  { %vm3690_vm12 = vcmp.lt.s32.totalorder %v3689_v20, 0  ;;  %v5726_v19 = vmul.u32.u64.low %v3007_v10, %v3002_v46  ;;  %v5727_v50 = vmul.u32.u64.high %v3007_v10, %v3002_v46, %v5726_v19  ;;  %v2998_v51 = vsel %vm2992_vm9, %v2995_v39, %v2997_v60 }
 0x2d3   :  { %v1366_v34 = vsel %vm3690_vm12, 0, %v3689_v20  ;;  %v5732_v17 = vmul.u32.u64.low %v3007_v10, %v3006_v16  ;;  %v5733_v15 = vmul.u32.u64.high %v3007_v10, %v3006_v16, %v5732_v17  ;;  %v3691_v56 = vadd.s32 4294967169, %v1403_v30 }
 0x2d4   :  { %v1367_v27 = vsub.s32 32, %v1366_v34  ;;  %v1371_v26 = vsub.s32 4294967266, %v1366_v34  ;;  %v2949_v40 = vand.u32 3, %v5691_v4  ;;  %v1368_v9 = vshll.u32 %v5708_v52, %v1366_v34 }
 0x2d5   :  { %v1381_v62 = vsub.s32 4, %v5693_v45  ;;  %v1399_v33 = vand.u32 2147483647, %v5697_v48  ;;  %vm2947_vm13 = vweird.f32 %v5451_v59  ;;  %v3017_v2 = vadd.s32 1, %v5727_v50 }
 0x2d6   :  { %v1369_v54 = vshrl.u32 %v1351_v55, %v1367_v27  ;;  %v1372_v32 = vadd.s32 127, %v1371_v26  ;;  %v1409_v22 = vadd.s32 1, %v3691_v56  ;;  %vm1297_vm14 = vcmp.lt.s32.totalorder %v5530_v36, 0 }
 0x2d7   :  { %v3014_v31 = vmul.u32 %v3007_v10, %v2998_v51  ;;  %vm3016_vm15 = vc.u32 %v5733_v15, %v5726_v19  ;;  %v5746_v4 = vadd.f32 %v240_v25, %v4176_v29  ;;  %vm2954_vm1 = vcmp.eq.s32.totalorder %v2949_v40, 2 }
 0x2d8   :  { %v1370_v52 = vor.u32 %v1369_v54, %v1368_v9  ;;  %v1373_v43 = vshll.u32 %v1372_v32, 23  ;;  %v3018_v41 = vsel %vm3016_vm15, %v3017_v2, %v5727_v50  ;;  %vm1410_vm0 = vcmp.gt.s32.totalorder %v1409_v22, 0 }
 0x2d9   :  { %v3992_v53 = vpop.eup %3991  ;;  %vm5751_vm2 = vcmp.le.f32.partialorder %v1295_v35, 0.7853982  ;;  %v3019_v57 = vadd.s32 %v3018_v41, %v3014_v31  ;;  %v1411_v28 = vsel %vm1410_vm0, %v1409_v22, 0  ;;  %v5758_v10 = vsel %vm1297_vm14, %v1381_v62, %v5693_v45 }
 0x2da   :  { %v3994_v49 = vpop.eup %3993  ;;  %v2955_v12 = vxor.u32 2147483648, %v3992_v53  ;;  %v1374_v38 = vor.u32 4788187, %v1373_v43  ;;  %v1406_v58 = vand.u32 8388607, %v1399_v33  ;;  %v1413_v11 = vand.u32 31, %v1411_v28 }
 0x2db   :  { %v2952_v24 = vxor.u32 2147483648, %v3994_v49  ;;  %v3020_v8 = vadd.s32 536870912, %v3019_v57  ;;  %v3066_v35 = vand.u32 2139095040, %v5746_v4  ;;  %vm2951_vm3 = vcmp.eq.s32.totalorder %v2949_v40, 0 }
 0x2dc   :  { %v2956_v18 = vsel %vm2954_vm1, %v2955_v12, %v3994_v49  ;;  %v1375_v37 = vand.u32 2147483647, %v1374_v38  ;;  %v1377_v63 = vcvt.s32.f32 %v1370_v52  ;;  %vm2950_vm4 = vcmp.lt.s32.totalorder %v2949_v40, 2 }
 0x2dd   :  { %v2953_v21 = vsel %vm2951_vm3, %v3992_v53, %v2952_v24  ;;  %v5763_v20 = vshrl.u32 %v3020_v8, 30  ;;  %v1414_v39 = vsub.s32 32, %v1413_v11  ;;  %v1384_v47 = vsel %vm5751_vm2, 0, %v5758_v10 }
 0x2de   :  { %v2957_v0 = vsel %vm2950_vm4, %v2953_v21, %v2956_v18  ;;  %v1378_v45 = vmul.f32 %v1377_v63, %v1375_v37  ;;  %v1407_v60 = vor.u32 8388608, %v1406_v58  ;;  %v1416_v30 = vshll.u32 %v4066_v61, %v1413_v11 }
 0x2df   :  { %v2958_v46 = vsel %vm2947_vm13, nan, %v2957_v0  ;;  %v3022_v6 = vshll.u32 %v5763_v20, 30  ;;  %v3067_v16 = vshrl.u32 %v3066_v35, 23  ;;  %v1417_v55 = vshrl.u32 %v4067_v1, %v1414_v39 }
 0x2e0   :  { %3608 = vst [vmem:[#allocation2 + $0xc8] sm:$0xff] %v2958_v46  ;;  %v1379_v50 = vxor.u32 2147483648, %v1378_v45  ;;  %v1420_v34 = vshrl.u32 %v4068_v3, %v1414_v39  ;;  %v1423_v17 = vshrl.u32 %v4069_v5, %v1414_v39  ;;  %v1419_v26 = vshll.u32 %v4067_v1, %v1413_v11 }
 0x2e1   :  { %v5775_v27 = vsub.s32 %v3019_v57, %v3022_v6  ;;  %v1422_v59 = vshll.u32 %v4068_v3, %v1413_v11  ;;  %v1426_v51 = vshrl.u32 %v4070_v7, %v1414_v39  ;;  %v1412_v25 = vshrl.u32 %v1411_v28, 5 }
 0x2e2   :  { %v1380_v56 = vsel %vm1297_vm14, %v1379_v50, %v1378_v45  ;;  %v1418_v40 = vor.u32 %v1417_v55, %v1416_v30  ;;  %v1425_v9 = vshll.u32 %v4069_v5, %v1413_v11  ;;  %v1421_v32 = vor.u32 %v1420_v34, %v1419_v26 }
 0x2e3   :  { %v1383_v62 = vsel %vm5751_vm2, %v5530_v36, %v1380_v56  ;;  %v3025_v54 = vsub.s32 0, %v5775_v27  ;;  %v1424_v2 = vor.u32 %v1423_v17, %v1422_v59  ;;  %vm2961_vm5 = vcmp.lt.s32.totalorder %v5601_v44, 0 }
 0x2e4   :  { %3995 = vcosq.f32 %v1383_v62  ;;  %v1427_v22 = vor.u32 %v1426_v51, %v1425_v9  ;;  %v1428_v31 = vshll.u32 %v4070_v7, %v1413_v11  ;;  %v1429_v52 = vshrl.u32 %v4071_v14, %v1414_v39 }
 0x2e5   :  { %3997 = vsinq.f32 %v1383_v62  ;;  %v3752_v43 = vmin.u32 %v3025_v54, %v5775_v27  ;;  %v1447_v41 = vshll.u32 %v1407_v60, 8  ;;  %v3755_v53 = vadd.s32 4294967169, %v3067_v16 }
 0x2e6   :  { %v1415_v42 = vshrl.u32 %v4066_v61, %v1414_v39  ;;  %v1430_v57 = vor.u32 %v1429_v52, %v1428_v31  ;;  %vm1431_vm6 = vcmp.lt.s32.totalorder %v1412_v25, 1  ;;  %vm1432_vm7 = vcmp.lt.s32.totalorder %v1412_v25, 2 }
 0x2e7   :  { %v3027_v28 = vclz %v3752_v43  ;;  %vm1433_vm8 = vcmp.lt.s32.totalorder %v1412_v25, 3  ;;  %vm1434_vm9 = vcmp.lt.s32.totalorder %v1412_v25, 4  ;;  %v1439_v49 = vsel %vm1431_vm6, %v1418_v40, %v1421_v32  ;;  %v196_v43 = vpop.f32.mrf.mxu0 }
 0x2e8   :  { %v1436_v12 = vsel %vm1434_vm9, %v1424_v2, 2102212464  ;;  %v1440_v38 = vsel %vm1434_vm9, %v1427_v22, 920167782  ;;  %v1443_v10 = vsel %vm1431_vm6, %v1421_v32, %v1424_v2  ;;  %v1444_v58 = vsel %vm1434_vm9, %v1430_v57, 1326507024 }
 0x2e9   :  { %v3753_v24 = vadd.s32 4294967294, %v3027_v28  ;;  %v3045_v8 = vsub.s32 4, %v5763_v20  ;;  %v1441_v11 = vsel %vm1433_vm8, %v1424_v2, %v1440_v38  ;;  %v1445_v35 = vsel %vm1433_vm8, %v1427_v22, %v1444_v58 }
 0x2ea   :  { %v1388_v18 = vadd.s32 3, %v1384_v47  ;;  %v1435_v37 = vsel %vm1431_vm6, %v1415_v42, %v1418_v40  ;;  %v1442_v63 = vsel %vm1432_vm7, %v1439_v49, %v1441_v11  ;;  %v1446_v21 = vsel %vm1432_vm7, %v1443_v10, %v1445_v35 }
 0x2eb   :  { %vm3754_vm11 = vcmp.lt.s32.totalorder %v3753_v24, 0  ;;  %v1437_v39 = vsel %vm1433_vm8, %v1421_v32, %v1436_v12  ;;  %v5798_v0 = vmul.u32.u64.low %v1447_v41, %v1446_v21  ;;  %v5799_v45 = vmul.u32.u64.high %v1447_v41, %v1446_v21, %v5798_v0 }
 0x2ec   :  { %v3030_v60 = vsel %vm3754_vm11, 0, %v3753_v24  ;;  %v5801_v46 = vmul.u32.u64.low %v1447_v41, %v1442_v63  ;;  %v5802_v6 = vmul.u32.u64.high %v1447_v41, %v1442_v63, %v5801_v46  ;;  %v3073_v30 = vadd.s32 1, %v3755_v53 }
 0x2ed   :  { %v3015_v47 = vadd.s32 %v5726_v19, %v5733_v15  ;;  %v3031_v16 = vsub.s32 32, %v3030_v60  ;;  %v3035_v50 = vsub.s32 4294967266, %v3030_v60  ;;  %v3046_v55 = vsel %vm2961_vm5, %v3045_v8, %v5763_v20 }
 0x2ee   :  { %vm1387_vm10 = vweird.f32 %v5530_v36  ;;  %v1389_v34 = vand.u32 3, %v1388_v18  ;;  %vm5813_vm12 = vcmp.le.f32.partialorder %v2959_v13, 0.7853982  ;;  %v1438_v26 = vsel %vm1432_vm7, %v1435_v37, %v1437_v39 }
 0x2ef   :  { %vm3074_vm13 = vcmp.gt.s32.totalorder %v3073_v30, 0  ;;  %v3032_v19 = vshll.u32 %v5775_v27, %v3030_v60  ;;  %v3033_v15 = vshrl.u32 %v3015_v47, %v3031_v16  ;;  %v3036_v59 = vadd.s32 127, %v3035_v50 }
 0x2f0   :  { %vm1456_vm14 = vc.u32 %v5799_v45, %v5801_v46  ;;  %v3048_v20 = vsel %vm5813_vm12, 0, %v3046_v55  ;;  %v1457_v51 = vadd.s32 1, %v5802_v6  ;;  %v3063_v13 = vand.u32 2147483647, %v5746_v4 }
 0x2f1   :  { %v3075_v56 = vsel %vm3074_vm13, %v3073_v30, 0  ;;  %v3996_v40 = vpop.eup %3995  ;;  %v3034_v9 = vor.u32 %v3033_v15, %v3032_v19  ;;  %v3037_v25 = vshll.u32 %v3036_v59, 23  ;;  %v1454_v62 = vmul.u32 %v1447_v41, %v1438_v26 }
 0x2f2   :  { %v3077_v54 = vand.u32 31, %v3075_v56  ;;  %v3998_v32 = vpop.eup %3997  ;;  %vm1390_vm15 = vcmp.lt.s32.totalorder %v1389_v34, 2  ;;  %vm1391_vm0 = vcmp.eq.s32.totalorder %v1389_v34, 0  ;;  %v1395_v27 = vxor.u32 2147483648, %v3996_v40 }
 0x2f3   :  { %v1458_v2 = vsel %vm1456_vm14, %v1457_v51, %v5802_v6  ;;  %v1392_v22 = vxor.u32 2147483648, %v3998_v32  ;;  %vm1394_vm1 = vcmp.eq.s32.totalorder %v1389_v34, 2  ;;  %v3038_v31 = vor.u32 4788187, %v3037_v25 }
 0x2f4   :  { %v1459_v52 = vadd.s32 %v1458_v2, %v1454_v62  ;;  %v1396_v53 = vsel %vm1394_vm1, %v1395_v27, %v3998_v32  ;;  %v3052_v42 = vadd.s32 3, %v3048_v20  ;;  %v3070_v57 = vand.u32 8388607, %v3063_v13 }
 0x2f5   :  { %v3078_v28 = vsub.s32 32, %v3077_v54  ;;  %v1393_v49 = vsel %vm1391_vm0, %v3996_v40, %v1392_v22  ;;  %v3039_v41 = vand.u32 2147483647, %v3038_v31  ;;  %v3041_v12 = vcvt.s32.f32 %v3034_v9 }
 0x2f6   :  { %v1460_v38 = vadd.s32 536870912, %v1459_v52  ;;  %v1397_v10 = vsel %vm1390_vm15, %v1393_v49, %v1396_v53  ;;  %v5832_v8 = vadd.f32 %v196_v43, %v4168_v23  ;;  %v3076_v63 = vshrl.u32 %v3075_v56, 5 }
 0x2f7   :  { %v3081_v58 = vshrl.u32 %v4067_v1, %v3078_v28  ;;  %v3084_v24 = vshrl.u32 %v4068_v3, %v3078_v28  ;;  %v1398_v11 = vsel %vm1387_vm10, nan, %v1397_v10  ;;  %v3042_v35 = vmul.f32 %v3041_v12, %v3039_v41  ;;  %v244_v41 = vpop.f32.mrf.mxu1 }
 0x2f8   :  { %v5836_v18 = vshrl.u32 %v1460_v38, 30  ;;  %v3087_v37 = vshrl.u32 %v4069_v5, %v3078_v28  ;;  %3593 = vst [vmem:[#allocation2 + $0x50] sm:$0xff] %v1398_v11  ;;  %v3080_v21 = vshll.u32 %v4066_v61, %v3077_v54  ;;  %v3083_v39 = vshll.u32 %v4067_v1, %v3077_v54 }
 0x2f9   :  { %v3090_v0 = vshrl.u32 %v4070_v7, %v3078_v28  ;;  %v3043_v60 = vxor.u32 2147483648, %v3042_v35  ;;  %v3086_v30 = vshll.u32 %v4068_v3, %v3077_v54  ;;  %v3089_v36 = vshll.u32 %v4069_v5, %v3077_v54 }
 0x2fa   :  { %v1462_v6 = vshll.u32 %v5836_v18, 30  ;;  %v3082_v47 = vor.u32 %v3081_v58, %v3080_v21  ;;  %v3085_v16 = vor.u32 %v3084_v24, %v3083_v39  ;;  %v3092_v50 = vshll.u32 %v4070_v7, %v3077_v54 }
 0x2fb   :  { %v3093_v55 = vshrl.u32 %v4071_v14, %v3078_v28  ;;  %v3044_v34 = vsel %vm2961_vm5, %v3043_v60, %v3042_v35  ;;  %v3088_v19 = vor.u32 %v3087_v37, %v3086_v30  ;;  %v3091_v15 = vor.u32 %v3090_v0, %v3089_v36 }
 0x2fc   :  { %v5849_v26 = vsub.s32 %v1459_v52, %v1462_v6  ;;  %v3047_v59 = vsel %vm5813_vm12, %v5601_v44, %v3044_v34  ;;  %v5854_v20 = vand.u32 3, %v3052_v42  ;;  %v3071_v51 = vor.u32 8388608, %v3070_v57 }
 0x2fd   :  { %v3094_v56 = vor.u32 %v3093_v55, %v3092_v50  ;;  %3999 = vcosq.f32 %v3047_v59  ;;  %v3079_v9 = vshrl.u32 %v4066_v61, %v3078_v28  ;;  %v1506_v25 = vand.u32 2139095040, %v5832_v8 }
 0x2fe   :  { %v1465_v40 = vsub.s32 0, %v5849_v26  ;;  %4001 = vsinq.f32 %v3047_v59  ;;  %vm3095_vm2 = vcmp.lt.s32.totalorder %v3076_v63, 1  ;;  %vm3097_vm3 = vcmp.lt.s32.totalorder %v3076_v63, 3 }
 0x2ff   :  { %vm3098_vm4 = vcmp.lt.s32.totalorder %v3076_v63, 4  ;;  %v3103_v17 = vsel %vm3095_vm2, %v3082_v47, %v3085_v16  ;;  %v3107_v2 = vsel %vm3095_vm2, %v3085_v16, %v3088_v19  ;;  %v3111_v31 = vshll.u32 %v3071_v51, 8 }
 0x300   :  { %v3692_v62 = vmin.u32 %v1465_v40, %v5849_v26  ;;  %v3100_v54 = vsel %vm3098_vm4, %v3088_v19, 2102212464  ;;  %v3104_v32 = vsel %vm3098_vm4, %v3091_v15, 920167782  ;;  %v3108_v22 = vsel %vm3098_vm4, %v3094_v56, 1326507024 }
 0x301   :  { %v3105_v27 = vsel %vm3097_vm3, %v3088_v19, %v3104_v32  ;;  %v1485_v43 = vsub.s32 4, %v5836_v18  ;;  %vm3096_vm5 = vcmp.lt.s32.totalorder %v3076_v63, 2  ;;  %v3099_v53 = vsel %vm3095_vm2, %v3079_v9, %v3082_v47 }
 0x302   :  { %v1467_v52 = vclz %v3692_v62  ;;  %v3101_v42 = vsel %vm3097_vm3, %v3085_v16, %v3100_v54  ;;  %v3106_v57 = vsel %vm3096_vm5, %v3103_v17, %v3105_v27  ;;  %v3109_v28 = vsel %vm3097_vm3, %v3091_v15, %v3108_v22 }
 0x303   :  { %v1507_v49 = vshrl.u32 %v1506_v25, 23  ;;  %v3110_v38 = vsel %vm3096_vm5, %v3107_v2, %v3109_v28  ;;  %v5864_v10 = vmul.u32.u64.low %v3111_v31, %v3106_v57  ;;  %v5865_v58 = vmul.u32.u64.high %v3111_v31, %v3106_v57, %v5864_v10 }
 0x304   :  { %v3693_v12 = vadd.s32 4294967294, %v1467_v52  ;;  %vm1401_vm6 = vcmp.lt.s32.totalorder %v5697_v48, 0  ;;  %v5868_v24 = vmul.u32.u64.low %v3111_v31, %v3110_v38  ;;  %v5869_v11 = vmul.u32.u64.high %v3111_v31, %v3110_v38, %v5868_v24 }
 0x305   :  { %v3695_v35 = vadd.s32 4294967169, %v1507_v49  ;;  %vm5873_vm7 = vcmp.le.f32.partialorder %v1399_v33, 0.7853982  ;;  %v3102_v63 = vsel %vm3096_vm5, %v3099_v53, %v3101_v42  ;;  %v5878_v21 = vadd.f32 %v244_v41, %v4168_v23 }
 0x306   :  { %vm3694_vm8 = vcmp.lt.s32.totalorder %v3693_v12, 0  ;;  %vm3054_vm9 = vcmp.lt.s32.totalorder %v5854_v20, 2  ;;  %v1455_v39 = vadd.s32 %v5801_v46, %v5799_v45  ;;  %v1503_v60 = vand.u32 2147483647, %v5832_v8 }
 0x307   :  { %v1470_v0 = vsel %vm3694_vm8, 0, %v3693_v12  ;;  %v1513_v6 = vadd.s32 1, %v3695_v35  ;;  %vm3051_vm11 = vweird.f32 %v5601_v44  ;;  %v1486_v36 = vsel %vm1401_vm6, %v1485_v43, %v5836_v18 }
 0x308   :  { %v1471_v33 = vsub.s32 32, %v1470_v0  ;;  %v1475_v30 = vsub.s32 4294967266, %v1470_v0  ;;  %v3121_v47 = vadd.s32 1, %v5865_v58  ;;  %v1472_v16 = vshll.u32 %v5849_v26, %v1470_v0 }
 0x309   :  { %v3118_v50 = vmul.u32 %v3111_v31, %v3102_v63  ;;  %vm3120_vm10 = vc.u32 %v5869_v11, %v5864_v10  ;;  %vm1514_vm12 = vcmp.gt.s32.totalorder %v1513_v6, 0  ;;  %v1488_v15 = vsel %vm5873_vm7, 0, %v1486_v36 }
 0x30a   :  { %v1473_v45 = vshrl.u32 %v1455_v39, %v1471_v33  ;;  %v1476_v46 = vadd.s32 127, %v1475_v30  ;;  %v3122_v55 = vsel %vm3120_vm10, %v3121_v47, %v5865_v58  ;;  %v1515_v34 = vsel %vm1514_vm12, %v1513_v6, 0  ;;  %v4000_v19 = vpop.eup %3999 }
 0x30b   :  { %v3123_v59 = vadd.s32 %v3122_v55, %v3118_v50  ;;  %v1510_v18 = vand.u32 8388607, %v1503_v60  ;;  %v1517_v51 = vand.u32 31, %v1515_v34  ;;  %v4002_v56 = vpop.eup %4001  ;;  %vm3055_vm13 = vcmp.eq.s32.totalorder %v5854_v20, 0 }
 0x30c   :  { %v3059_v26 = vxor.u32 2147483648, %v4000_v19  ;;  %v1474_v40 = vor.u32 %v1473_v45, %v1472_v16  ;;  %v1477_v9 = vshll.u32 %v1476_v46, 23  ;;  %v3056_v25 = vxor.u32 2147483648, %v4002_v56 }
 0x30d   :  { %vm3058_vm14 = vcmp.eq.s32.totalorder %v5854_v20, 2  ;;  %v3124_v62 = vadd.s32 536870912, %v3123_v59  ;;  %v1518_v54 = vsub.s32 32, %v1517_v51  ;;  %v5898_v27 = vadd.s32 3, %v1488_v15 }
 0x30e   :  { %v3060_v17 = vsel %vm3058_vm14, %v3059_v26, %v4002_v56  ;;  %v1478_v32 = vor.u32 4788187, %v1477_v9  ;;  %v3167_v2 = vand.u32 2147483647, %v5878_v21  ;;  %v3057_v22 = vsel %vm3055_vm13, %v4000_v19, %v3056_v25 }
 0x30f   :  { %v3125_v31 = vshrl.u32 %v3124_v62, 30  ;;  %v1511_v52 = vor.u32 8388608, %v1510_v18  ;;  %v3170_v43 = vand.u32 2139095040, %v5878_v21  ;;  %v3061_v53 = vsel %vm3054_vm9, %v3057_v22, %v3060_v17 }
 0x310   :  { %v1479_v42 = vand.u32 2147483647, %v1478_v32  ;;  %v1481_v57 = vcvt.s32.f32 %v1474_v40  ;;  %v1521_v28 = vshrl.u32 %v4067_v1, %v1518_v54  ;;  %v3062_v49 = vsel %vm3051_vm11, nan, %v3061_v53 }
 0x311   :  { %v5908_v41 = vadd.s32 %v5864_v10, %v5869_v11  ;;  %v3126_v12 = vshll.u32 %v3125_v31, 30  ;;  %v1524_v38 = vshrl.u32 %v4068_v3, %v1518_v54  ;;  %3609 = vst [vmem:[#allocation2 + $0xd0] sm:$0xff] %v3062_v49  ;;  %v1516_v24 = vshrl.u32 %v1515_v34, 5 }
 0x312   :  { %v1482_v58 = vmul.f32 %v1481_v57, %v1479_v42  ;;  %v1520_v35 = vshll.u32 %v4066_v61, %v1517_v51  ;;  %v1527_v20 = vshrl.u32 %v4069_v5, %v1518_v54  ;;  %v1523_v39 = vshll.u32 %v4067_v1, %v1517_v51 }
 0x313   :  { %v5913_v63 = vsub.s32 %v3123_v59, %v3126_v12  ;;  %v1526_v44 = vshll.u32 %v4068_v3, %v1517_v51  ;;  %v1530_v0 = vshrl.u32 %v4070_v7, %v1518_v54  ;;  %v1529_v6 = vshll.u32 %v4069_v5, %v1517_v51 }
 0x314   :  { %v1483_v10 = vxor.u32 2147483648, %v1482_v58  ;;  %v1522_v11 = vor.u32 %v1521_v28, %v1520_v35  ;;  %v1533_v33 = vshrl.u32 %v4071_v14, %v1518_v54  ;;  %vm3065_vm15 = vcmp.lt.s32.totalorder %v5746_v4, 0 }
 0x315   :  { %v3129_v30 = vsub.s32 0, %v5913_v63  ;;  %v1525_v36 = vor.u32 %v1524_v38, %v1523_v39  ;;  %v1528_v47 = vor.u32 %v1527_v20, %v1526_v44  ;;  %v1532_v16 = vshll.u32 %v4070_v7, %v1517_v51 }
 0x316   :  { %v1484_v50 = vsel %vm1401_vm6, %v1483_v10, %v1482_v58  ;;  %v1531_v45 = vor.u32 %v1530_v0, %v1529_v6  ;;  %v1551_v46 = vshll.u32 %v1511_v52, 8  ;;  %v3171_v55 = vshrl.u32 %v3170_v43, 23 }
 0x317   :  { %v1487_v34 = vsel %vm5873_vm7, %v5697_v48, %v1484_v50  ;;  %v3756_v19 = vmin.u32 %v3129_v30, %v5913_v63  ;;  %v1519_v15 = vshrl.u32 %v4066_v61, %v1518_v54  ;;  %v1534_v59 = vor.u32 %v1533_v33, %v1532_v16 }
 0x318   :  { %4003 = vcosq.f32 %v1487_v34  ;;  %v3149_v18 = vsub.s32 4, %v3125_v31  ;;  %vm1535_vm0 = vcmp.lt.s32.totalorder %v1516_v24, 1  ;;  %vm1538_vm1 = vcmp.lt.s32.totalorder %v1516_v24, 4 }
 0x319   :  { %4005 = vsinq.f32 %v1487_v34  ;;  %v3131_v51 = vclz %v3756_v19  ;;  %v1540_v56 = vsel %vm1538_vm1, %v1528_v47, 2102212464  ;;  %v1543_v26 = vsel %vm1535_vm0, %v1522_v11, %v1525_v36 }
 0x31a   :  { %vm1536_vm2 = vcmp.lt.s32.totalorder %v1516_v24, 2  ;;  %vm1537_vm3 = vcmp.lt.s32.totalorder %v1516_v24, 3  ;;  %v1544_v40 = vsel %vm1538_vm1, %v1531_v45, 920167782  ;;  %v1547_v9 = vsel %vm1535_vm0, %v1525_v36, %v1528_v47 }
 0x31b   :  { %v3757_v25 = vadd.s32 4294967294, %v3131_v51  ;;  %v1539_v37 = vsel %vm1535_vm0, %v1519_v15, %v1522_v11  ;;  %v1545_v62 = vsel %vm1537_vm3, %v1528_v47, %v1544_v40  ;;  %v1548_v17 = vsel %vm1538_vm1, %v1534_v59, 1326507024 }
 0x31c   :  { %v1541_v32 = vsel %vm1537_vm3, %v1525_v36, %v1540_v56  ;;  %v1546_v54 = vsel %vm1536_vm2, %v1543_v26, %v1545_v62  ;;  %v1549_v22 = vsel %vm1537_vm3, %v1531_v45, %v1548_v17  ;;  %v3759_v52 = vadd.s32 4294967169, %v3171_v55 }
 0x31d   :  { %vm3758_vm4 = vcmp.lt.s32.totalorder %v3757_v25, 0  ;;  %v1550_v43 = vsel %vm1536_vm2, %v1547_v9, %v1549_v22  ;;  %v5932_v53 = vmul.u32.u64.low %v1551_v46, %v1546_v54  ;;  %v5933_v42 = vmul.u32.u64.high %v1551_v46, %v1546_v54, %v5932_v53 }
 0x31e   :  { %v3134_v57 = vsel %vm3758_vm4, 0, %v3757_v25  ;;  %v3150_v28 = vsel %vm3065_vm15, %v3149_v18, %v3125_v31  ;;  %v5938_v49 = vmul.u32.u64.low %v1551_v46, %v1550_v43  ;;  %v5939_v12 = vmul.u32.u64.high %v1551_v46, %v1550_v43, %v5938_v49 }
 0x31f   :  { %v3135_v38 = vsub.s32 32, %v3134_v57  ;;  %v3139_v58 = vsub.s32 4294967266, %v3134_v57  ;;  %v1542_v35 = vsel %vm1536_vm2, %v1539_v37, %v1541_v32  ;;  %v3177_v20 = vadd.s32 1, %v3759_v52 }
 0x320   :  { %v1493_v39 = vand.u32 3, %v5898_v27  ;;  %vm5945_vm5 = vcmp.le.f32.partialorder %v3063_v13, 0.7853982  ;;  %v3136_v0 = vshll.u32 %v5913_v63, %v3134_v57  ;;  %v1561_v11 = vadd.s32 1, %v5933_v42 }
 0x321   :  { %v3137_v31 = vshrl.u32 %v5908_v41, %v3135_v38  ;;  %v3140_v10 = vadd.s32 127, %v3139_v58  ;;  %vm3178_vm6 = vcmp.gt.s32.totalorder %v3177_v20, 0  ;;  %v3152_v24 = vsel %vm5945_vm5, 0, %v3150_v28  ;;  %v198_v28 = vpop.f32.mrf.mxu0 }
 0x322   :  { %v1558_v6 = vmul.u32 %v1551_v46, %v1542_v35  ;;  %vm1560_vm7 = vc.u32 %v5939_v12, %v5932_v53  ;;  %v3179_v27 = vsel %vm3178_vm6, %v3177_v20, 0  ;;  %v3174_v63 = vand.u32 8388607, %v3167_v2 }
 0x323   :  { %v3138_v13 = vor.u32 %v3137_v31, %v3136_v0  ;;  %v3141_v33 = vshll.u32 %v3140_v10, 23  ;;  %v1562_v30 = vsel %vm1560_vm7, %v1561_v11, %v5933_v42  ;;  %vm1491_vm8 = vweird.f32 %v5697_v48 }
 0x324   :  { %v1563_v41 = vadd.s32 %v1562_v30, %v1558_v6  ;;  %v3181_v36 = vand.u32 31, %v3179_v27  ;;  %vm1494_vm9 = vcmp.lt.s32.totalorder %v1493_v39, 2  ;;  %vm1495_vm11 = vcmp.eq.s32.totalorder %v1493_v39, 0 }
 0x325   :  { %v4004_v47 = vpop.eup %4003  ;;  %vm1498_vm10 = vcmp.eq.s32.totalorder %v1493_v39, 2  ;;  %v3142_v16 = vor.u32 4788187, %v3141_v33  ;;  %v5960_v46 = vadd.s32 3, %v3152_v24  ;;  %v3145_v59 = vcvt.s32.f32 %v3138_v13 }
 0x326   :  { %v4006_v50 = vpop.eup %4005  ;;  %v1499_v45 = vxor.u32 2147483648, %v4004_v47  ;;  %v1564_v55 = vadd.s32 536870912, %v1563_v41  ;;  %v3182_v34 = vsub.s32 32, %v3181_v36  ;;  %v3175_v18 = vor.u32 8388608, %v3174_v63 }
 0x327   :  { %v1496_v19 = vxor.u32 2147483648, %v4006_v50  ;;  %v3143_v15 = vand.u32 2147483647, %v3142_v16  ;;  %v3184_v26 = vshll.u32 %v4066_v61, %v3181_v36  ;;  %v3180_v54 = vshrl.u32 %v3179_v27, 5 }
 0x328   :  { %v1500_v51 = vsel %vm1498_vm10, %v1499_v45, %v4006_v50  ;;  %v1565_v56 = vshrl.u32 %v1564_v55, 30  ;;  %v3185_v40 = vshrl.u32 %v4067_v1, %v3182_v34  ;;  %v3188_v37 = vshrl.u32 %v4068_v3, %v3182_v34 }
 0x329   :  { %v1497_v9 = vsel %vm1495_vm11, %v4004_v47, %v1496_v19  ;;  %v3146_v25 = vmul.f32 %v3145_v59, %v3143_v15  ;;  %v3191_v62 = vshrl.u32 %v4069_v5, %v3182_v34  ;;  %v3187_v22 = vshll.u32 %v4067_v1, %v3181_v36 }
 0x32a   :  { %v1501_v17 = vsel %vm1494_vm9, %v1497_v9, %v1500_v51  ;;  %v1566_v32 = vshll.u32 %v1565_v56, 30  ;;  %vm1505_vm12 = vcmp.lt.s32.totalorder %v5832_v8, 0  ;;  %v3186_v42 = vor.u32 %v3185_v40, %v3184_v26  ;;  %v246_v51 = vpop.f32.mrf.mxu1 }
 0x32b   :  { %v1502_v52 = vsel %vm1491_vm8, nan, %v1501_v17  ;;  %v3147_v43 = vxor.u32 2147483648, %v3146_v25  ;;  %v3190_v57 = vshll.u32 %v4068_v3, %v3181_v36  ;;  %v3189_v38 = vor.u32 %v3188_v37, %v3187_v22 }
 0x32c   :  { %3594 = vst [vmem:[#allocation2 + $0x58] sm:$0xff] %v1502_v52  ;;  %v5973_v49 = vsub.s32 %v1563_v41, %v1566_v32  ;;  %v3193_v58 = vshll.u32 %v4069_v5, %v3181_v36  ;;  %v3194_v35 = vshrl.u32 %v4070_v7, %v3182_v34  ;;  %v3196_v39 = vshll.u32 %v4070_v7, %v3181_v36 }
 0x32d   :  { %v3148_v20 = vsel %vm3065_vm15, %v3147_v43, %v3146_v25  ;;  %v3192_v48 = vor.u32 %v3191_v62, %v3190_v57  ;;  %v3197_v0 = vshrl.u32 %v4071_v14, %v3182_v34  ;;  %v5986_v24 = vadd.f32 %v198_v28, %v4176_v29 }
 0x32e   :  { %v3151_v31 = vsel %vm5945_vm5, %v5746_v4, %v3148_v20  ;;  %v1569_v10 = vsub.s32 0, %v5973_v49  ;;  %v3195_v11 = vor.u32 %v3194_v35, %v3193_v58  ;;  %v3183_v6 = vshrl.u32 %v4066_v61, %v3182_v34 }
 0x32f   :  { %4007 = vcosq.f32 %v3151_v31  ;;  %v3198_v27 = vor.u32 %v3197_v0, %v3196_v39  ;;  %vm3199_vm13 = vcmp.lt.s32.totalorder %v3180_v54, 1  ;;  %v1589_v33 = vsub.s32 4, %v1565_v56 }
 0x330   :  { %4009 = vsinq.f32 %v3151_v31  ;;  %v3696_v13 = vmin.u32 %v1569_v10, %v5973_v49  ;;  %vm3202_vm14 = vcmp.lt.s32.totalorder %v3180_v54, 4  ;;  %v3207_v63 = vsel %vm3199_vm13, %v3186_v42, %v3189_v38 }
 0x331   :  { %v3204_v30 = vsel %vm3202_vm14, %v3192_v48, 2102212464  ;;  %v3208_v44 = vsel %vm3202_vm14, %v3195_v11, 920167782  ;;  %v3215_v41 = vshll.u32 %v3175_v18, 8  ;;  %vm3201_vm15 = vcmp.lt.s32.totalorder %v3180_v54, 3 }
 0x332   :  { %v1571_v36 = vclz %v3696_v13  ;;  %v3203_v47 = vsel %vm3199_vm13, %v3183_v6, %v3186_v42  ;;  %v3211_v16 = vsel %vm3199_vm13, %v3189_v38, %v3192_v48  ;;  %vm3200_vm0 = vcmp.lt.s32.totalorder %v3180_v54, 2 }
 0x333   :  { %v3205_v50 = vsel %vm3201_vm15, %v3189_v38, %v3204_v30  ;;  %v3209_v45 = vsel %vm3201_vm15, %v3192_v48, %v3208_v44  ;;  %v3212_v55 = vsel %vm3202_vm14, %v3198_v27, 1326507024  ;;  %v1590_v19 = vsel %vm1505_vm12, %v1589_v33, %v1565_v56 }
 0x334   :  { %v3697_v34 = vadd.s32 4294967294, %v1571_v36  ;;  %v3210_v15 = vsel %vm3200_vm0, %v3207_v63, %v3209_v45  ;;  %v3213_v59 = vsel %vm3201_vm15, %v3195_v11, %v3212_v55  ;;  %v3206_v26 = vsel %vm3200_vm0, %v3203_v47, %v3205_v50 }
 0x335   :  { %v3214_v40 = vsel %vm3200_vm0, %v3211_v16, %v3213_v59  ;;  %v5992_v9 = vmul.u32.u64.low %v3215_v41, %v3210_v15  ;;  %v5993_v25 = vmul.u32.u64.high %v3215_v41, %v3210_v15, %v5992_v9  ;;  %v1610_v62 = vand.u32 2139095040, %v5986_v24 }
 0x336   :  { %vm3698_vm1 = vcmp.lt.s32.totalorder %v3697_v34, 0  ;;  %v5996_v18 = vmul.u32.u64.low %v3215_v41, %v3214_v40  ;;  %v5997_v37 = vmul.u32.u64.high %v3215_v41, %v3214_v40, %v5996_v18  ;;  %v3157_v17 = vand.u32 3, %v5960_v46 }
 0x337   :  { %vm6003_vm2 = vcmp.le.f32.partialorder %v1503_v60, 0.7853982  ;;  %v1574_v32 = vsel %vm3698_vm1, 0, %v3697_v34  ;;  %v6008_v54 = vadd.f32 %v246_v51, %v4176_v29  ;;  %v1559_v22 = vadd.s32 %v5932_v53, %v5939_v12 }
 0x338   :  { %v1575_v52 = vsub.s32 32, %v1574_v32  ;;  %v1579_v43 = vsub.s32 4294967266, %v1574_v32  ;;  %v1611_v42 = vshrl.u32 %v1610_v62, 23  ;;  %v1592_v57 = vsel %vm6003_vm2, 0, %v1590_v19 }
 0x339   :  { %v3222_v46 = vmul.u32 %v3215_v41, %v3206_v26  ;;  %v3225_v28 = vadd.s32 1, %v5993_v25  ;;  %v1607_v60 = vand.u32 2147483647, %v5986_v24  ;;  %v1576_v38 = vshll.u32 %v5973_v49, %v1574_v32 }
 0x33a   :  { %v1577_v58 = vshrl.u32 %v1559_v22, %v1575_v52  ;;  %v1580_v35 = vadd.s32 127, %v1579_v43  ;;  %vm3224_vm3 = vc.u32 %v5997_v37, %v5992_v9  ;;  %vm3158_vm4 = vcmp.lt.s32.totalorder %v3157_v17, 2 }
 0x33b   :  { %v3226_v53 = vsel %vm3224_vm3, %v3225_v28, %v5993_v25  ;;  %v3699_v12 = vadd.s32 4294967169, %v1611_v42  ;;  %v3274_v20 = vand.u32 2139095040, %v6008_v54  ;;  %vm3159_vm5 = vcmp.eq.s32.totalorder %v3157_v17, 0 }
 0x33c   :  { %v4008_v48 = vpop.eup %4007  ;;  %v1578_v39 = vor.u32 %v1577_v58, %v1576_v38  ;;  %v1581_v0 = vshll.u32 %v1580_v35, 23  ;;  %v3227_v31 = vadd.s32 %v3226_v53, %v3222_v46  ;;  %vm3162_vm6 = vcmp.eq.s32.totalorder %v3157_v17, 2 }
 0x33d   :  { %v4010_v10 = vpop.eup %4009  ;;  %v3163_v11 = vxor.u32 2147483648, %v4008_v48  ;;  %v1596_v49 = vadd.s32 3, %v1592_v57  ;;  %v1617_v6 = vadd.s32 1, %v3699_v12  ;;  %v1614_v30 = vand.u32 8388607, %v1607_v60 }
 0x33e   :  { %v3160_v27 = vxor.u32 2147483648, %v4010_v10  ;;  %v1582_v13 = vor.u32 4788187, %v1581_v0  ;;  %v3228_v33 = vadd.s32 536870912, %v3227_v31  ;;  %v1585_v44 = vcvt.s32.f32 %v1578_v39 }
 0x33f   :  { %v3164_v63 = vsel %vm3162_vm6, %v3163_v11, %v4010_v10  ;;  %vm1618_vm7 = vcmp.gt.s32.totalorder %v1617_v6, 0  ;;  %v3275_v41 = vshrl.u32 %v3274_v20, 23  ;;  %vm3155_vm8 = vweird.f32 %v5746_v4 }
 0x340   :  { %v3161_v36 = vsel %vm3159_vm5, %v4008_v48, %v3160_v27  ;;  %v1583_v47 = vand.u32 2147483647, %v1582_v13  ;;  %v3229_v16 = vshrl.u32 %v3228_v33, 30  ;;  %v1619_v50 = vsel %vm1618_vm7, %v1617_v6, 0 }
 0x341   :  { %v3165_v45 = vsel %vm3158_vm4, %v3161_v36, %v3164_v63  ;;  %v1621_v55 = vand.u32 31, %v1619_v50  ;;  %v6026_v15 = vand.u32 3, %v1596_v49  ;;  %vm3169_vm9 = vcmp.lt.s32.totalorder %v5878_v21, 0 }
 0x342   :  { %v3166_v34 = vsel %vm3155_vm8, nan, %v3165_v45  ;;  %v1586_v19 = vmul.f32 %v1585_v44, %v1583_v47  ;;  %v3230_v59 = vshll.u32 %v3229_v16, 30  ;;  %v1615_v51 = vor.u32 8388608, %v1614_v30 }
 0x343   :  { %3610 = vst [vmem:[#allocation2 + $0xd8] sm:$0xff] %v3166_v34  ;;  %v1622_v26 = vsub.s32 32, %v1621_v55  ;;  %v3271_v40 = vand.u32 2147483647, %v6008_v54  ;;  %v3763_v25 = vadd.s32 4294967169, %v3275_v41  ;;  %v3253_v4 = vsub.s32 4, %v3229_v16 }
 0x344   :  { %v1587_v18 = vxor.u32 2147483648, %v1586_v19  ;;  %v6030_v62 = vsub.s32 %v3227_v31, %v3230_v59  ;;  %v1620_v17 = vshrl.u32 %v1619_v50, 5  ;;  %v1624_v32 = vshll.u32 %v4066_v61, %v1621_v55 }
 0x345   :  { %v1625_v22 = vshrl.u32 %v4067_v1, %v1622_v26  ;;  %v1627_v52 = vshll.u32 %v4067_v1, %v1621_v55  ;;  %v1628_v43 = vshrl.u32 %v4068_v3, %v1622_v26  ;;  %vm6040_vm11 = vcmp.le.f32.partialorder %v3167_v2, 0.7853982 }
 0x346   :  { %v1588_v42 = vsel %vm1505_vm12, %v1587_v18, %v1586_v19  ;;  %v3233_v46 = vsub.s32 0, %v6030_v62  ;;  %v1630_v28 = vshll.u32 %v4068_v3, %v1621_v55  ;;  %v1631_v38 = vshrl.u32 %v4069_v5, %v1622_v26 }
 0x347   :  { %v1591_v58 = vsel %vm6003_vm2, %v5832_v8, %v1588_v42  ;;  %v1626_v35 = vor.u32 %v1625_v22, %v1624_v32  ;;  %v1633_v53 = vshll.u32 %v4069_v5, %v1621_v55  ;;  %v1634_v12 = vshrl.u32 %v4070_v7, %v1622_v26 }
 0x348   :  { %4011 = vcosq.f32 %v1591_v58  ;;  %v3760_v2 = vmin.u32 %v3233_v46, %v6030_v62  ;;  %v1629_v20 = vor.u32 %v1628_v43, %v1627_v52  ;;  %v1632_v48 = vor.u32 %v1631_v38, %v1630_v28 }
 0x349   :  { %4013 = vsinq.f32 %v1591_v58  ;;  %v1635_v39 = vor.u32 %v1634_v12, %v1633_v53  ;;  %v1636_v0 = vshll.u32 %v4070_v7, %v1621_v55  ;;  %v1637_v31 = vshrl.u32 %v4071_v14, %v1622_v26 }
 0x34a   :  { %v3223_v56 = vadd.s32 %v5992_v9, %v5997_v37  ;;  %v3235_v10 = vclz %v3760_v2  ;;  %v1655_v11 = vshll.u32 %v1615_v51, 8  ;;  %v3281_v49 = vadd.s32 1, %v3763_v25 }
 0x34b   :  { %v3254_v6 = vsel %vm3169_vm9, %v3253_v4, %v3229_v16  ;;  %v1623_v27 = vshrl.u32 %v4066_v61, %v1622_v26  ;;  %v1638_v13 = vor.u32 %v1637_v31, %v1636_v0  ;;  %vm1639_vm10 = vcmp.lt.s32.totalorder %v1620_v17, 1 }
 0x34c   :  { %v3761_v33 = vadd.s32 4294967294, %v3235_v10  ;;  %vm1641_vm12 = vcmp.lt.s32.totalorder %v1620_v17, 3  ;;  %vm1642_vm13 = vcmp.lt.s32.totalorder %v1620_v17, 4  ;;  %v1647_v30 = vsel %vm1639_vm10, %v1626_v35, %v1629_v20 }
 0x34d   :  { %v1644_v63 = vsel %vm1642_vm13, %v1632_v48, 2102212464  ;;  %v1648_v44 = vsel %vm1642_vm13, %v1635_v39, 920167782  ;;  %v1651_v41 = vsel %vm1639_vm10, %v1629_v20, %v1632_v48  ;;  %v1652_v9 = vsel %vm1642_vm13, %v1638_v13, 1326507024 }
 0x34e   :  { %vm3762_vm14 = vcmp.lt.s32.totalorder %v3761_v33, 0  ;;  %vm1640_vm15 = vcmp.lt.s32.totalorder %v1620_v17, 2  ;;  %v1649_v37 = vsel %vm1641_vm12, %v1632_v48, %v1648_v44  ;;  %v1653_v36 = vsel %vm1641_vm12, %v1635_v39, %v1652_v9 }
 0x34f   :  { %v3238_v47 = vsel %vm3762_vm14, 0, %v3761_v33  ;;  %v3256_v16 = vsel %vm6040_vm11, 0, %v3254_v6  ;;  %v1650_v50 = vsel %vm1640_vm15, %v1647_v30, %v1649_v37  ;;  %v1654_v45 = vsel %vm1640_vm15, %v1651_v41, %v1653_v36 }
 0x350   :  { %v3239_v55 = vsub.s32 32, %v3238_v47  ;;  %v3243_v34 = vsub.s32 4294967266, %v3238_v47  ;;  %v1643_v19 = vsel %vm1639_vm10, %v1623_v27, %v1626_v35  ;;  %v1645_v59 = vsel %vm1641_vm12, %v1629_v20, %v1644_v63 }
 0x351   :  { %v6070_v51 = vmul.u32.u64.low %v1655_v11, %v1654_v45  ;;  %v6071_v26 = vmul.u32.u64.high %v1655_v11, %v1654_v45, %v6070_v51  ;;  %v6073_v25 = vmul.u32.u64.low %v1655_v11, %v1650_v50  ;;  %v6074_v18 = vmul.u32.u64.high %v1655_v11, %v1650_v50, %v6073_v25 }
 0x352   :  { %vm1595_vm0 = vweird.f32 %v5832_v8  ;;  %v3240_v4 = vshll.u32 %v6030_v62, %v3238_v47  ;;  %v3241_v32 = vshrl.u32 %v3223_v56, %v3239_v55  ;;  %v3244_v22 = vadd.s32 127, %v3243_v34  ;;  %v202_v55 = vpop.f32.mrf.mxu0 }
 0x353   :  { %vm3282_vm1 = vcmp.gt.s32.totalorder %v3281_v49, 0  ;;  %v3260_v52 = vadd.s32 3, %v3256_v16  ;;  %v1646_v43 = vsel %vm1640_vm15, %v1643_v19, %v1645_v59  ;;  %v3278_v42 = vand.u32 8388607, %v3271_v40 }
 0x354   :  { %v3283_v46 = vsel %vm3282_vm1, %v3281_v49, 0  ;;  %vm1598_vm2 = vcmp.lt.s32.totalorder %v6026_v15, 2  ;;  %v3242_v28 = vor.u32 %v3241_v32, %v3240_v4  ;;  %v3245_v38 = vshll.u32 %v3244_v22, 23 }
 0x355   :  { %v3285_v58 = vand.u32 31, %v3283_v46  ;;  %v4012_v35 = vpop.eup %4011  ;;  %vm1599_vm3 = vcmp.eq.s32.totalorder %v6026_v15, 0  ;;  %vm1602_vm4 = vcmp.eq.s32.totalorder %v6026_v15, 2  ;;  %vm1664_vm5 = vc.u32 %v6071_v26, %v6073_v25 }
 0x356   :  { %v1665_v62 = vadd.s32 1, %v6074_v18  ;;  %v4014_v17 = vpop.eup %4013  ;;  %v1603_v53 = vxor.u32 2147483648, %v4012_v35  ;;  %v3246_v12 = vor.u32 4788187, %v3245_v38  ;;  %v1662_v2 = vmul.u32 %v1655_v11, %v1646_v43 }
 0x357   :  { %v3286_v20 = vsub.s32 32, %v3285_v58  ;;  %v1600_v48 = vxor.u32 2147483648, %v4014_v17  ;;  %v6088_v39 = vand.u32 3, %v3260_v52  ;;  %v3279_v31 = vor.u32 8388608, %v3278_v42 }
 0x358   :  { %v1666_v0 = vsel %vm1664_vm5, %v1665_v62, %v6074_v18  ;;  %v1604_v56 = vsel %vm1602_vm4, %v1603_v53, %v4014_v17  ;;  %v3247_v10 = vand.u32 2147483647, %v3246_v12  ;;  %v3249_v49 = vcvt.s32.f32 %v3242_v28 }
 0x359   :  { %v1667_v6 = vadd.s32 %v1666_v0, %v1662_v2  ;;  %v1601_v27 = vsel %vm1599_vm3, %v4012_v35, %v1600_v48  ;;  %v3284_v13 = vshrl.u32 %v3283_v46, 5  ;;  %v3289_v33 = vshrl.u32 %v4067_v1, %v3286_v20 }
 0x35a   :  { %v3292_v30 = vshrl.u32 %v4068_v3, %v3286_v20  ;;  %v1605_v11 = vsel %vm1598_vm2, %v1601_v27, %v1604_v56  ;;  %v3250_v63 = vmul.f32 %v3249_v49, %v3247_v10  ;;  %v3295_v41 = vshrl.u32 %v4069_v5, %v3286_v20 }
 0x35b   :  { %v1668_v44 = vadd.s32 536870912, %v1667_v6  ;;  %v1606_v9 = vsel %vm1595_vm0, nan, %v1605_v11  ;;  %v3288_v37 = vshll.u32 %v4066_v61, %v3285_v58  ;;  %v3291_v36 = vshll.u32 %v4067_v1, %v3285_v58 }
 0x35c   :  { %v3294_v47 = vshll.u32 %v4068_v3, %v3285_v58  ;;  %3595 = vst [vmem:[#allocation2 + $0x60] sm:$0xff] %v1606_v9  ;;  %v3251_v16 = vxor.u32 2147483648, %v3250_v63  ;;  %v3297_v45 = vshll.u32 %v4069_v5, %v3285_v58  ;;  %v3298_v15 = vshrl.u32 %v4070_v7, %v3286_v20 }
 0x35d   :  { %v1669_v50 = vshrl.u32 %v1668_v44, 30  ;;  %v3290_v34 = vor.u32 %v3289_v33, %v3288_v37  ;;  %v3293_v19 = vor.u32 %v3292_v30, %v3291_v36  ;;  %v3300_v59 = vshll.u32 %v4070_v7, %v3285_v58 }
 0x35e   :  { %v3301_v8 = vshrl.u32 %v4071_v14, %v3286_v20  ;;  %v3252_v51 = vsel %vm3169_vm9, %v3251_v16, %v3250_v63  ;;  %v3296_v4 = vor.u32 %v3295_v41, %v3294_v47  ;;  %v3299_v32 = vor.u32 %v3298_v15, %v3297_v45 }
 0x35f   :  { %v1670_v18 = vshll.u32 %v1669_v50, 30  ;;  %v3255_v22 = vsel %vm6040_vm11, %v5878_v21, %v3252_v51  ;;  %v3319_v43 = vshll.u32 %v3279_v31, 8  ;;  %v6113_v42 = vadd.f32 %v202_v55, %v4168_v23  ;;  %v250_v31 = vpop.f32.mrf.mxu1 }
 0x360   :  { %v3302_v52 = vor.u32 %v3301_v8, %v3300_v59  ;;  %4015 = vcosq.f32 %v3255_v22  ;;  %v3287_v28 = vshrl.u32 %v4066_v61, %v3286_v20  ;;  %vm3303_vm6 = vcmp.lt.s32.totalorder %v3284_v13, 1 }
 0x361   :  { %v6115_v46 = vsub.s32 %v1667_v6, %v1670_v18  ;;  %4017 = vsinq.f32 %v3255_v22  ;;  %vm3304_vm7 = vcmp.lt.s32.totalorder %v3284_v13, 2  ;;  %vm3306_vm8 = vcmp.lt.s32.totalorder %v3284_v13, 4 }
 0x362   :  { %v3311_v38 = vsel %vm3303_vm6, %v3290_v34, %v3293_v19  ;;  %vm3305_vm9 = vcmp.lt.s32.totalorder %v3284_v13, 3  ;;  %v3308_v57 = vsel %vm3306_vm8, %v3296_v4, 2102212464  ;;  %v3312_v35 = vsel %vm3306_vm8, %v3299_v32, 920167782 }
 0x363   :  { %v1673_v58 = vsub.s32 0, %v6115_v46  ;;  %v1693_v62 = vsub.s32 4, %v1669_v50  ;;  %v3313_v17 = vsel %vm3305_vm9, %v3296_v4, %v3312_v35  ;;  %v3315_v53 = vsel %vm3303_vm6, %v3293_v19, %v3296_v4 }
 0x364   :  { %v3316_v12 = vsel %vm3306_vm8, %v3302_v52, 1326507024  ;;  %v3307_v48 = vsel %vm3303_vm6, %v3287_v28, %v3290_v34  ;;  %v3314_v0 = vsel %vm3304_vm7, %v3311_v38, %v3313_v17  ;;  %v3309_v56 = vsel %vm3305_vm9, %v3293_v19, %v3308_v57 }
 0x365   :  { %v3700_v2 = vmin.u32 %v1673_v58, %v6115_v46  ;;  %v3317_v20 = vsel %vm3305_vm9, %v3299_v32, %v3316_v12  ;;  %v6122_v49 = vmul.u32.u64.low %v3319_v43, %v3314_v0  ;;  %v6123_v6 = vmul.u32.u64.high %v3319_v43, %v3314_v0, %v6122_v49 }
 0x366   :  { %v3318_v10 = vsel %vm3304_vm7, %v3315_v53, %v3317_v20  ;;  %vm1609_vm11 = vcmp.lt.s32.totalorder %v5986_v24, 0  ;;  %v6131_v11 = vadd.f32 %v250_v31, %v4168_v23  ;;  %vm6135_vm10 = vcmp.le.f32.partialorder %v1607_v60, 0.7853982  ;;  %v204_v20 = vpop.f32.mrf.mxu0 }
 0x367   :  { %v1675_v27 = vclz %v3700_v2  ;;  %v6127_v33 = vmul.u32.u64.low %v3319_v43, %v3318_v10  ;;  %v6128_v30 = vmul.u32.u64.high %v3319_v43, %v3318_v10, %v6127_v33  ;;  %v3310_v41 = vsel %vm3304_vm7, %v3307_v48, %v3309_v56 }
 0x368   :  { %v1714_v9 = vand.u32 2139095040, %v6113_v42  ;;  %vm3262_vm12 = vcmp.lt.s32.totalorder %v6088_v39, 2  ;;  %vm3263_vm13 = vcmp.eq.s32.totalorder %v6088_v39, 0  ;;  %v1694_v37 = vsel %vm1609_vm11, %v1693_v62, %v1669_v50 }
 0x369   :  { %v3701_v44 = vadd.s32 4294967294, %v1675_v27  ;;  %v3329_v23 = vadd.s32 1, %v6123_v6  ;;  %v1711_v36 = vand.u32 2147483647, %v6113_v42  ;;  %vm3259_vm14 = vweird.f32 %v5878_v21 }
 0x36a   :  { %vm3266_vm15 = vcmp.eq.s32.totalorder %v6088_v39, 2  ;;  %v1663_v60 = vadd.s32 %v6073_v25, %v6071_v26  ;;  %v1715_v13 = vshrl.u32 %v1714_v9, 23  ;;  %v3326_v16 = vmul.u32 %v3319_v43, %v3310_v41 }
 0x36b   :  { %vm3702_vm0 = vcmp.lt.s32.totalorder %v3701_v44, 0  ;;  %vm3328_vm1 = vc.u32 %v6128_v30, %v6122_v49  ;;  %v3378_v50 = vand.u32 2139095040, %v6131_v11  ;;  %v1696_v55 = vsel %vm6135_vm10, 0, %v1694_v37 }
 0x36c   :  { %v1678_v47 = vsel %vm3702_vm0, 0, %v3701_v44  ;;  %v3330_v34 = vsel %vm3328_vm1, %v3329_v23, %v6123_v6  ;;  %v3703_v8 = vadd.s32 4294967169, %v1715_v13  ;;  %v1718_v26 = vand.u32 8388607, %v1711_v36 }
 0x36d   :  { %v1679_v45 = vsub.s32 32, %v1678_v47  ;;  %v1683_v15 = vsub.s32 4294967266, %v1678_v47  ;;  %v4016_v19 = vpop.eup %4015  ;;  %v3331_v59 = vadd.s32 %v3330_v34, %v3326_v16  ;;  %v3375_v25 = vand.u32 2147483647, %v6131_v11 }
 0x36e   :  { %v4018_v51 = vpop.eup %4017  ;;  %v3267_v18 = vxor.u32 2147483648, %v4016_v19  ;;  %v1680_v4 = vshll.u32 %v6115_v46, %v1678_v47  ;;  %v1721_v28 = vadd.s32 1, %v3703_v8  ;;  %v3379_v38 = vshrl.u32 %v3378_v50, 23 }
 0x36f   :  { %v1681_v32 = vshrl.u32 %v1663_v60, %v1679_v45  ;;  %v1684_v22 = vadd.s32 127, %v1683_v15  ;;  %v3264_v52 = vxor.u32 2147483648, %v4018_v51  ;;  %v3332_v43 = vadd.s32 536870912, %v3331_v59 }
 0x370   :  { %v3268_v58 = vsel %vm3266_vm15, %v3267_v18, %v4018_v51  ;;  %v1700_v62 = vadd.s32 3, %v1696_v55  ;;  %v1719_v12 = vor.u32 8388608, %v1718_v26  ;;  %vm1722_vm2 = vcmp.gt.s32.totalorder %v1721_v28, 0 }
 0x371   :  { %v1682_v57 = vor.u32 %v1681_v32, %v1680_v4  ;;  %v1685_v35 = vshll.u32 %v1684_v22, 23  ;;  %v3265_v17 = vsel %vm3263_vm13, %v4016_v19, %v3264_v52  ;;  %v6165_v53 = vshrl.u32 %v3332_v43, 30 }
 0x372   :  { %v3269_v46 = vsel %vm3262_vm12, %v3265_v17, %v3268_v58  ;;  %v1723_v48 = vsel %vm1722_vm2, %v1721_v28, 0  ;;  %v6171_v0 = vand.u32 8388607, %v3375_v25  ;;  %v3767_v10 = vadd.s32 4294967169, %v3379_v38 }
 0x373   :  { %v1686_v2 = vor.u32 4788187, %v1685_v35  ;;  %v3270_v31 = vsel %vm3259_vm14, nan, %v3269_v46  ;;  %v3334_v56 = vshll.u32 %v6165_v53, 30  ;;  %v1689_v27 = vcvt.s32.f32 %v1682_v57 }
 0x374   :  { %3611 = vst [vmem:[#allocation2 + $0xe0] sm:$0xff] %v3270_v31  ;;  %v1725_v33 = vand.u32 31, %v1723_v48  ;;  %v6176_v44 = vand.u32 3, %v1700_v62  ;;  %v3327_v39 = vadd.s32 %v6122_v49, %v6128_v30  ;;  %v6183_v9 = vadd.f32 %v204_v20, %v4176_v29 }
 0x375   :  { %v1687_v6 = vand.u32 2147483647, %v1686_v2  ;;  %v6180_v41 = vsub.s32 %v3331_v59, %v3334_v56  ;;  %v6185_v23 = vshll.u32 %v1719_v12, 8  ;;  %v3383_v60 = vor.u32 8388608, %v6171_v0 }
 0x376   :  { %v1726_v21 = vsub.s32 32, %v1725_v33  ;;  %v1724_v47 = vshrl.u32 %v1723_v48, 5  ;;  %v1728_v16 = vshll.u32 %v4066_v61, %v1725_v33  ;;  %v3385_v50 = vadd.s32 1, %v3767_v10 }
 0x377   :  { %v1690_v37 = vmul.f32 %v1689_v27, %v1687_v6  ;;  %v3337_v13 = vsub.s32 0, %v6180_v41  ;;  %v1731_v30 = vshll.u32 %v4067_v1, %v1725_v33  ;;  %v1734_v34 = vshll.u32 %v4068_v3, %v1725_v33 }
 0x378   :  { %v1729_v49 = vshrl.u32 %v4067_v1, %v1726_v21  ;;  %v1732_v15 = vshrl.u32 %v4068_v3, %v1726_v21  ;;  %v1735_v19 = vshrl.u32 %v4069_v5, %v1726_v21  ;;  %v1737_v59 = vshll.u32 %v4069_v5, %v1725_v33 }
 0x379   :  { %v1691_v45 = vxor.u32 2147483648, %v1690_v37  ;;  %v3764_v55 = vmin.u32 %v3337_v13, %v6180_v41  ;;  %v1738_v18 = vshrl.u32 %v4070_v7, %v1726_v21  ;;  %v3357_v22 = vsub.s32 4, %v6165_v53 }
 0x37a   :  { %v1730_v26 = vor.u32 %v1729_v49, %v1728_v16  ;;  %v1733_v51 = vor.u32 %v1732_v15, %v1731_v30  ;;  %vm3386_vm3 = vcmp.gt.s32.totalorder %v3385_v50, 0  ;;  %v1736_v52 = vor.u32 %v1735_v19, %v1734_v34 }
 0x37b   :  { %v1692_v8 = vsel %vm1609_vm11, %v1691_v45, %v1690_v37  ;;  %v3339_v32 = vclz %v3764_v55  ;;  %v1739_v43 = vor.u32 %v1738_v18, %v1737_v59  ;;  %vm1743_vm4 = vcmp.lt.s32.totalorder %v1724_v47, 1 }
 0x37c   :  { %v1695_v4 = vsel %vm6135_vm10, %v5986_v24, %v1692_v8  ;;  %vm3273_vm5 = vcmp.lt.s32.totalorder %v6008_v54, 0  ;;  %v1740_v38 = vshll.u32 %v4070_v7, %v1725_v33  ;;  %v1741_v58 = vshrl.u32 %v4071_v14, %v1726_v21 }
 0x37d   :  { %4019 = vcosq.f32 %v1695_v4  ;;  %v3765_v28 = vadd.s32 4294967294, %v3339_v32  ;;  %v1727_v57 = vshrl.u32 %v4066_v61, %v1726_v21  ;;  %vm1745_vm6 = vcmp.lt.s32.totalorder %v1724_v47, 3 }
 0x37e   :  { %4021 = vsinq.f32 %v1695_v4  ;;  %vm1746_vm7 = vcmp.lt.s32.totalorder %v1724_v47, 4  ;;  %v1751_v63 = vsel %vm1743_vm4, %v1730_v26, %v1733_v51  ;;  %v1742_v35 = vor.u32 %v1741_v58, %v1740_v38 }
 0x37f   :  { %vm3766_vm8 = vcmp.lt.s32.totalorder %v3765_v28, 0  ;;  %v1748_v62 = vsel %vm1746_vm7, %v1736_v52, 2102212464  ;;  %v1752_v17 = vsel %vm1746_vm7, %v1739_v43, 920167782  ;;  %v1747_v46 = vsel %vm1743_vm4, %v1727_v57, %v1730_v26 }
 0x380   :  { %v3342_v12 = vsel %vm3766_vm8, 0, %v3765_v28  ;;  %v1749_v2 = vsel %vm1745_vm6, %v1733_v51, %v1748_v62  ;;  %v1753_v48 = vsel %vm1745_vm6, %v1736_v52, %v1752_v17  ;;  %vm1744_vm9 = vcmp.lt.s32.totalorder %v1724_v47, 2 }
 0x381   :  { %v3343_v20 = vsub.s32 32, %v3342_v12  ;;  %v3347_v31 = vsub.s32 4294967266, %v3342_v12  ;;  %v1755_v56 = vsel %vm1743_vm4, %v1733_v51, %v1736_v52  ;;  %v3344_v10 = vshll.u32 %v6180_v41, %v3342_v12 }
 0x382   :  { %v1754_v6 = vsel %vm1744_vm9, %v1751_v63, %v1753_v48  ;;  %v1756_v27 = vsel %vm1746_vm7, %v1742_v35, 1326507024  ;;  %v3387_v33 = vsel %vm3386_vm3, %v3385_v50, 0  ;;  %v1750_v13 = vsel %vm1744_vm9, %v1747_v46, %v1749_v2 }
 0x383   :  { %v3345_v37 = vshrl.u32 %v3327_v39, %v3343_v20  ;;  %v3348_v21 = vadd.s32 127, %v3347_v31  ;;  %v1757_v16 = vsel %vm1745_vm6, %v1739_v43, %v1756_v27  ;;  %vm1703_vm11 = vcmp.eq.s32.totalorder %v6176_v44, 0 }
 0x384   :  { %v1758_v45 = vsel %vm1744_vm9, %v1755_v56, %v1757_v16  ;;  %v6221_v49 = vmul.u32.u64.low %v6185_v23, %v1754_v6  ;;  %v6222_v30 = vmul.u32.u64.high %v6185_v23, %v1754_v6, %v6221_v49  ;;  %v3389_v15 = vand.u32 31, %v3387_v33 }
 0x385   :  { %vm1702_vm10 = vcmp.lt.s32.totalorder %v6176_v44, 2  ;;  %vm6228_vm12 = vcmp.le.f32.partialorder %v3271_v40, 0.7853982  ;;  %v3346_v39 = vor.u32 %v3345_v37, %v3344_v10  ;;  %v3349_v47 = vshll.u32 %v3348_v21, 23 }
 0x386   :  { %v6233_v50 = vmul.u32.u64.low %v6185_v23, %v1758_v45  ;;  %v6234_v55 = vmul.u32.u64.high %v6185_v23, %v1758_v45, %v6233_v50  ;;  %vm1699_vm13 = vweird.f32 %v5986_v24  ;;  %vm1706_vm14 = vcmp.eq.s32.totalorder %v6176_v44, 2 }
 0x387   :  { %v3358_v34 = vsel %vm3273_vm5, %v3357_v22, %v6165_v53  ;;  %v3390_v19 = vsub.s32 32, %v3389_v15  ;;  %v6243_v40 = vshll.u32 %v3383_v60, 8  ;;  %v3350_v59 = vor.u32 4788187, %v3349_v47 }
 0x388   :  { %v1766_v8 = vmul.u32 %v6185_v23, %v1750_v13  ;;  %v6246_v26 = vshrl.u32 %v3387_v33, 5  ;;  %v3392_v51 = vshll.u32 %v4066_v61, %v3389_v15  ;;  %v1769_v18 = vadd.s32 1, %v6222_v30 }
 0x389   :  { %v3393_v4 = vshrl.u32 %v4067_v1, %v3390_v19  ;;  %v3395_v32 = vshll.u32 %v4067_v1, %v3389_v15  ;;  %v3398_v53 = vshll.u32 %v4068_v3, %v3389_v15  ;;  %v3351_v52 = vand.u32 2147483647, %v3350_v59 }
 0x38a   :  { %v4020_v22 = vpop.eup %4019  ;;  %v3353_v0 = vcvt.s32.f32 %v3346_v39  ;;  %vm1768_vm15 = vc.u32 %v6234_v55, %v6221_v49  ;;  %v3396_v23 = vshrl.u32 %v4068_v3, %v3390_v19  ;;  %v3399_v38 = vshrl.u32 %v4069_v5, %v3390_v19 }
 0x38b   :  { %v4022_v60 = vpop.eup %4021  ;;  %v1707_v43 = vxor.u32 2147483648, %v4020_v22  ;;  %v1770_v28 = vsel %vm1768_vm15, %v1769_v18, %v6222_v30  ;;  %v3401_v58 = vshll.u32 %v4069_v5, %v3389_v15  ;;  %v3404_v62 = vshll.u32 %v4070_v7, %v3389_v15 }
 0x38c   :  { %v1704_v57 = vxor.u32 2147483648, %v4022_v60  ;;  %v3354_v63 = vmul.f32 %v3353_v0, %v3351_v52  ;;  %v1771_v35 = vadd.s32 %v1770_v28, %v1766_v8  ;;  %v3394_v12 = vor.u32 %v3393_v4, %v3392_v51 }
 0x38d   :  { %v1708_v17 = vsel %vm1706_vm14, %v1707_v43, %v4022_v60  ;;  %v3402_v46 = vshrl.u32 %v4070_v7, %v3390_v19  ;;  %v3405_v2 = vshrl.u32 %v4071_v14, %v3390_v19  ;;  %v3397_v56 = vor.u32 %v3396_v23, %v3395_v32 }
 0x38e   :  { %v1705_v48 = vsel %vm1703_vm11, %v4020_v22, %v1704_v57  ;;  %v3355_v20 = vxor.u32 2147483648, %v3354_v63  ;;  %v1772_v31 = vadd.s32 536870912, %v1771_v35  ;;  %v3360_v6 = vsel %vm6228_vm12, 0, %v3358_v34 }
 0x38f   :  { %v1709_v10 = vsel %vm1702_vm10, %v1705_v48, %v1708_v17  ;;  %v3400_v27 = vor.u32 %v3399_v38, %v3398_v53  ;;  %v3403_v33 = vor.u32 %v3402_v46, %v3401_v58  ;;  %v3406_v16 = vor.u32 %v3405_v2, %v3404_v62  ;;  %v252_v2 = vpop.f32.mrf.mxu1 }
 0x390   :  { %v1710_v37 = vsel %vm1699_vm13, nan, %v1709_v10  ;;  %v3356_v21 = vsel %vm3273_vm5, %v3355_v20, %v3354_v63  ;;  %v1773_v13 = vshrl.u32 %v1772_v31, 30  ;;  %v3391_v44 = vshrl.u32 %v4066_v61, %v3390_v19 }
 0x391   :  { %3596 = vst [vmem:[#allocation2 + $0x68] sm:$0xff] %v1710_v37  ;;  %v3359_v45 = vsel %vm6228_vm12, %v6008_v54, %v3356_v21  ;;  %vm3407_vm0 = vcmp.lt.s32.totalorder %v6246_v26, 1  ;;  %vm3409_vm1 = vcmp.lt.s32.totalorder %v6246_v26, 3  ;;  %vm3410_vm2 = vcmp.lt.s32.totalorder %v6246_v26, 4 }
 0x392   :  { %4023 = vcosq.f32 %v3359_v45  ;;  %v1774_v30 = vshll.u32 %v1773_v13, 30  ;;  %v3415_v24 = vsel %vm3407_vm0, %v3394_v12, %v3397_v56  ;;  %v3412_v15 = vsel %vm3410_vm2, %v3400_v27, 2102212464 }
 0x393   :  { %4025 = vsinq.f32 %v3359_v45  ;;  %v3416_v39 = vsel %vm3410_vm2, %v3403_v33, 920167782  ;;  %v3419_v41 = vsel %vm3407_vm0, %v3397_v56, %v3400_v27  ;;  %vm3408_vm3 = vcmp.lt.s32.totalorder %v6246_v26, 2 }
 0x394   :  { %v6285_v47 = vsub.s32 %v1771_v35, %v1774_v30  ;;  %v3417_v50 = vsel %vm3409_vm1, %v3400_v27, %v3416_v39  ;;  %v3420_v34 = vsel %vm3410_vm2, %v3406_v16, 1326507024  ;;  %v3364_v19 = vadd.s32 3, %v3360_v6 }
 0x395   :  { %v1797_v59 = vsub.s32 4, %v1773_v13  ;;  %v3418_v8 = vsel %vm3408_vm3, %v3415_v24, %v3417_v50  ;;  %v3421_v51 = vsel %vm3409_vm1, %v3403_v33, %v3420_v34  ;;  %v3411_v4 = vsel %vm3407_vm0, %v3391_v44, %v3394_v12 }
 0x396   :  { %v1777_v18 = vsub.s32 0, %v6285_v47  ;;  %v3413_v32 = vsel %vm3409_vm1, %v3397_v56, %v3412_v15  ;;  %v3422_v53 = vsel %vm3408_vm3, %v3419_v41, %v3421_v51  ;;  %vm1713_vm4 = vcmp.lt.s32.totalorder %v6113_v42, 0 }
 0x397   :  { %v6302_v22 = vmul.u32.u64.low %v6243_v40, %v3422_v53  ;;  %v6303_v52 = vmul.u32.u64.high %v6243_v40, %v3422_v53, %v6302_v22  ;;  %v6306_v0 = vmul.u32.u64.low %v6243_v40, %v3418_v8  ;;  %v6307_v23 = vmul.u32.u64.high %v6243_v40, %v3418_v8, %v6306_v0 }
 0x398   :  { %v3704_v60 = vmin.u32 %v1777_v18, %v6285_v47  ;;  %v3365_v43 = vand.u32 3, %v3364_v19  ;;  %v1798_v28 = vsel %vm1713_vm4, %v1797_v59, %v1773_v13  ;;  %v3414_v38 = vsel %vm3408_vm3, %v3411_v4, %v3413_v32 }
 0x399   :  { %v1818_v58 = vand.u32 2139095040, %v6183_v9  ;;  %vm6318_vm5 = vcmp.le.f32.partialorder %v1711_v36, 0.7853982  ;;  %vm3432_vm6 = vc.u32 %v6303_v52, %v6306_v0  ;;  %v3433_v35 = vadd.s32 1, %v6307_v23 }
 0x39a   :  { %v1779_v57 = vclz %v3704_v60  ;;  %v1800_v12 = vsel %vm6318_vm5, 0, %v1798_v28  ;;  %v3430_v26 = vmul.u32 %v6243_v40, %v3414_v38  ;;  %v1815_v46 = vand.u32 2147483647, %v6183_v9 }
 0x39b   :  { %v1819_v62 = vshrl.u32 %v1818_v58, 23  ;;  %vm3366_vm7 = vcmp.lt.s32.totalorder %v3365_v43, 2  ;;  %vm3367_vm8 = vcmp.eq.s32.totalorder %v3365_v43, 0  ;;  %v3434_v36 = vsel %vm3432_vm6, %v3433_v35, %v6307_v23 }
 0x39c   :  { %v3705_v17 = vadd.s32 4294967294, %v1779_v57  ;;  %vm3370_vm9 = vcmp.eq.s32.totalorder %v3365_v43, 2  ;;  %v1767_v20 = vadd.s32 %v6221_v49, %v6234_v55  ;;  %v3435_v31 = vadd.s32 %v3434_v36, %v3430_v26 }
 0x39d   :  { %v3707_v48 = vadd.s32 4294967169, %v1819_v62  ;;  %v1804_v6 = vadd.s32 3, %v1800_v12  ;;  %v6332_v40 = vadd.f32 %v252_v2, %v4176_v29  ;;  %v1822_v16 = vand.u32 8388607, %v1815_v46 }
 0x39e   :  { %vm3706_vm11 = vcmp.lt.s32.totalorder %v3705_v17, 0  ;;  %v3436_v49 = vadd.s32 536870912, %v3435_v31  ;;  %vm3363_vm12 = vweird.f32 %v6008_v54  ;;  %v3431_v32 = vadd.s32 %v6306_v0, %v6303_v52 }
 0x39f   :  { %v4024_v56 = vpop.eup %4023  ;;  %v1782_v10 = vsel %vm3706_vm11, 0, %v3705_v17  ;;  %v1825_v27 = vadd.s32 1, %v3707_v48  ;;  %v3482_v50 = vand.u32 2139095040, %v6332_v40  ;;  %v6345_v4 = vand.u32 3, %v1804_v6 }
 0x3a0   :  { %v4026_v33 = vpop.eup %4025  ;;  %v3371_v37 = vxor.u32 2147483648, %v4024_v56  ;;  %v1783_v21 = vsub.s32 32, %v1782_v10  ;;  %v1787_v13 = vsub.s32 4294967266, %v1782_v10  ;;  %v1784_v44 = vshll.u32 %v6285_v47, %v1782_v10 }
 0x3a1   :  { %v3368_v45 = vxor.u32 2147483648, %v4026_v33  ;;  %vm1826_vm10 = vcmp.gt.s32.totalorder %v1825_v27, 0  ;;  %v6339_v39 = vshrl.u32 %v3436_v49, 30  ;;  %v1823_v22 = vor.u32 8388608, %v1822_v16 }
 0x3a2   :  { %v3372_v55 = vsel %vm3370_vm9, %v3371_v37, %v4026_v33  ;;  %v1785_v30 = vshrl.u32 %v1767_v20, %v1783_v21  ;;  %v1788_v24 = vadd.s32 127, %v1787_v13  ;;  %v1827_v15 = vsel %vm1826_vm10, %v1825_v27, 0 }
 0x3a3   :  { %v3369_v29 = vsel %vm3367_vm8, %v4024_v56, %v3368_v45  ;;  %v1829_v41 = vand.u32 31, %v1827_v15  ;;  %v3438_v8 = vshll.u32 %v6339_v39, 30  ;;  %v3483_v54 = vshrl.u32 %v3482_v50, 23 }
 0x3a4   :  { %v3373_v34 = vsel %vm3366_vm7, %v3369_v29, %v3372_v55  ;;  %v1786_v19 = vor.u32 %v1785_v30, %v1784_v44  ;;  %v1789_v47 = vshll.u32 %v1788_v24, 23  ;;  %v1828_v62 = vshrl.u32 %v1827_v15, 5 }
 0x3a5   :  { %v3374_v59 = vsel %vm3363_vm12, nan, %v3373_v34  ;;  %v1830_v51 = vsub.s32 32, %v1829_v41  ;;  %v6348_v53 = vsub.s32 %v3435_v31, %v3438_v8  ;;  %v1832_v28 = vshll.u32 %v4066_v61, %v1829_v41 }
 0x3a6   :  { %3612 = vst [vmem:[#allocation2 + $0xe8] sm:$0xff] %v3374_v59  ;;  %v1790_v18 = vor.u32 4788187, %v1789_v47  ;;  %v1793_v43 = vcvt.s32.f32 %v1786_v19  ;;  %v1835_v57 = vshll.u32 %v4067_v1, %v1829_v41  ;;  %v1838_v35 = vshll.u32 %v4068_v3, %v1829_v41 }
 0x3a7   :  { %v1833_v23 = vshrl.u32 %v4067_v1, %v1830_v51  ;;  %v1836_v38 = vshrl.u32 %v4068_v3, %v1830_v51  ;;  %v3441_v58 = vsub.s32 0, %v6348_v53  ;;  %v1839_v52 = vshrl.u32 %v4069_v5, %v1830_v51 }
 0x3a8   :  { %v1791_v60 = vand.u32 2147483647, %v1790_v18  ;;  %v1841_v17 = vshll.u32 %v4069_v5, %v1829_v41  ;;  %v1842_v12 = vshrl.u32 %v4070_v7, %v1830_v51  ;;  %v1844_v56 = vshll.u32 %v4070_v7, %v1829_v41 }
 0x3a9   :  { %v3768_v26 = vmin.u32 %v3441_v58, %v6348_v53  ;;  %v1834_v2 = vor.u32 %v1833_v23, %v1832_v28  ;;  %v1837_v36 = vor.u32 %v1836_v38, %v1835_v57  ;;  %v1840_v48 = vor.u32 %v1839_v52, %v1838_v35 }
 0x3aa   :  { %v1794_v0 = vmul.f32 %v1793_v43, %v1791_v60  ;;  %v1843_v31 = vor.u32 %v1842_v12, %v1841_v17  ;;  %v1845_v10 = vshrl.u32 %v4071_v14, %v1830_v51  ;;  %v3461_v27 = vsub.s32 4, %v6339_v39 }
 0x3ab   :  { %v3443_v6 = vclz %v3768_v26  ;;  %v1863_v33 = vshll.u32 %v1823_v22, 8  ;;  %v3771_v37 = vadd.s32 4294967169, %v3483_v54  ;;  %v1831_v13 = vshrl.u32 %v4066_v61, %v1830_v51 }
 0x3ac   :  { %v1795_v20 = vxor.u32 2147483648, %v1794_v0  ;;  %v1846_v16 = vor.u32 %v1845_v10, %v1844_v56  ;;  %vm1847_vm13 = vcmp.lt.s32.totalorder %v1828_v62, 1  ;;  %vm1849_vm14 = vcmp.lt.s32.totalorder %v1828_v62, 3 }
 0x3ad   :  { %v3769_v44 = vadd.s32 4294967294, %v3443_v6  ;;  %vm1850_vm15 = vcmp.lt.s32.totalorder %v1828_v62, 4  ;;  %v1855_v55 = vsel %vm1847_vm13, %v1834_v2, %v1837_v36  ;;  %vm1848_vm1 = vcmp.lt.s32.totalorder %v1828_v62, 2 }
 0x3ae   :  { %v1796_v21 = vsel %vm1713_vm4, %v1795_v20, %v1794_v0  ;;  %v1852_v49 = vsel %vm1850_vm15, %v1840_v48, 2102212464  ;;  %v1856_v30 = vsel %vm1850_vm15, %v1843_v31, 920167782  ;;  %v1851_v29 = vsel %vm1847_vm13, %v1831_v13, %v1834_v2 }
 0x3af   :  { %v1799_v45 = vsel %vm6318_vm5, %v6113_v42, %v1796_v21  ;;  %vm3770_vm0 = vcmp.lt.s32.totalorder %v3769_v44, 0  ;;  %v1857_v24 = vsel %vm1849_vm14, %v1840_v48, %v1856_v30  ;;  %v1859_v41 = vsel %vm1847_vm13, %v1837_v36, %v1840_v48 }
 0x3b0   :  { %4027 = vcosq.f32 %v1799_v45  ;;  %v3446_v15 = vsel %vm3770_vm0, 0, %v3769_v44  ;;  %v1858_v63 = vsel %vm1848_vm1, %v1855_v55, %v1857_v24  ;;  %v1853_v19 = vsel %vm1849_vm14, %v1837_v36, %v1852_v49 }
 0x3b1   :  { %4029 = vsinq.f32 %v1799_v45  ;;  %v3447_v50 = vsub.s32 32, %v3446_v15  ;;  %v3451_v34 = vsub.s32 4294967266, %v3446_v15  ;;  %v1860_v47 = vsel %vm1850_vm15, %v1846_v16, 1326507024 }
 0x3b2   :  { %v3448_v59 = vshll.u32 %v6348_v53, %v3446_v15  ;;  %v1861_v8 = vsel %vm1849_vm14, %v1843_v31, %v1860_v47  ;;  %v6380_v51 = vmul.u32.u64.low %v1863_v33, %v1858_v63  ;;  %v6381_v18 = vmul.u32.u64.high %v1863_v33, %v1858_v63, %v6380_v51 }
 0x3b3   :  { %v3449_v22 = vshrl.u32 %v3431_v32, %v3447_v50  ;;  %v3452_v23 = vadd.s32 127, %v3451_v34  ;;  %v1862_v54 = vsel %vm1848_vm1, %v1859_v41, %v1861_v8  ;;  %v3489_v60 = vadd.s32 1, %v3771_v37 }
 0x3b4   :  { %vm3377_vm2 = vcmp.lt.s32.totalorder %v6131_v11, 0  ;;  %v6386_v43 = vmul.u32.u64.low %v1863_v33, %v1862_v54  ;;  %v6387_v28 = vmul.u32.u64.high %v1863_v33, %v1862_v54, %v6386_v43  ;;  %v1854_v53 = vsel %vm1848_vm1, %v1851_v29, %v1853_v19 }
 0x3b5   :  { %v3450_v38 = vor.u32 %v3449_v22, %v3448_v59  ;;  %v3453_v58 = vshll.u32 %v3452_v23, 23  ;;  %vm3490_vm3 = vcmp.gt.s32.totalorder %v3489_v60, 0  ;;  %vm6392_vm4 = vcmp.le.f32.partialorder %v3375_v25, 0.7853982 }
 0x3b6   :  { %v1873_v32 = vadd.s32 1, %v6381_v18  ;;  %v3479_v35 = vand.u32 2147483647, %v6332_v40  ;;  %v3491_v52 = vsel %vm3490_vm3, %v3489_v60, 0  ;;  %vm1806_vm5 = vcmp.lt.s32.totalorder %v6345_v4, 2 }
 0x3b7   :  { %v3454_v0 = vor.u32 4788187, %v3453_v58  ;;  %v3462_v62 = vsel %vm3377_vm2, %v3461_v27, %v6339_v39  ;;  %v3493_v17 = vand.u32 31, %v3491_v52  ;;  %vm1803_vm6 = vweird.f32 %v6113_v42 }
 0x3b8   :  { %vm1807_vm7 = vcmp.eq.s32.totalorder %v6345_v4, 0  ;;  %vm1810_vm8 = vcmp.eq.s32.totalorder %v6345_v4, 2  ;;  %v1870_v25 = vmul.u32 %v1863_v33, %v1854_v53  ;;  %vm1872_vm9 = vc.u32 %v6387_v28, %v6380_v51 }
 0x3b9   :  { %v3455_v12 = vand.u32 2147483647, %v3454_v0  ;;  %v3457_v26 = vcvt.s32.f32 %v3450_v38  ;;  %v1874_v2 = vsel %vm1872_vm9, %v1873_v32, %v6381_v18  ;;  %v3494_v36 = vsub.s32 32, %v3493_v17 }
 0x3ba   :  { %v3464_v48 = vsel %vm6392_vm4, 0, %v3462_v62  ;;  %v1875_v39 = vadd.s32 %v1874_v2, %v1870_v25  ;;  %v3486_v20 = vand.u32 8388607, %v3479_v35  ;;  %v6412_v31 = vshrl.u32 %v3491_v52, 5 }
 0x3bb   :  { %v3458_v10 = vmul.f32 %v3457_v26, %v3455_v12  ;;  %v3496_v6 = vshll.u32 %v4066_v61, %v3493_v17  ;;  %v3497_v27 = vshrl.u32 %v4067_v1, %v3494_v36  ;;  %v3499_v33 = vshll.u32 %v4067_v1, %v3493_v17 }
 0x3bc   :  { %v1876_v13 = vadd.s32 536870912, %v1875_v39  ;;  %v3500_v16 = vshrl.u32 %v4068_v3, %v3494_v36  ;;  %v3502_v45 = vshll.u32 %v4068_v3, %v3493_v17  ;;  %v3505_v55 = vshll.u32 %v4069_v5, %v3493_v17 }
 0x3bd   :  { %v4028_v56 = vpop.eup %4027  ;;  %v3459_v49 = vxor.u32 2147483648, %v3458_v10  ;;  %v3506_v30 = vshrl.u32 %v4070_v7, %v3494_v36  ;;  %v3498_v29 = vor.u32 %v3497_v27, %v3496_v6  ;;  %v3503_v1 = vshrl.u32 %v4069_v5, %v3494_v36 }
 0x3be   :  { %v4030_v37 = vpop.eup %4029  ;;  %v1811_v21 = vxor.u32 2147483648, %v4028_v56  ;;  %v6423_v15 = vshrl.u32 %v1876_v13, 30  ;;  %v3508_v41 = vshll.u32 %v4070_v7, %v3493_v17  ;;  %v3509_v50 = vshrl.u32 %v4071_v14, %v3494_v36 }
 0x3bf   :  { %v1808_v44 = vxor.u32 2147483648, %v4030_v37  ;;  %v3460_v3 = vsel %vm3377_vm2, %v3459_v49, %v3458_v10  ;;  %v3501_v5 = vor.u32 %v3500_v16, %v3499_v33  ;;  %v3507_v8 = vor.u32 %v3506_v30, %v3505_v55 }
 0x3c0   :  { %v1812_v24 = vsel %vm1810_vm8, %v1811_v21, %v4030_v37  ;;  %v3463_v19 = vsel %vm6392_vm4, %v6131_v11, %v3460_v3  ;;  %v1878_v47 = vshll.u32 %v6423_v15, 30  ;;  %v3510_v18 = vor.u32 %v3509_v50, %v3508_v41 }
 0x3c1   :  { %v1809_v63 = vsel %vm1807_vm7, %v4028_v56, %v1808_v44  ;;  %4031 = vcosq.f32 %v3463_v19  ;;  %v3504_v14 = vor.u32 %v3503_v1, %v3502_v45  ;;  %v3468_v22 = vadd.s32 3, %v3464_v48 }
 0x3c2   :  { %v1813_v34 = vsel %vm1806_vm5, %v1809_v63, %v1812_v24  ;;  %4033 = vsinq.f32 %v3463_v19  ;;  %v1879_v7 = vsub.s32 %v1875_v39, %v1878_v47  ;;  %v3487_v4 = vor.u32 8388608, %v3486_v20 }
 0x3c3   :  { %v1814_v59 = vsel %vm1803_vm6, nan, %v1813_v34  ;;  %vm3511_vm11 = vcmp.lt.s32.totalorder %v6412_v31, 1  ;;  %v3495_v54 = vshrl.u32 %v4066_v61, %v3494_v36  ;;  %vm3514_vm10 = vcmp.lt.s32.totalorder %v6412_v31, 4 }
 0x3c4   :  { %3597 = vst [vmem:[#allocation2 + $0x70] sm:$0xff] %v1814_v59  ;;  %v1881_v23 = vsub.s32 0, %v1879_v7  ;;  %v3519_v42 = vsel %vm3511_vm11, %v3498_v29, %v3501_v5  ;;  %vm3512_vm12 = vcmp.lt.s32.totalorder %v6412_v31, 2  ;;  %vm3513_vm13 = vcmp.lt.s32.totalorder %v6412_v31, 3 }
 0x3c5   :  { %v3520_v60 = vsel %vm3514_vm10, %v3507_v8, 920167782  ;;  %v3524_v43 = vsel %vm3514_vm10, %v3510_v18, 1326507024  ;;  %v3516_v58 = vsel %vm3514_vm10, %v3504_v14, 2102212464  ;;  %v3523_v57 = vsel %vm3511_vm11, %v3501_v5, %v3504_v14 }
 0x3c6   :  { %v3708_v38 = vmin.u32 %v1881_v23, %v1879_v7  ;;  %v3521_v53 = vsel %vm3513_vm13, %v3504_v14, %v3520_v60  ;;  %v3525_v32 = vsel %vm3513_vm13, %v3507_v8, %v3524_v43  ;;  %v3527_v52 = vshll.u32 %v3487_v4, 8 }
 0x3c7   :  { %v3522_v61 = vsel %vm3512_vm12, %v3519_v42, %v3521_v53  ;;  %v3515_v62 = vsel %vm3511_vm11, %v3495_v54, %v3498_v29  ;;  %v3517_v17 = vsel %vm3513_vm13, %v3501_v5, %v3516_v58  ;;  %v3526_v25 = vsel %vm3512_vm12, %v3523_v57, %v3525_v32 }
 0x3c8   :  { %v1883_v0 = vclz %v3708_v38  ;;  %v6455_v12 = vmul.u32.u64.low %v3527_v52, %v3522_v61  ;;  %v6456_v26 = vmul.u32.u64.high %v3527_v52, %v3522_v61, %v6455_v12  ;;  %v3469_v2 = vand.u32 3, %v3468_v22 }
 0x3c9   :  { %v6458_v48 = vmul.u32.u64.low %v3527_v52, %v3526_v25  ;;  %v6459_v39 = vmul.u32.u64.high %v3527_v52, %v3526_v25, %v6458_v48  ;;  %v3518_v20 = vsel %vm3512_vm12, %v3515_v62, %v3517_v17  ;;  %v1871_v27 = vadd.s32 %v6380_v51, %v6387_v28 }
 0x3ca   :  { %v3709_v36 = vadd.s32 4294967294, %v1883_v0  ;;  %v3537_v10 = vadd.s32 1, %v6456_v26  ;;  %vm3474_vm15 = vcmp.eq.s32.totalorder %v3469_v2, 2  ;;  %v3534_v45 = vmul.u32 %v3527_v52, %v3518_v20 }
 0x3cb   :  { %vm3536_vm0 = vc.u32 %v6459_v39, %v6455_v12  ;;  %vm3471_vm1 = vcmp.eq.s32.totalorder %v3469_v2, 0  ;;  %vm3470_vm2 = vcmp.lt.s32.totalorder %v3469_v2, 2  ;;  %vm3467_vm3 = vweird.f32 %v6131_v11 }
 0x3cc   :  { %vm3710_vm14 = vcmp.lt.s32.totalorder %v3709_v36, 0  ;;  %v3538_v55 = vsel %vm3536_vm0, %v3537_v10, %v6456_v26  ;;  %vm1817_vm4 = vcmp.lt.s32.totalorder %v6183_v9, 0  ;;  %v1901_v18 = vsub.s32 4, %v6423_v15 }
 0x3cd   :  { %v1886_v56 = vsel %vm3710_vm14, 0, %v3709_v36  ;;  %v3539_v24 = vadd.s32 %v3538_v55, %v3534_v45  ;;  %vm1816_vm5 = vcmp.le.f32.partialorder %v1815_v46, 0.7853982  ;;  %v3535_v38 = vadd.s32 %v6455_v12, %v6459_v39 }
 0x3ce   :  { %v4032_v6 = vpop.eup %4031  ;;  %v1887_v33 = vsub.s32 32, %v1886_v56  ;;  %v1891_v37 = vsub.s32 4294967266, %v1886_v56  ;;  %v1888_v16 = vshll.u32 %v1879_v7, %v1886_v56  ;;  %v1902_v4 = vsel %vm1817_vm4, %v1901_v18, %v6423_v15 }
 0x3cf   :  { %v4034_v21 = vpop.eup %4033  ;;  %v3475_v13 = vxor.u32 2147483648, %v4032_v6  ;;  %v3540_v63 = vadd.s32 536870912, %v3539_v24  ;;  %v1904_v42 = vsel %vm1816_vm5, 0, %v1902_v4  ;;  %vm1907_vm11 = vweird.f32 %v6183_v9 }
 0x3d0   :  { %v3472_v44 = vxor.u32 2147483648, %v4034_v21  ;;  %v1889_v49 = vshrl.u32 %v1871_v27, %v1887_v33  ;;  %v1892_v31 = vadd.s32 127, %v1891_v37  ;;  %v1908_v43 = vadd.s32 3, %v1904_v42 }
 0x3d1   :  { %v3476_v30 = vsel %vm3474_vm15, %v3475_v13, %v4034_v21  ;;  %v3541_v50 = vshrl.u32 %v3540_v63, 30  ;;  %vm3481_vm10 = vcmp.lt.s32.totalorder %v6332_v40, 0  ;;  %vm3480_vm12 = vcmp.le.f32.partialorder %v3479_v35, 0.7853982 }
 0x3d2   :  { %v3473_v29 = vsel %vm3471_vm1, %v4032_v6, %v3472_v44  ;;  %v1890_v1 = vor.u32 %v1889_v49, %v1888_v16  ;;  %v1893_v51 = vshll.u32 %v1892_v31, 23  ;;  %v1909_v32 = vand.u32 3, %v1908_v43 }
 0x3d3   :  { %v3477_v28 = vsel %vm3470_vm2, %v3473_v29, %v3476_v30  ;;  %v3542_v47 = vshll.u32 %v3541_v50, 30  ;;  %v3565_v6 = vsub.s32 4, %v3541_v50  ;;  %vm3571_vm0 = vweird.f32 %v6332_v40 }
 0x3d4   :  { %v3478_v3 = vsel %vm3467_vm3, nan, %v3477_v28  ;;  %v1894_v41 = vor.u32 4788187, %v1893_v51  ;;  %v1897_v19 = vcvt.s32.f32 %v1890_v1  ;;  %vm1914_vm7 = vcmp.eq.s32.totalorder %v1909_v32, 2 }
 0x3d5   :  { %3613 = vst [vmem:[#allocation2 + $0xf0] sm:$0xff] %v3478_v3  ;;  %v3543_v59 = vsub.s32 %v3539_v24, %v3542_v47  ;;  %vm1911_vm8 = vcmp.eq.s32.totalorder %v1909_v32, 0  ;;  %vm1910_vm9 = vcmp.lt.s32.totalorder %v1909_v32, 2  ;;  %v3566_v37 = vsel %vm3481_vm10, %v3565_v6, %v3541_v50 }
 0x3d6   :  { %v1895_v34 = vand.u32 2147483647, %v1894_v41  ;;  %v3568_v21 = vsel %vm3480_vm12, 0, %v3566_v37 }
 0x3d7   :  { %v3545_v7 = vsub.s32 0, %v3543_v59  ;;  %v3572_v13 = vadd.s32 3, %v3568_v21 }
 0x3d8   :  { %v1898_v5 = vmul.f32 %v1897_v19, %v1895_v34 }
 0x3d9   :  { %v3772_v22 = vmin.u32 %v3545_v7, %v3543_v59  ;;  %v3573_v16 = vand.u32 3, %v3572_v13 }
 0x3da   :  { %v1899_v8 = vxor.u32 2147483648, %v1898_v5 }
 0x3db   :  { %v3547_v23 = vclz %v3772_v22  ;;  %vm3578_vm13 = vcmp.eq.s32.totalorder %v3573_v16, 2  ;;  %vm3575_vm14 = vcmp.eq.s32.totalorder %v3573_v16, 0  ;;  %vm3574_vm15 = vcmp.lt.s32.totalorder %v3573_v16, 2 }
 0x3dc   :  { %v1900_v11 = vsel %vm1817_vm4, %v1899_v8, %v1898_v5 }
 0x3dd   :  { %v1903_v14 = vsel %vm1816_vm5, %v6183_v9, %v1900_v11  ;;  %v3773_v54 = vadd.s32 4294967294, %v3547_v23 }
 0x3de   :  { %4035 = vcosq.f32 %v1903_v14 }
 0x3df   :  { %4037 = vsinq.f32 %v1903_v14  ;;  %vm3774_vm6 = vcmp.lt.s32.totalorder %v3773_v54, 0 }
 0x3e0   :  { %v3550_v60 = vsel %vm3774_vm6, 0, %v3773_v54 }
 0x3e1   :  { %v3551_v58 = vsub.s32 32, %v3550_v60  ;;  %v3555_v53 = vsub.s32 4294967266, %v3550_v60  ;;  %v3552_v57 = vshll.u32 %v3543_v59, %v3550_v60 }
 0x3e3   :  { %v3553_v46 = vshrl.u32 %v3535_v38, %v3551_v58  ;;  %v3556_v61 = vadd.s32 127, %v3555_v53 }
 0x3e5   :  { %v3554_v52 = vor.u32 %v3553_v46, %v3552_v57  ;;  %v3557_v0 = vshll.u32 %v3556_v61, 23 }
 0x3e7   :  { %v3558_v17 = vor.u32 4788187, %v3557_v0  ;;  %v3561_v36 = vcvt.s32.f32 %v3554_v52 }
 0x3e9   :  { %v3559_v2 = vand.u32 2147483647, %v3558_v17 }
 0x3eb   :  { %v4036_v62 = vpop.eup %4035  ;;  %v3562_v39 = vmul.f32 %v3561_v36, %v3559_v2 }
 0x3ec   :  { %v4038_v15 = vpop.eup %4037  ;;  %v1915_v25 = vxor.u32 2147483648, %v4036_v62 }
 0x3ed   :  { %v1912_v26 = vxor.u32 2147483648, %v4038_v15  ;;  %v3563_v10 = vxor.u32 2147483648, %v3562_v39 }
 0x3ee   :  { %v1916_v48 = vsel %vm1914_vm7, %v1915_v25, %v4038_v15 }
 0x3ef   :  { %v1913_v12 = vsel %vm1911_vm8, %v4036_v62, %v1912_v26  ;;  %v3564_v27 = vsel %vm3481_vm10, %v3563_v10, %v3562_v39 }
 0x3f0   :  { %v1917_v20 = vsel %vm1910_vm9, %v1913_v12, %v1916_v48  ;;  %v3567_v33 = vsel %vm3480_vm12, %v6332_v40, %v3564_v27 }
 0x3f1   :  { %v1918_v56 = vsel %vm1907_vm11, nan, %v1917_v20  ;;  %4039 = vcosq.f32 %v3567_v33 }
 0x3f2   :  { %3598 = vst [vmem:[#allocation2 + $0x78] sm:$0xff] %v1918_v56  ;;  %4041 = vsinq.f32 %v3567_v33 }
 0x3fe   :  { %v4040_v9 = vpop.eup %4039 }
 0x3ff   :  { %v4042_v45 = vpop.eup %4041  ;;  %v3579_v44 = vxor.u32 2147483648, %v4040_v9 }
 0x400   :  { %v3576_v49 = vxor.u32 2147483648, %v4042_v45 }
 0x401   :  { %v3580_v31 = vsel %vm3578_vm13, %v3579_v44, %v4042_v45 }
 0x402   :  { %v3577_v35 = vsel %vm3575_vm14, %v4040_v9, %v3576_v49 }
 0x403   :  { %v3581_v55 = vsel %vm3574_vm15, %v3577_v35, %v3580_v31 }
 0x404   :  { %v3582_v30 = vsel %vm3571_vm0, nan, %v3581_v55 }
 0x405   :  { %3614 = vst [vmem:[#allocation2 + $0xf8] sm:$0xff] %v3582_v30 }
 0x406   :  { %4054 = shalt.err (!%p4051_p4)
}
 0x407   :  { %s4073_s22 = smov 256   ;;  %s4074_s23 = smov 16  }
 0x408   :  { %3626 = dma.vmem_to_hbm [thread:$0]  %s3621_s2, 4096, %s6488_s3, [#allocation3], %s4073_s22, %s4073_s22, %s4074_s23  }
 0x409   :  { %4063 = dma.done.wait [#allocation3], 4096  }
 0x40a   :  { %4064 = vsyncadd [#allocation3], 4294963200 }
 0x40b   :  { %3630 = vsyncpa [#allocation3], 1 }

</bundles_post_ra>
